<compile_context>
chip_gen: v5e
topology: v5e:2x2
jax: 0.10.0
libtpu: 0.0.40
codegen_flags: <defaults>
</compile_context>

<pallas_src>
import functools
import math

import jax
import jax.numpy as jnp
from jax.experimental import pallas as pl
from jax.experimental.pallas import tpu as pltpu

CFG = dict(d_model=32, d_ff=64, heads=4, layers=2,
           src_vocab=16, tgt_vocab=16, max_len=64)


# --------------------------- in-kernel helpers ------------------------------

def _layer_norm(x, g, b):
    # Annotated-Transformer LayerNorm: unbiased (n-1) std, eps added to std.
    d = x.shape[-1]
    mean = jnp.mean(x, axis=-1, keepdims=True)
    centered = x - mean
    var = jnp.sum(centered * centered, axis=-1, keepdims=True) * (1.0 / (d - 1))
    inv = pl.reciprocal(jnp.sqrt(var) + 1e-6, approx=True)
    return g * centered * inv + b


def _mm(x, w_bf16):
    # bf16 MXU operands, f32 accumulation; surrounding elementwise math is f32.
    return jnp.dot(x.astype(jnp.bfloat16), w_bf16,
                   preferred_element_type=jnp.float32)


def _attention(q, k, v, bias, heads, wo, bo):
    # q: [Tq, D] f32, k/v: [Tk, D] f32, bias: [Tq, Tk] f32 additive (-1e9 masked)
    # wo: [D, D] bf16, bo: [1, D] f32.
    # Returns the multi-head attention output already projected through W_o:
    # per-head contexts are multiplied by the matching row-slice of W_o and
    # summed (no concat / relayout needed).
    Tq, D = q.shape
    dh = D // heads
    scale = 1.0 / math.sqrt(dh)
    out = None
    for h in range(heads):
        sl = slice(h * dh, (h + 1) * dh)
        qh = q[:, sl].astype(jnp.bfloat16)
        kh = k[:, sl].astype(jnp.bfloat16)
        vh = v[:, sl].astype(jnp.bfloat16)
        s = jnp.einsum('qd,kd->qk', qh, kh,
                       preferred_element_type=jnp.float32) * scale + bias
        s = s - jnp.max(s, axis=-1, keepdims=True)
        p = jnp.exp(s)
        p = p * pl.reciprocal(jnp.sum(p, axis=-1, keepdims=True), approx=True)
        ctx = jnp.dot(p.astype(jnp.bfloat16), vh,
                      preferred_element_type=jnp.float32)           # [Tq, dh]
        head_out = jnp.dot(ctx.astype(jnp.bfloat16), wo[sl, :],
                           preferred_element_type=jnp.float32)      # [Tq, D]
        out = head_out if out is None else out + head_out
    return out + bo


# ------------------------------ fused kernels -------------------------------

def _encoder_kernel(x_ref, bias_ref,
                    ln1_g, ln1_b, wqkv, bqkv, wo, bo,
                    ln2_g, ln2_b, w1, b1, w2, b2,
                    lnf_g, lnf_b,
                    out_ref, *, heads):
    D = x_ref.shape[2]
    L = wqkv.shape[0]
    x = x_ref[0].astype(jnp.float32)           # [Ts, D]
    bias = bias_ref[0]                         # [Ts, Ts]
    for l in range(L):
        # pre-LN self-attention sublayer (LN -> fused QKV -> attn -> Wo -> +res)
        y = _layer_norm(x, ln1_g[l], ln1_b[l])
        qkv = _mm(y, wqkv[l]) + bqkv[l]        # [Ts, 3D]
        q, k, v = qkv[:, :D], qkv[:, D:2 * D], qkv[:, 2 * D:]
        x = x + _attention(q, k, v, bias, heads, wo[l], bo[l])
        # pre-LN feed-forward sublayer (LN -> W1 -> relu -> W2 -> +res)
        y = _layer_norm(x, ln2_g[l], ln2_b[l])
        hdn = jnp.maximum(_mm(y, w1[l]) + b1[l], 0.0)
        x = x + _mm(hdn, w2[l]) + b2[l]
    x = _layer_norm(x, lnf_g[...], lnf_b[...])
    out_ref[0] = x.astype(out_ref.dtype)


def _decoder_kernel(x_ref, mem_ref, sbias_ref, cbias_ref,
                    ln1_g, ln1_b, wqkv, bqkv, wo_s, bo_s,
                    ln2_g, ln2_b, wq_c, bq_c, wkv_c, bkv_c, wo_c, bo_c,
                    ln3_g, ln3_b, w1, b1, w2, b2,
                    lnf_g, lnf_b, wgen, bgen,
                    out_ref, *, heads):
    D = x_ref.shape[2]
    L = wqkv.shape[0]
    x = x_ref[0].astype(jnp.float32)           # [Tt, D]
    mem = mem_ref[0].astype(jnp.float32)       # [Ts, D]
    sbias = sbias_ref[0]                       # [Tt, Tt]
    cbias = cbias_ref[0]                       # [Tt, Ts]
    for l in range(L):
        # masked self-attention sublayer
        y = _layer_norm(x, ln1_g[l], ln1_b[l])
        qkv = _mm(y, wqkv[l]) + bqkv[l]
        q, k, v = qkv[:, :D], qkv[:, D:2 * D], qkv[:, 2 * D:]
        x = x + _attention(q, k, v, sbias, heads, wo_s[l], bo_s[l])
        # cross-attention over encoder memory (fused K/V projection)
        y = _layer_norm(x, ln2_g[l], ln2_b[l])
        q = _mm(y, wq_c[l]) + bq_c[l]
        kv = _mm(mem, wkv_c[l]) + bkv_c[l]
        k, v = kv[:, :D], kv[:, D:]
        x = x + _attention(q, k, v, cbias, heads, wo_c[l], bo_c[l])
        # feed-forward sublayer
        y = _layer_norm(x, ln3_g[l], ln3_b[l])
        hdn = jnp.maximum(_mm(y, w1[l]) + b1[l], 0.0)
        x = x + _mm(hdn, w2[l]) + b2[l]
    x = _layer_norm(x, lnf_g[...], lnf_b[...])
    # generator (Linear + exact log_softmax) fused into the same kernel
    logits = _mm(x, wgen[...]) + bgen[...]
    z = logits - jnp.max(logits, axis=-1, keepdims=True)
    lse = jnp.log(jnp.sum(jnp.exp(z), axis=-1, keepdims=True))
    out_ref[0] = (z - lse).astype(out_ref.dtype)


# ----------------------------- pallas wrappers ------------------------------

def _batch_spec(shape):
    n = len(shape)
    return pl.BlockSpec((1,) + tuple(shape[1:]),
                        lambda b, n=n: (b,) + (0,) * (n - 1))


def _full_spec(shape):
    n = len(shape)
    return pl.BlockSpec(tuple(shape), lambda b, n=n: (0,) * n)


def _bf16(a):
    return a.astype(jnp.bfloat16)


def pallas_encoder(x, bias, enc, heads):
    B, Ts, D = x.shape
    batched = [x, bias]
    shared = [enc['ln1_g'], enc['ln1_b'],
              _bf16(enc['wqkv']), enc['bqkv'],
              _bf16(enc['wo']), enc['bo'],
              enc['ln2_g'], enc['ln2_b'],
              _bf16(enc['w1']), enc['b1'],
              _bf16(enc['w2']), enc['b2'],
              enc['lnf_g'], enc['lnf_b']]
    return pl.pallas_call(
        functools.partial(_encoder_kernel, heads=heads),
        out_shape=jax.ShapeDtypeStruct((B, Ts, D), jnp.float32),
        grid=(B,),
        in_specs=[_batch_spec(a.shape) for a in batched] +
                 [_full_spec(a.shape) for a in shared],
        out_specs=_batch_spec((B, Ts, D)),
        compiler_params=pltpu.CompilerParams(
            dimension_semantics=("parallel",)),
    )(*batched, *shared)


def pallas_decoder(x, memory, self_bias, cross_bias, dec, gen_w, gen_b, heads):
    B, Tt, D = x.shape
    V = gen_w.shape[-1]
    batched = [x, memory, self_bias, cross_bias]
    shared = [dec['ln1_g'], dec['ln1_b'],
              _bf16(dec['wqkv']), dec['bqkv'],
              _bf16(dec['wo_s']), dec['bo_s'],
              dec['ln2_g'], dec['ln2_b'],
              _bf16(dec['wq_c']), dec['bq_c'],
              _bf16(dec['wkv_c']), dec['bkv_c'],
              _bf16(dec['wo_c']), dec['bo_c'],
              dec['ln3_g'], dec['ln3_b'],
              _bf16(dec['w1']), dec['b1'],
              _bf16(dec['w2']), dec['b2'],
              dec['lnf_g'], dec['lnf_b'],
              _bf16(gen_w), gen_b]
    return pl.pallas_call(
        functools.partial(_decoder_kernel, heads=heads),
        out_shape=jax.ShapeDtypeStruct((B, Tt, V), jnp.float32),
        grid=(B,),
        in_specs=[_batch_spec(a.shape) for a in batched] +
                 [_full_spec(a.shape) for a in shared],
        out_specs=_batch_spec((B, Tt, V)),
        compiler_params=pltpu.CompilerParams(
            dimension_semantics=("parallel",)),
    )(*batched, *shared)


# ------------------------------ model glue ---------------------------------

def positional_encoding(max_len, d_model):
    pos = jnp.arange(max_len, dtype=jnp.float32)[:, None]
    div = jnp.exp(jnp.arange(0, d_model, 2, dtype=jnp.float32)
                  * (-math.log(10000.0) / d_model))
    pe = jnp.zeros((max_len, d_model), jnp.float32)
    pe = pe.at[:, 0::2].set(jnp.sin(pos * div))
    pe = pe.at[:, 1::2].set(jnp.cos(pos * div))
    return pe


def init_params(key, cfg):
    d, f, L = cfg['d_model'], cfg['d_ff'], cfg['layers']
    sv, tv = cfg['src_vocab'], cfg['tgt_vocab']
    keys = iter(jax.random.split(key, 64))

    def dense(shape, scale=0.1):
        return scale * jax.random.normal(next(keys), shape, jnp.float32)

    def ones(shape):
        return jnp.ones(shape, jnp.float32)

    def zeros(shape):
        return jnp.zeros(shape, jnp.float32)

    enc = dict(
        ln1_g=ones((L, 1, d)), ln1_b=zeros((L, 1, d)),
        wqkv=dense((L, d, 3 * d)), bqkv=zeros((L, 1, 3 * d)),
        wo=dense((L, d, d)), bo=zeros((L, 1, d)),
        ln2_g=ones((L, 1, d)), ln2_b=zeros((L, 1, d)),
        w1=dense((L, d, f)), b1=zeros((L, 1, f)),
        w2=dense((L, f, d)), b2=zeros((L, 1, d)),
        lnf_g=ones((1, d)), lnf_b=zeros((1, d)),
    )
    dec = dict(
        ln1_g=ones((L, 1, d)), ln1_b=zeros((L, 1, d)),
        wqkv=dense((L, d, 3 * d)), bqkv=zeros((L, 1, 3 * d)),
        wo_s=dense((L, d, d)), bo_s=zeros((L, 1, d)),
        ln2_g=ones((L, 1, d)), ln2_b=zeros((L, 1, d)),
        wq_c=dense((L, d, d)), bq_c=zeros((L, 1, d)),
        wkv_c=dense((L, d, 2 * d)), bkv_c=zeros((L, 1, 2 * d)),
        wo_c=dense((L, d, d)), bo_c=zeros((L, 1, d)),
        ln3_g=ones((L, 1, d)), ln3_b=zeros((L, 1, d)),
        w1=dense((L, d, f)), b1=zeros((L, 1, f)),
        w2=dense((L, f, d)), b2=zeros((L, 1, d)),
        lnf_g=ones((1, d)), lnf_b=zeros((1, d)),
    )
    return dict(
        src_emb=dense((sv, d), 1.0), tgt_emb=dense((tv, d), 1.0),
        enc=enc, dec=dec,
        gen_w=dense((d, tv)), gen_b=zeros((1, tv)),
    )


def _mask_to_bias(mask, q_len):
    # mask: [B, 1 or q_len, k_len] (0/1) -> additive bias [B, q_len, k_len]
    B = mask.shape[0]
    k_len = mask.shape[-1]
    m = jnp.broadcast_to(mask, (B, q_len, k_len))
    return jnp.where(m > 0.5, jnp.float32(0.0), jnp.float32(-1e9))


# TODO(synk): dropout layers are omitted (eval/inference semantics, p -> identity)
def encoder_decoder_forward(params, cfg, source, target,
                            source_mask, target_mask, pe):
    d, heads = cfg['d_model'], cfg['heads']
    Ts = source.shape[1]
    Tt = target.shape[1]
    scale = math.sqrt(d)
    # TODO(synk): embedding token gather stays in plain XLA (glue op).
    src_x = params['src_emb'][source] * scale + pe[:Ts][None, :, :]
    tgt_x = params['tgt_emb'][target] * scale + pe[:Tt][None, :, :]

    enc_bias = _mask_to_bias(source_mask, Ts)      # [B, Ts, Ts]
    self_bias = _mask_to_bias(target_mask, Tt)     # [B, Tt, Tt]
    cross_bias = _mask_to_bias(source_mask, Tt)    # [B, Tt, Ts]

    memory = pallas_encoder(src_x, enc_bias, params['enc'], heads)
    return pallas_decoder(tgt_x, memory, self_bias, cross_bias,
                          params['dec'], params['gen_w'], params['gen_b'],
                          heads)


# --------------------------------- main -------------------------------------

if __name__ == "__main__":
    key = jax.random.PRNGKey(0)
    pk, sk, tk = jax.random.split(key, 3)
    params = init_params(pk, CFG)

    B, Ts, Tt = 2, 8, 8
    source = jax.random.randint(sk, (B, Ts), 1, CFG['src_vocab'])
    target = jax.random.randint(tk, (B, Tt), 1, CFG['tgt_vocab'])
    source = source.at[1, -2:].set(0)                    # padding to exercise mask

    source_mask = (source != 0).astype(jnp.float32)[:, None, :]              # [B, 1, Ts]
    subsequent = jnp.tril(jnp.ones((Tt, Tt), jnp.float32))
    target_mask = (target != 0).astype(jnp.float32)[:, None, :] * subsequent[None]  # [B, Tt, Tt]

    # positional-encoding table hoisted out of the forward pass (computed once)
    pe = positional_encoding(CFG['max_len'], CFG['d_model'])

    @jax.jit
    def fwd(params, source, target, source_mask, target_mask, pe):
        return encoder_decoder_forward(params, CFG, source, target,
                                       source_mask, target_mask, pe)

    out = fwd(params, source, target, source_mask, target_mask, pe)
    out = jax.block_until_ready(out)

    assert out.shape == (B, Tt, CFG['tgt_vocab'])
    assert bool(jnp.all(jnp.isfinite(out)))
    # log_softmax rows must exponentiate-sum to 1
    assert bool(jnp.allclose(jnp.sum(jnp.exp(out), axis=-1), 1.0, atol=1e-4))
    print("KERNEL_OK")
</pallas_src>

<mosaic_0001>
module attributes {stable_mosaic.version = 11 : i64} {
  func.func @_encoder_kernel(%arg0: i32, %arg1: memref<1x8x32xf32, #tpu.memory_space<vmem>>, %arg2: memref<1x8x8xf32, #tpu.memory_space<vmem>>, %arg3: memref<2x1x32xf32, #tpu.memory_space<vmem>>, %arg4: memref<2x1x32xf32, #tpu.memory_space<vmem>>, %arg5: memref<2x32x96xbf16, #tpu.memory_space<vmem>>, %arg6: memref<2x1x96xf32, #tpu.memory_space<vmem>>, %arg7: memref<2x32x32xbf16, #tpu.memory_space<vmem>>, %arg8: memref<2x1x32xf32, #tpu.memory_space<vmem>>, %arg9: memref<2x1x32xf32, #tpu.memory_space<vmem>>, %arg10: memref<2x1x32xf32, #tpu.memory_space<vmem>>, %arg11: memref<2x32x64xbf16, #tpu.memory_space<vmem>>, %arg12: memref<2x1x64xf32, #tpu.memory_space<vmem>>, %arg13: memref<2x64x32xbf16, #tpu.memory_space<vmem>>, %arg14: memref<2x1x32xf32, #tpu.memory_space<vmem>>, %arg15: memref<1x32xf32, #tpu.memory_space<vmem>>, %arg16: memref<1x32xf32, #tpu.memory_space<vmem>>, %arg17: memref<1x8x32xf32, #tpu.memory_space<vmem>>) attributes {dimension_semantics = [#tpu.dimension_semantics<parallel>], iteration_bounds = array<i64: 2>, scalar_prefetch = 0 : i64, scratch_operands = 0 : i64, tpu.core_type = #tpu.core_type<tc>, window_params = [{transform_indices = @transform_0, window_bounds = array<i64: 1, 8, 32>}, {transform_indices = @transform_1, window_bounds = array<i64: 1, 8, 8>}, {pipeline_mode = #tpu.pipeline_mode<synchronous>, transform_indices = @transform_2, window_bounds = array<i64: 2, 1, 32>}, {pipeline_mode = #tpu.pipeline_mode<synchronous>, transform_indices = @transform_3, window_bounds = array<i64: 2, 1, 32>}, {pipeline_mode = #tpu.pipeline_mode<synchronous>, transform_indices = @transform_4, window_bounds = array<i64: 2, 32, 96>}, {pipeline_mode = #tpu.pipeline_mode<synchronous>, transform_indices = @transform_5, window_bounds = array<i64: 2, 1, 96>}, {pipeline_mode = #tpu.pipeline_mode<synchronous>, transform_indices = @transform_6, window_bounds = array<i64: 2, 32, 32>}, {pipeline_mode = #tpu.pipeline_mode<synchronous>, transform_indices = @transform_7, window_bounds = array<i64: 2, 1, 32>}, {pipeline_mode = #tpu.pipeline_mode<synchronous>, transform_indices = @transform_8, window_bounds = array<i64: 2, 1, 32>}, {pipeline_mode = #tpu.pipeline_mode<synchronous>, transform_indices = @transform_9, window_bounds = array<i64: 2, 1, 32>}, {pipeline_mode = #tpu.pipeline_mode<synchronous>, transform_indices = @transform_10, window_bounds = array<i64: 2, 32, 64>}, {pipeline_mode = #tpu.pipeline_mode<synchronous>, transform_indices = @transform_11, window_bounds = array<i64: 2, 1, 64>}, {pipeline_mode = #tpu.pipeline_mode<synchronous>, transform_indices = @transform_12, window_bounds = array<i64: 2, 64, 32>}, {pipeline_mode = #tpu.pipeline_mode<synchronous>, transform_indices = @transform_13, window_bounds = array<i64: 2, 1, 32>}, {pipeline_mode = #tpu.pipeline_mode<synchronous>, transform_indices = @transform_14, window_bounds = array<i64: 1, 32>}, {pipeline_mode = #tpu.pipeline_mode<synchronous>, transform_indices = @transform_15, window_bounds = array<i64: 1, 32>}, {transform_indices = @transform_16, window_bounds = array<i64: 1, 8, 32>}]} {
    %c0 = arith.constant 0 : index
    %c0_0 = arith.constant 0 : index
    %c0_1 = arith.constant 0 : index
    %0 = vector.load %arg1[%c0, %c0_0, %c0_1] : memref<1x8x32xf32, #tpu.memory_space<vmem>>, vector<1x8x32xf32>
    %1 = vector.shape_cast %0 : vector<1x8x32xf32> to vector<8x32xf32>
    %c0_2 = arith.constant 0 : index
    %c0_3 = arith.constant 0 : index
    %c0_4 = arith.constant 0 : index
    %2 = vector.load %arg2[%c0_2, %c0_3, %c0_4] : memref<1x8x8xf32, #tpu.memory_space<vmem>>, vector<1x8x8xf32>
    %3 = vector.shape_cast %2 : vector<1x8x8xf32> to vector<8x8xf32>
    %c0_5 = arith.constant 0 : index
    %c0_6 = arith.constant 0 : index
    %c0_7 = arith.constant 0 : index
    %4 = vector.load %arg3[%c0_5, %c0_6, %c0_7] : memref<2x1x32xf32, #tpu.memory_space<vmem>>, vector<1x1x32xf32>
    %5 = vector.shape_cast %4 : vector<1x1x32xf32> to vector<1x32xf32>
    %c0_8 = arith.constant 0 : index
    %c0_9 = arith.constant 0 : index
    %c0_10 = arith.constant 0 : index
    %6 = vector.load %arg4[%c0_8, %c0_9, %c0_10] : memref<2x1x32xf32, #tpu.memory_space<vmem>>, vector<1x1x32xf32>
    %7 = vector.shape_cast %6 : vector<1x1x32xf32> to vector<1x32xf32>
    %cst = arith.constant dense<0.000000e+00> : vector<8xf32>
    %8 = vector.multi_reduction <add>, %1, %cst [1] : vector<8x32xf32> to vector<8xf32>
    %9 = vector.shape_cast %8 : vector<8xf32> to vector<8x1xf32>
    %cst_11 = arith.constant 3.200000e+01 : f32
    %10 = vector.broadcast %cst_11 : f32 to vector<8x1xf32>
    %11 = arith.divf %9, %10 : vector<8x1xf32>
    %12 = vector.broadcast %11 : vector<8x1xf32> to vector<8x32xf32>
    %13 = arith.subf %1, %12 : vector<8x32xf32>
    %14 = arith.mulf %13, %13 : vector<8x32xf32>
    %cst_12 = arith.constant dense<0.000000e+00> : vector<8xf32>
    %15 = vector.multi_reduction <add>, %14, %cst_12 [1] : vector<8x32xf32> to vector<8xf32>
    %16 = vector.shape_cast %15 : vector<8xf32> to vector<8x1xf32>
    %cst_13 = arith.constant 0.0322580636 : f32
    %17 = vector.broadcast %cst_13 : f32 to vector<8x1xf32>
    %18 = arith.mulf %16, %17 : vector<8x1xf32>
    %19 = math.sqrt %18 : vector<8x1xf32>
    %cst_14 = arith.constant 9.99999997E-7 : f32
    %20 = vector.broadcast %cst_14 : f32 to vector<8x1xf32>
    %21 = arith.addf %19, %20 : vector<8x1xf32>
    %22 = tpu.reciprocal %21 {approx = true} : vector<8x1xf32> -> vector<8x1xf32>
    %23 = vector.broadcast %5 : vector<1x32xf32> to vector<8x32xf32>
    %24 = arith.mulf %23, %13 : vector<8x32xf32>
    %25 = vector.broadcast %22 : vector<8x1xf32> to vector<8x32xf32>
    %26 = arith.mulf %24, %25 : vector<8x32xf32>
    %27 = vector.broadcast %7 : vector<1x32xf32> to vector<8x32xf32>
    %28 = arith.addf %26, %27 : vector<8x32xf32>
    %c0_15 = arith.constant 0 : index
    %c0_16 = arith.constant 0 : index
    %c0_17 = arith.constant 0 : index
    %29 = vector.load %arg5[%c0_15, %c0_16, %c0_17] : memref<2x32x96xbf16, #tpu.memory_space<vmem>>, vector<1x32x96xbf16>
    %30 = vector.shape_cast %29 : vector<1x32x96xbf16> to vector<32x96xbf16>
    %31 = arith.truncf %28 : vector<8x32xf32> to vector<8x32xbf16>
    %cst_18 = arith.constant dense<0.000000e+00> : vector<8x96xf32>
    %32 = tpu.matmul %31, %30, %cst_18 {dimension_numbers = #tpu.dot_dimension_numbers<[1], [0], [0], [1], [0, 0, 1, 1], [], []>} : vector<8x32xbf16>, vector<32x96xbf16>, vector<8x96xf32> -> vector<8x96xf32>
    %c0_19 = arith.constant 0 : index
    %c0_20 = arith.constant 0 : index
    %c0_21 = arith.constant 0 : index
    %33 = vector.load %arg6[%c0_19, %c0_20, %c0_21] : memref<2x1x96xf32, #tpu.memory_space<vmem>>, vector<1x1x96xf32>
    %34 = vector.shape_cast %33 : vector<1x1x96xf32> to vector<1x96xf32>
    %35 = vector.broadcast %34 : vector<1x96xf32> to vector<8x96xf32>
    %36 = arith.addf %32, %35 : vector<8x96xf32>
    %37 = vector.extract_strided_slice %36 {offsets = [0, 0], sizes = [8, 32], strides = [1, 1]} : vector<8x96xf32> to vector<8x32xf32>
    %38 = vector.extract_strided_slice %36 {offsets = [0, 32], sizes = [8, 32], strides = [1, 1]} : vector<8x96xf32> to vector<8x32xf32>
    %39 = vector.extract_strided_slice %36 {offsets = [0, 64], sizes = [8, 32], strides = [1, 1]} : vector<8x96xf32> to vector<8x32xf32>
    %c0_22 = arith.constant 0 : index
    %c0_23 = arith.constant 0 : index
    %c0_24 = arith.constant 0 : index
    %40 = vector.load %arg7[%c0_22, %c0_23, %c0_24] : memref<2x32x32xbf16, #tpu.memory_space<vmem>>, vector<1x32x32xbf16>
    %41 = vector.shape_cast %40 : vector<1x32x32xbf16> to vector<32x32xbf16>
    %c0_25 = arith.constant 0 : index
    %c0_26 = arith.constant 0 : index
    %c0_27 = arith.constant 0 : index
    %42 = vector.load %arg8[%c0_25, %c0_26, %c0_27] : memref<2x1x32xf32, #tpu.memory_space<vmem>>, vector<1x1x32xf32>
    %43 = vector.shape_cast %42 : vector<1x1x32xf32> to vector<1x32xf32>
    %44 = vector.extract_strided_slice %37 {offsets = [0, 0], sizes = [8, 8], strides = [1, 1]} : vector<8x32xf32> to vector<8x8xf32>
    %45 = arith.truncf %44 : vector<8x8xf32> to vector<8x8xbf16>
    %46 = vector.extract_strided_slice %38 {offsets = [0, 0], sizes = [8, 8], strides = [1, 1]} : vector<8x32xf32> to vector<8x8xf32>
    %47 = arith.truncf %46 : vector<8x8xf32> to vector<8x8xbf16>
    %48 = vector.extract_strided_slice %39 {offsets = [0, 0], sizes = [8, 8], strides = [1, 1]} : vector<8x32xf32> to vector<8x8xf32>
    %49 = arith.truncf %48 : vector<8x8xf32> to vector<8x8xbf16>
    "tpu.trace_start"() <{level = 10 : i32, message = "qd,kd->qk"}> : () -> ()
    %cst_28 = arith.constant dense<0.000000e+00> : vector<8x8xf32>
    %50 = tpu.matmul %45, %47, %cst_28 {dimension_numbers = #tpu.dot_dimension_numbers<[1], [1], [0], [0], [0, 0, 1, 0], [], []>} : vector<8x8xbf16>, vector<8x8xbf16>, vector<8x8xf32> -> vector<8x8xf32>
    "tpu.trace_stop"() : () -> ()
    %cst_29 = arith.constant 0.353553385 : f32
    %51 = vector.broadcast %cst_29 : f32 to vector<8x8xf32>
    %52 = arith.mulf %50, %51 : vector<8x8xf32>
    %53 = arith.addf %52, %3 : vector<8x8xf32>
    %cst_30 = arith.constant dense<0xFF800000> : vector<8xf32>
    %54 = vector.multi_reduction <maximumf>, %53, %cst_30 [1] : vector<8x8xf32> to vector<8xf32>
    %55 = vector.shape_cast %54 : vector<8xf32> to vector<8x1xf32>
    %56 = vector.broadcast %55 : vector<8x1xf32> to vector<8x8xf32>
    %57 = arith.subf %53, %56 : vector<8x8xf32>
    %58 = math.exp %57 : vector<8x8xf32>
    %cst_31 = arith.constant dense<0.000000e+00> : vector<8xf32>
    %59 = vector.multi_reduction <add>, %58, %cst_31 [1] : vector<8x8xf32> to vector<8xf32>
    %60 = vector.shape_cast %59 : vector<8xf32> to vector<8x1xf32>
    %61 = tpu.reciprocal %60 {approx = true} : vector<8x1xf32> -> vector<8x1xf32>
    %62 = vector.broadcast %61 : vector<8x1xf32> to vector<8x8xf32>
    %63 = arith.mulf %58, %62 : vector<8x8xf32>
    %64 = arith.truncf %63 : vector<8x8xf32> to vector<8x8xbf16>
    %cst_32 = arith.constant dense<0.000000e+00> : vector<8x8xf32>
    %65 = tpu.matmul %64, %49, %cst_32 {dimension_numbers = #tpu.dot_dimension_numbers<[1], [0], [0], [1], [0, 0, 1, 1], [], []>} : vector<8x8xbf16>, vector<8x8xbf16>, vector<8x8xf32> -> vector<8x8xf32>
    %66 = arith.truncf %65 : vector<8x8xf32> to vector<8x8xbf16>
    %67 = vector.extract_strided_slice %41 {offsets = [0, 0], sizes = [8, 32], strides = [1, 1]} : vector<32x32xbf16> to vector<8x32xbf16>
    %cst_33 = arith.constant dense<0.000000e+00> : vector<8x32xf32>
    %68 = tpu.matmul %66, %67, %cst_33 {dimension_numbers = #tpu.dot_dimension_numbers<[1], [0], [0], [1], [0, 0, 1, 1], [], []>} : vector<8x8xbf16>, vector<8x32xbf16>, vector<8x32xf32> -> vector<8x32xf32>
    %69 = vector.extract_strided_slice %37 {offsets = [0, 8], sizes = [8, 8], strides = [1, 1]} : vector<8x32xf32> to vector<8x8xf32>
    %70 = arith.truncf %69 : vector<8x8xf32> to vector<8x8xbf16>
    %71 = vector.extract_strided_slice %38 {offsets = [0, 8], sizes = [8, 8], strides = [1, 1]} : vector<8x32xf32> to vector<8x8xf32>
    %72 = arith.truncf %71 : vector<8x8xf32> to vector<8x8xbf16>
    %73 = vector.extract_strided_slice %39 {offsets = [0, 8], sizes = [8, 8], strides = [1, 1]} : vector<8x32xf32> to vector<8x8xf32>
    %74 = arith.truncf %73 : vector<8x8xf32> to vector<8x8xbf16>
    "tpu.trace_start"() <{level = 10 : i32, message = "qd,kd->qk"}> : () -> ()
    %cst_34 = arith.constant dense<0.000000e+00> : vector<8x8xf32>
    %75 = tpu.matmul %70, %72, %cst_34 {dimension_numbers = #tpu.dot_dimension_numbers<[1], [1], [0], [0], [0, 0, 1, 0], [], []>} : vector<8x8xbf16>, vector<8x8xbf16>, vector<8x8xf32> -> vector<8x8xf32>
    "tpu.trace_stop"() : () -> ()
    %cst_35 = arith.constant 0.353553385 : f32
    %76 = vector.broadcast %cst_35 : f32 to vector<8x8xf32>
    %77 = arith.mulf %75, %76 : vector<8x8xf32>
    %78 = arith.addf %77, %3 : vector<8x8xf32>
    %cst_36 = arith.constant dense<0xFF800000> : vector<8xf32>
    %79 = vector.multi_reduction <maximumf>, %78, %cst_36 [1] : vector<8x8xf32> to vector<8xf32>
    %80 = vector.shape_cast %79 : vector<8xf32> to vector<8x1xf32>
    %81 = vector.broadcast %80 : vector<8x1xf32> to vector<8x8xf32>
    %82 = arith.subf %78, %81 : vector<8x8xf32>
    %83 = math.exp %82 : vector<8x8xf32>
    %cst_37 = arith.constant dense<0.000000e+00> : vector<8xf32>
    %84 = vector.multi_reduction <add>, %83, %cst_37 [1] : vector<8x8xf32> to vector<8xf32>
    %85 = vector.shape_cast %84 : vector<8xf32> to vector<8x1xf32>
    %86 = tpu.reciprocal %85 {approx = true} : vector<8x1xf32> -> vector<8x1xf32>
    %87 = vector.broadcast %86 : vector<8x1xf32> to vector<8x8xf32>
    %88 = arith.mulf %83, %87 : vector<8x8xf32>
    %89 = arith.truncf %88 : vector<8x8xf32> to vector<8x8xbf16>
    %cst_38 = arith.constant dense<0.000000e+00> : vector<8x8xf32>
    %90 = tpu.matmul %89, %74, %cst_38 {dimension_numbers = #tpu.dot_dimension_numbers<[1], [0], [0], [1], [0, 0, 1, 1], [], []>} : vector<8x8xbf16>, vector<8x8xbf16>, vector<8x8xf32> -> vector<8x8xf32>
    %91 = arith.truncf %90 : vector<8x8xf32> to vector<8x8xbf16>
    %92 = vector.extract_strided_slice %41 {offsets = [8, 0], sizes = [8, 32], strides = [1, 1]} : vector<32x32xbf16> to vector<8x32xbf16>
    %cst_39 = arith.constant dense<0.000000e+00> : vector<8x32xf32>
    %93 = tpu.matmul %91, %92, %cst_39 {dimension_numbers = #tpu.dot_dimension_numbers<[1], [0], [0], [1], [0, 0, 1, 1], [], []>} : vector<8x8xbf16>, vector<8x32xbf16>, vector<8x32xf32> -> vector<8x32xf32>
    %94 = arith.addf %68, %93 : vector<8x32xf32>
    %95 = vector.extract_strided_slice %37 {offsets = [0, 16], sizes = [8, 8], strides = [1, 1]} : vector<8x32xf32> to vector<8x8xf32>
    %96 = arith.truncf %95 : vector<8x8xf32> to vector<8x8xbf16>
    %97 = vector.extract_strided_slice %38 {offsets = [0, 16], sizes = [8, 8], strides = [1, 1]} : vector<8x32xf32> to vector<8x8xf32>
    %98 = arith.truncf %97 : vector<8x8xf32> to vector<8x8xbf16>
    %99 = vector.extract_strided_slice %39 {offsets = [0, 16], sizes = [8, 8], strides = [1, 1]} : vector<8x32xf32> to vector<8x8xf32>
    %100 = arith.truncf %99 : vector<8x8xf32> to vector<8x8xbf16>
    "tpu.trace_start"() <{level = 10 : i32, message = "qd,kd->qk"}> : () -> ()
    %cst_40 = arith.constant dense<0.000000e+00> : vector<8x8xf32>
    %101 = tpu.matmul %96, %98, %cst_40 {dimension_numbers = #tpu.dot_dimension_numbers<[1], [1], [0], [0], [0, 0, 1, 0], [], []>} : vector<8x8xbf16>, vector<8x8xbf16>, vector<8x8xf32> -> vector<8x8xf32>
    "tpu.trace_stop"() : () -> ()
    %cst_41 = arith.constant 0.353553385 : f32
    %102 = vector.broadcast %cst_41 : f32 to vector<8x8xf32>
    %103 = arith.mulf %101, %102 : vector<8x8xf32>
    %104 = arith.addf %103, %3 : vector<8x8xf32>
    %cst_42 = arith.constant dense<0xFF800000> : vector<8xf32>
    %105 = vector.multi_reduction <maximumf>, %104, %cst_42 [1] : vector<8x8xf32> to vector<8xf32>
    %106 = vector.shape_cast %105 : vector<8xf32> to vector<8x1xf32>
    %107 = vector.broadcast %106 : vector<8x1xf32> to vector<8x8xf32>
    %108 = arith.subf %104, %107 : vector<8x8xf32>
    %109 = math.exp %108 : vector<8x8xf32>
    %cst_43 = arith.constant dense<0.000000e+00> : vector<8xf32>
    %110 = vector.multi_reduction <add>, %109, %cst_43 [1] : vector<8x8xf32> to vector<8xf32>
    %111 = vector.shape_cast %110 : vector<8xf32> to vector<8x1xf32>
    %112 = tpu.reciprocal %111 {approx = true} : vector<8x1xf32> -> vector<8x1xf32>
    %113 = vector.broadcast %112 : vector<8x1xf32> to vector<8x8xf32>
    %114 = arith.mulf %109, %113 : vector<8x8xf32>
    %115 = arith.truncf %114 : vector<8x8xf32> to vector<8x8xbf16>
    %cst_44 = arith.constant dense<0.000000e+00> : vector<8x8xf32>
    %116 = tpu.matmul %115, %100, %cst_44 {dimension_numbers = #tpu.dot_dimension_numbers<[1], [0], [0], [1], [0, 0, 1, 1], [], []>} : vector<8x8xbf16>, vector<8x8xbf16>, vector<8x8xf32> -> vector<8x8xf32>
    %117 = arith.truncf %116 : vector<8x8xf32> to vector<8x8xbf16>
    %118 = vector.extract_strided_slice %41 {offsets = [16, 0], sizes = [8, 32], strides = [1, 1]} : vector<32x32xbf16> to vector<8x32xbf16>
    %cst_45 = arith.constant dense<0.000000e+00> : vector<8x32xf32>
    %119 = tpu.matmul %117, %118, %cst_45 {dimension_numbers = #tpu.dot_dimension_numbers<[1], [0], [0], [1], [0, 0, 1, 1], [], []>} : vector<8x8xbf16>, vector<8x32xbf16>, vector<8x32xf32> -> vector<8x32xf32>
    %120 = arith.addf %94, %119 : vector<8x32xf32>
    %121 = vector.extract_strided_slice %37 {offsets = [0, 24], sizes = [8, 8], strides = [1, 1]} : vector<8x32xf32> to vector<8x8xf32>
    %122 = arith.truncf %121 : vector<8x8xf32> to vector<8x8xbf16>
    %123 = vector.extract_strided_slice %38 {offsets = [0, 24], sizes = [8, 8], strides = [1, 1]} : vector<8x32xf32> to vector<8x8xf32>
    %124 = arith.truncf %123 : vector<8x8xf32> to vector<8x8xbf16>
    %125 = vector.extract_strided_slice %39 {offsets = [0, 24], sizes = [8, 8], strides = [1, 1]} : vector<8x32xf32> to vector<8x8xf32>
    %126 = arith.truncf %125 : vector<8x8xf32> to vector<8x8xbf16>
    "tpu.trace_start"() <{level = 10 : i32, message = "qd,kd->qk"}> : () -> ()
    %cst_46 = arith.constant dense<0.000000e+00> : vector<8x8xf32>
    %127 = tpu.matmul %122, %124, %cst_46 {dimension_numbers = #tpu.dot_dimension_numbers<[1], [1], [0], [0], [0, 0, 1, 0], [], []>} : vector<8x8xbf16>, vector<8x8xbf16>, vector<8x8xf32> -> vector<8x8xf32>
    "tpu.trace_stop"() : () -> ()
    %cst_47 = arith.constant 0.353553385 : f32
    %128 = vector.broadcast %cst_47 : f32 to vector<8x8xf32>
    %129 = arith.mulf %127, %128 : vector<8x8xf32>
    %130 = arith.addf %129, %3 : vector<8x8xf32>
    %cst_48 = arith.constant dense<0xFF800000> : vector<8xf32>
    %131 = vector.multi_reduction <maximumf>, %130, %cst_48 [1] : vector<8x8xf32> to vector<8xf32>
    %132 = vector.shape_cast %131 : vector<8xf32> to vector<8x1xf32>
    %133 = vector.broadcast %132 : vector<8x1xf32> to vector<8x8xf32>
    %134 = arith.subf %130, %133 : vector<8x8xf32>
    %135 = math.exp %134 : vector<8x8xf32>
    %cst_49 = arith.constant dense<0.000000e+00> : vector<8xf32>
    %136 = vector.multi_reduction <add>, %135, %cst_49 [1] : vector<8x8xf32> to vector<8xf32>
    %137 = vector.shape_cast %136 : vector<8xf32> to vector<8x1xf32>
    %138 = tpu.reciprocal %137 {approx = true} : vector<8x1xf32> -> vector<8x1xf32>
    %139 = vector.broadcast %138 : vector<8x1xf32> to vector<8x8xf32>
    %140 = arith.mulf %135, %139 : vector<8x8xf32>
    %141 = arith.truncf %140 : vector<8x8xf32> to vector<8x8xbf16>
    %cst_50 = arith.constant dense<0.000000e+00> : vector<8x8xf32>
    %142 = tpu.matmul %141, %126, %cst_50 {dimension_numbers = #tpu.dot_dimension_numbers<[1], [0], [0], [1], [0, 0, 1, 1], [], []>} : vector<8x8xbf16>, vector<8x8xbf16>, vector<8x8xf32> -> vector<8x8xf32>
    %143 = arith.truncf %142 : vector<8x8xf32> to vector<8x8xbf16>
    %144 = vector.extract_strided_slice %41 {offsets = [24, 0], sizes = [8, 32], strides = [1, 1]} : vector<32x32xbf16> to vector<8x32xbf16>
    %cst_51 = arith.constant dense<0.000000e+00> : vector<8x32xf32>
    %145 = tpu.matmul %143, %144, %cst_51 {dimension_numbers = #tpu.dot_dimension_numbers<[1], [0], [0], [1], [0, 0, 1, 1], [], []>} : vector<8x8xbf16>, vector<8x32xbf16>, vector<8x32xf32> -> vector<8x32xf32>
    %146 = arith.addf %120, %145 : vector<8x32xf32>
    %147 = vector.broadcast %43 : vector<1x32xf32> to vector<8x32xf32>
    %148 = arith.addf %146, %147 : vector<8x32xf32>
    %149 = arith.addf %1, %148 : vector<8x32xf32>
    %c0_52 = arith.constant 0 : index
    %c0_53 = arith.constant 0 : index
    %c0_54 = arith.constant 0 : index
    %150 = vector.load %arg9[%c0_52, %c0_53, %c0_54] : memref<2x1x32xf32, #tpu.memory_space<vmem>>, vector<1x1x32xf32>
    %151 = vector.shape_cast %150 : vector<1x1x32xf32> to vector<1x32xf32>
    %c0_55 = arith.constant 0 : index
    %c0_56 = arith.constant 0 : index
    %c0_57 = arith.constant 0 : index
    %152 = vector.load %arg10[%c0_55, %c0_56, %c0_57] : memref<2x1x32xf32, #tpu.memory_space<vmem>>, vector<1x1x32xf32>
    %153 = vector.shape_cast %152 : vector<1x1x32xf32> to vector<1x32xf32>
    %cst_58 = arith.constant dense<0.000000e+00> : vector<8xf32>
    %154 = vector.multi_reduction <add>, %149, %cst_58 [1] : vector<8x32xf32> to vector<8xf32>
    %155 = vector.shape_cast %154 : vector<8xf32> to vector<8x1xf32>
    %cst_59 = arith.constant 3.200000e+01 : f32
    %156 = vector.broadcast %cst_59 : f32 to vector<8x1xf32>
    %157 = arith.divf %155, %156 : vector<8x1xf32>
    %158 = vector.broadcast %157 : vector<8x1xf32> to vector<8x32xf32>
    %159 = arith.subf %149, %158 : vector<8x32xf32>
    %160 = arith.mulf %159, %159 : vector<8x32xf32>
    %cst_60 = arith.constant dense<0.000000e+00> : vector<8xf32>
    %161 = vector.multi_reduction <add>, %160, %cst_60 [1] : vector<8x32xf32> to vector<8xf32>
    %162 = vector.shape_cast %161 : vector<8xf32> to vector<8x1xf32>
    %cst_61 = arith.constant 0.0322580636 : f32
    %163 = vector.broadcast %cst_61 : f32 to vector<8x1xf32>
    %164 = arith.mulf %162, %163 : vector<8x1xf32>
    %165 = math.sqrt %164 : vector<8x1xf32>
    %cst_62 = arith.constant 9.99999997E-7 : f32
    %166 = vector.broadcast %cst_62 : f32 to vector<8x1xf32>
    %167 = arith.addf %165, %166 : vector<8x1xf32>
    %168 = tpu.reciprocal %167 {approx = true} : vector<8x1xf32> -> vector<8x1xf32>
    %169 = vector.broadcast %151 : vector<1x32xf32> to vector<8x32xf32>
    %170 = arith.mulf %169, %159 : vector<8x32xf32>
    %171 = vector.broadcast %168 : vector<8x1xf32> to vector<8x32xf32>
    %172 = arith.mulf %170, %171 : vector<8x32xf32>
    %173 = vector.broadcast %153 : vector<1x32xf32> to vector<8x32xf32>
    %174 = arith.addf %172, %173 : vector<8x32xf32>
    %c0_63 = arith.constant 0 : index
    %c0_64 = arith.constant 0 : index
    %c0_65 = arith.constant 0 : index
    %175 = vector.load %arg11[%c0_63, %c0_64, %c0_65] : memref<2x32x64xbf16, #tpu.memory_space<vmem>>, vector<1x32x64xbf16>
    %176 = vector.shape_cast %175 : vector<1x32x64xbf16> to vector<32x64xbf16>
    %177 = arith.truncf %174 : vector<8x32xf32> to vector<8x32xbf16>
    %cst_66 = arith.constant dense<0.000000e+00> : vector<8x64xf32>
    %178 = tpu.matmul %177, %176, %cst_66 {dimension_numbers = #tpu.dot_dimension_numbers<[1], [0], [0], [1], [0, 0, 1, 1], [], []>} : vector<8x32xbf16>, vector<32x64xbf16>, vector<8x64xf32> -> vector<8x64xf32>
    %c0_67 = arith.constant 0 : index
    %c0_68 = arith.constant 0 : index
    %c0_69 = arith.constant 0 : index
    %179 = vector.load %arg12[%c0_67, %c0_68, %c0_69] : memref<2x1x64xf32, #tpu.memory_space<vmem>>, vector<1x1x64xf32>
    %180 = vector.shape_cast %179 : vector<1x1x64xf32> to vector<1x64xf32>
    %181 = vector.broadcast %180 : vector<1x64xf32> to vector<8x64xf32>
    %182 = arith.addf %178, %181 : vector<8x64xf32>
    %cst_70 = arith.constant 0.000000e+00 : f32
    %183 = vector.broadcast %cst_70 : f32 to vector<8x64xf32>
    %184 = arith.maximumf %182, %183 : vector<8x64xf32>
    %c0_71 = arith.constant 0 : index
    %c0_72 = arith.constant 0 : index
    %c0_73 = arith.constant 0 : index
    %185 = vector.load %arg13[%c0_71, %c0_72, %c0_73] : memref<2x64x32xbf16, #tpu.memory_space<vmem>>, vector<1x64x32xbf16>
    %186 = vector.shape_cast %185 : vector<1x64x32xbf16> to vector<64x32xbf16>
    %187 = arith.truncf %184 : vector<8x64xf32> to vector<8x64xbf16>
    %cst_74 = arith.constant dense<0.000000e+00> : vector<8x32xf32>
    %188 = tpu.matmul %187, %186, %cst_74 {dimension_numbers = #tpu.dot_dimension_numbers<[1], [0], [0], [1], [0, 0, 1, 1], [], []>} : vector<8x64xbf16>, vector<64x32xbf16>, vector<8x32xf32> -> vector<8x32xf32>
    %189 = arith.addf %149, %188 : vector<8x32xf32>
    %c0_75 = arith.constant 0 : index
    %c0_76 = arith.constant 0 : index
    %c0_77 = arith.constant 0 : index
    %190 = vector.load %arg14[%c0_75, %c0_76, %c0_77] : memref<2x1x32xf32, #tpu.memory_space<vmem>>, vector<1x1x32xf32>
    %191 = vector.shape_cast %190 : vector<1x1x32xf32> to vector<1x32xf32>
    %192 = vector.broadcast %191 : vector<1x32xf32> to vector<8x32xf32>
    %193 = arith.addf %189, %192 : vector<8x32xf32>
    %c1 = arith.constant 1 : index
    %c0_78 = arith.constant 0 : index
    %c0_79 = arith.constant 0 : index
    %194 = vector.load %arg3[%c1, %c0_78, %c0_79] : memref<2x1x32xf32, #tpu.memory_space<vmem>>, vector<1x1x32xf32>
    %195 = vector.shape_cast %194 : vector<1x1x32xf32> to vector<1x32xf32>
    %c1_80 = arith.constant 1 : index
    %c0_81 = arith.constant 0 : index
    %c0_82 = arith.constant 0 : index
    %196 = vector.load %arg4[%c1_80, %c0_81, %c0_82] : memref<2x1x32xf32, #tpu.memory_space<vmem>>, vector<1x1x32xf32>
    %197 = vector.shape_cast %196 : vector<1x1x32xf32> to vector<1x32xf32>
    %cst_83 = arith.constant dense<0.000000e+00> : vector<8xf32>
    %198 = vector.multi_reduction <add>, %193, %cst_83 [1] : vector<8x32xf32> to vector<8xf32>
    %199 = vector.shape_cast %198 : vector<8xf32> to vector<8x1xf32>
    %cst_84 = arith.constant 3.200000e+01 : f32
    %200 = vector.broadcast %cst_84 : f32 to vector<8x1xf32>
    %201 = arith.divf %199, %200 : vector<8x1xf32>
    %202 = vector.broadcast %201 : vector<8x1xf32> to vector<8x32xf32>
    %203 = arith.subf %193, %202 : vector<8x32xf32>
    %204 = arith.mulf %203, %203 : vector<8x32xf32>
    %cst_85 = arith.constant dense<0.000000e+00> : vector<8xf32>
    %205 = vector.multi_reduction <add>, %204, %cst_85 [1] : vector<8x32xf32> to vector<8xf32>
    %206 = vector.shape_cast %205 : vector<8xf32> to vector<8x1xf32>
    %cst_86 = arith.constant 0.0322580636 : f32
    %207 = vector.broadcast %cst_86 : f32 to vector<8x1xf32>
    %208 = arith.mulf %206, %207 : vector<8x1xf32>
    %209 = math.sqrt %208 : vector<8x1xf32>
    %cst_87 = arith.constant 9.99999997E-7 : f32
    %210 = vector.broadcast %cst_87 : f32 to vector<8x1xf32>
    %211 = arith.addf %209, %210 : vector<8x1xf32>
    %212 = tpu.reciprocal %211 {approx = true} : vector<8x1xf32> -> vector<8x1xf32>
    %213 = vector.broadcast %195 : vector<1x32xf32> to vector<8x32xf32>
    %214 = arith.mulf %213, %203 : vector<8x32xf32>
    %215 = vector.broadcast %212 : vector<8x1xf32> to vector<8x32xf32>
    %216 = arith.mulf %214, %215 : vector<8x32xf32>
    %217 = vector.broadcast %197 : vector<1x32xf32> to vector<8x32xf32>
    %218 = arith.addf %216, %217 : vector<8x32xf32>
    %c1_88 = arith.constant 1 : index
    %c0_89 = arith.constant 0 : index
    %c0_90 = arith.constant 0 : index
    %219 = vector.load %arg5[%c1_88, %c0_89, %c0_90] : memref<2x32x96xbf16, #tpu.memory_space<vmem>>, vector<1x32x96xbf16>
    %220 = vector.shape_cast %219 : vector<1x32x96xbf16> to vector<32x96xbf16>
    %221 = arith.truncf %218 : vector<8x32xf32> to vector<8x32xbf16>
    %cst_91 = arith.constant dense<0.000000e+00> : vector<8x96xf32>
    %222 = tpu.matmul %221, %220, %cst_91 {dimension_numbers = #tpu.dot_dimension_numbers<[1], [0], [0], [1], [0, 0, 1, 1], [], []>} : vector<8x32xbf16>, vector<32x96xbf16>, vector<8x96xf32> -> vector<8x96xf32>
    %c1_92 = arith.constant 1 : index
    %c0_93 = arith.constant 0 : index
    %c0_94 = arith.constant 0 : index
    %223 = vector.load %arg6[%c1_92, %c0_93, %c0_94] : memref<2x1x96xf32, #tpu.memory_space<vmem>>, vector<1x1x96xf32>
    %224 = vector.shape_cast %223 : vector<1x1x96xf32> to vector<1x96xf32>
    %225 = vector.broadcast %224 : vector<1x96xf32> to vector<8x96xf32>
    %226 = arith.addf %222, %225 : vector<8x96xf32>
    %227 = vector.extract_strided_slice %226 {offsets = [0, 0], sizes = [8, 32], strides = [1, 1]} : vector<8x96xf32> to vector<8x32xf32>
    %228 = vector.extract_strided_slice %226 {offsets = [0, 32], sizes = [8, 32], strides = [1, 1]} : vector<8x96xf32> to vector<8x32xf32>
    %229 = vector.extract_strided_slice %226 {offsets = [0, 64], sizes = [8, 32], strides = [1, 1]} : vector<8x96xf32> to vector<8x32xf32>
    %c1_95 = arith.constant 1 : index
    %c0_96 = arith.constant 0 : index
    %c0_97 = arith.constant 0 : index
    %230 = vector.load %arg7[%c1_95, %c0_96, %c0_97] : memref<2x32x32xbf16, #tpu.memory_space<vmem>>, vector<1x32x32xbf16>
    %231 = vector.shape_cast %230 : vector<1x32x32xbf16> to vector<32x32xbf16>
    %c1_98 = arith.constant 1 : index
    %c0_99 = arith.constant 0 : index
    %c0_100 = arith.constant 0 : index
    %232 = vector.load %arg8[%c1_98, %c0_99, %c0_100] : memref<2x1x32xf32, #tpu.memory_space<vmem>>, vector<1x1x32xf32>
    %233 = vector.shape_cast %232 : vector<1x1x32xf32> to vector<1x32xf32>
    %234 = vector.extract_strided_slice %227 {offsets = [0, 0], sizes = [8, 8], strides = [1, 1]} : vector<8x32xf32> to vector<8x8xf32>
    %235 = arith.truncf %234 : vector<8x8xf32> to vector<8x8xbf16>
    %236 = vector.extract_strided_slice %228 {offsets = [0, 0], sizes = [8, 8], strides = [1, 1]} : vector<8x32xf32> to vector<8x8xf32>
    %237 = arith.truncf %236 : vector<8x8xf32> to vector<8x8xbf16>
    %238 = vector.extract_strided_slice %229 {offsets = [0, 0], sizes = [8, 8], strides = [1, 1]} : vector<8x32xf32> to vector<8x8xf32>
    %239 = arith.truncf %238 : vector<8x8xf32> to vector<8x8xbf16>
    "tpu.trace_start"() <{level = 10 : i32, message = "qd,kd->qk"}> : () -> ()
    %cst_101 = arith.constant dense<0.000000e+00> : vector<8x8xf32>
    %240 = tpu.matmul %235, %237, %cst_101 {dimension_numbers = #tpu.dot_dimension_numbers<[1], [1], [0], [0], [0, 0, 1, 0], [], []>} : vector<8x8xbf16>, vector<8x8xbf16>, vector<8x8xf32> -> vector<8x8xf32>
    "tpu.trace_stop"() : () -> ()
    %cst_102 = arith.constant 0.353553385 : f32
    %241 = vector.broadcast %cst_102 : f32 to vector<8x8xf32>
    %242 = arith.mulf %240, %241 : vector<8x8xf32>
    %243 = arith.addf %242, %3 : vector<8x8xf32>
    %cst_103 = arith.constant dense<0xFF800000> : vector<8xf32>
    %244 = vector.multi_reduction <maximumf>, %243, %cst_103 [1] : vector<8x8xf32> to vector<8xf32>
    %245 = vector.shape_cast %244 : vector<8xf32> to vector<8x1xf32>
    %246 = vector.broadcast %245 : vector<8x1xf32> to vector<8x8xf32>
    %247 = arith.subf %243, %246 : vector<8x8xf32>
    %248 = math.exp %247 : vector<8x8xf32>
    %cst_104 = arith.constant dense<0.000000e+00> : vector<8xf32>
    %249 = vector.multi_reduction <add>, %248, %cst_104 [1] : vector<8x8xf32> to vector<8xf32>
    %250 = vector.shape_cast %249 : vector<8xf32> to vector<8x1xf32>
    %251 = tpu.reciprocal %250 {approx = true} : vector<8x1xf32> -> vector<8x1xf32>
    %252 = vector.broadcast %251 : vector<8x1xf32> to vector<8x8xf32>
    %253 = arith.mulf %248, %252 : vector<8x8xf32>
    %254 = arith.truncf %253 : vector<8x8xf32> to vector<8x8xbf16>
    %cst_105 = arith.constant dense<0.000000e+00> : vector<8x8xf32>
    %255 = tpu.matmul %254, %239, %cst_105 {dimension_numbers = #tpu.dot_dimension_numbers<[1], [0], [0], [1], [0, 0, 1, 1], [], []>} : vector<8x8xbf16>, vector<8x8xbf16>, vector<8x8xf32> -> vector<8x8xf32>
    %256 = arith.truncf %255 : vector<8x8xf32> to vector<8x8xbf16>
    %257 = vector.extract_strided_slice %231 {offsets = [0, 0], sizes = [8, 32], strides = [1, 1]} : vector<32x32xbf16> to vector<8x32xbf16>
    %cst_106 = arith.constant dense<0.000000e+00> : vector<8x32xf32>
    %258 = tpu.matmul %256, %257, %cst_106 {dimension_numbers = #tpu.dot_dimension_numbers<[1], [0], [0], [1], [0, 0, 1, 1], [], []>} : vector<8x8xbf16>, vector<8x32xbf16>, vector<8x32xf32> -> vector<8x32xf32>
    %259 = vector.extract_strided_slice %227 {offsets = [0, 8], sizes = [8, 8], strides = [1, 1]} : vector<8x32xf32> to vector<8x8xf32>
    %260 = arith.truncf %259 : vector<8x8xf32> to vector<8x8xbf16>
    %261 = vector.extract_strided_slice %228 {offsets = [0, 8], sizes = [8, 8], strides = [1, 1]} : vector<8x32xf32> to vector<8x8xf32>
    %262 = arith.truncf %261 : vector<8x8xf32> to vector<8x8xbf16>
    %263 = vector.extract_strided_slice %229 {offsets = [0, 8], sizes = [8, 8], strides = [1, 1]} : vector<8x32xf32> to vector<8x8xf32>
    %264 = arith.truncf %263 : vector<8x8xf32> to vector<8x8xbf16>
    "tpu.trace_start"() <{level = 10 : i32, message = "qd,kd->qk"}> : () -> ()
    %cst_107 = arith.constant dense<0.000000e+00> : vector<8x8xf32>
    %265 = tpu.matmul %260, %262, %cst_107 {dimension_numbers = #tpu.dot_dimension_numbers<[1], [1], [0], [0], [0, 0, 1, 0], [], []>} : vector<8x8xbf16>, vector<8x8xbf16>, vector<8x8xf32> -> vector<8x8xf32>
    "tpu.trace_stop"() : () -> ()
    %cst_108 = arith.constant 0.353553385 : f32
    %266 = vector.broadcast %cst_108 : f32 to vector<8x8xf32>
    %267 = arith.mulf %265, %266 : vector<8x8xf32>
    %268 = arith.addf %267, %3 : vector<8x8xf32>
    %cst_109 = arith.constant dense<0xFF800000> : vector<8xf32>
    %269 = vector.multi_reduction <maximumf>, %268, %cst_109 [1] : vector<8x8xf32> to vector<8xf32>
    %270 = vector.shape_cast %269 : vector<8xf32> to vector<8x1xf32>
    %271 = vector.broadcast %270 : vector<8x1xf32> to vector<8x8xf32>
    %272 = arith.subf %268, %271 : vector<8x8xf32>
    %273 = math.exp %272 : vector<8x8xf32>
    %cst_110 = arith.constant dense<0.000000e+00> : vector<8xf32>
    %274 = vector.multi_reduction <add>, %273, %cst_110 [1] : vector<8x8xf32> to vector<8xf32>
    %275 = vector.shape_cast %274 : vector<8xf32> to vector<8x1xf32>
    %276 = tpu.reciprocal %275 {approx = true} : vector<8x1xf32> -> vector<8x1xf32>
    %277 = vector.broadcast %276 : vector<8x1xf32> to vector<8x8xf32>
    %278 = arith.mulf %273, %277 : vector<8x8xf32>
    %279 = arith.truncf %278 : vector<8x8xf32> to vector<8x8xbf16>
    %cst_111 = arith.constant dense<0.000000e+00> : vector<8x8xf32>
    %280 = tpu.matmul %279, %264, %cst_111 {dimension_numbers = #tpu.dot_dimension_numbers<[1], [0], [0], [1], [0, 0, 1, 1], [], []>} : vector<8x8xbf16>, vector<8x8xbf16>, vector<8x8xf32> -> vector<8x8xf32>
    %281 = arith.truncf %280 : vector<8x8xf32> to vector<8x8xbf16>
    %282 = vector.extract_strided_slice %231 {offsets = [8, 0], sizes = [8, 32], strides = [1, 1]} : vector<32x32xbf16> to vector<8x32xbf16>
    %cst_112 = arith.constant dense<0.000000e+00> : vector<8x32xf32>
    %283 = tpu.matmul %281, %282, %cst_112 {dimension_numbers = #tpu.dot_dimension_numbers<[1], [0], [0], [1], [0, 0, 1, 1], [], []>} : vector<8x8xbf16>, vector<8x32xbf16>, vector<8x32xf32> -> vector<8x32xf32>
    %284 = arith.addf %258, %283 : vector<8x32xf32>
    %285 = vector.extract_strided_slice %227 {offsets = [0, 16], sizes = [8, 8], strides = [1, 1]} : vector<8x32xf32> to vector<8x8xf32>
    %286 = arith.truncf %285 : vector<8x8xf32> to vector<8x8xbf16>
    %287 = vector.extract_strided_slice %228 {offsets = [0, 16], sizes = [8, 8], strides = [1, 1]} : vector<8x32xf32> to vector<8x8xf32>
    %288 = arith.truncf %287 : vector<8x8xf32> to vector<8x8xbf16>
    %289 = vector.extract_strided_slice %229 {offsets = [0, 16], sizes = [8, 8], strides = [1, 1]} : vector<8x32xf32> to vector<8x8xf32>
    %290 = arith.truncf %289 : vector<8x8xf32> to vector<8x8xbf16>
    "tpu.trace_start"() <{level = 10 : i32, message = "qd,kd->qk"}> : () -> ()
    %cst_113 = arith.constant dense<0.000000e+00> : vector<8x8xf32>
    %291 = tpu.matmul %286, %288, %cst_113 {dimension_numbers = #tpu.dot_dimension_numbers<[1], [1], [0], [0], [0, 0, 1, 0], [], []>} : vector<8x8xbf16>, vector<8x8xbf16>, vector<8x8xf32> -> vector<8x8xf32>
    "tpu.trace_stop"() : () -> ()
    %cst_114 = arith.constant 0.353553385 : f32
    %292 = vector.broadcast %cst_114 : f32 to vector<8x8xf32>
    %293 = arith.mulf %291, %292 : vector<8x8xf32>
    %294 = arith.addf %293, %3 : vector<8x8xf32>
    %cst_115 = arith.constant dense<0xFF800000> : vector<8xf32>
    %295 = vector.multi_reduction <maximumf>, %294, %cst_115 [1] : vector<8x8xf32> to vector<8xf32>
    %296 = vector.shape_cast %295 : vector<8xf32> to vector<8x1xf32>
    %297 = vector.broadcast %296 : vector<8x1xf32> to vector<8x8xf32>
    %298 = arith.subf %294, %297 : vector<8x8xf32>
    %299 = math.exp %298 : vector<8x8xf32>
    %cst_116 = arith.constant dense<0.000000e+00> : vector<8xf32>
    %300 = vector.multi_reduction <add>, %299, %cst_116 [1] : vector<8x8xf32> to vector<8xf32>
    %301 = vector.shape_cast %300 : vector<8xf32> to vector<8x1xf32>
    %302 = tpu.reciprocal %301 {approx = true} : vector<8x1xf32> -> vector<8x1xf32>
    %303 = vector.broadcast %302 : vector<8x1xf32> to vector<8x8xf32>
    %304 = arith.mulf %299, %303 : vector<8x8xf32>
    %305 = arith.truncf %304 : vector<8x8xf32> to vector<8x8xbf16>
    %cst_117 = arith.constant dense<0.000000e+00> : vector<8x8xf32>
    %306 = tpu.matmul %305, %290, %cst_117 {dimension_numbers = #tpu.dot_dimension_numbers<[1], [0], [0], [1], [0, 0, 1, 1], [], []>} : vector<8x8xbf16>, vector<8x8xbf16>, vector<8x8xf32> -> vector<8x8xf32>
    %307 = arith.truncf %306 : vector<8x8xf32> to vector<8x8xbf16>
    %308 = vector.extract_strided_slice %231 {offsets = [16, 0], sizes = [8, 32], strides = [1, 1]} : vector<32x32xbf16> to vector<8x32xbf16>
    %cst_118 = arith.constant dense<0.000000e+00> : vector<8x32xf32>
    %309 = tpu.matmul %307, %308, %cst_118 {dimension_numbers = #tpu.dot_dimension_numbers<[1], [0], [0], [1], [0, 0, 1, 1], [], []>} : vector<8x8xbf16>, vector<8x32xbf16>, vector<8x32xf32> -> vector<8x32xf32>
    %310 = arith.addf %284, %309 : vector<8x32xf32>
    %311 = vector.extract_strided_slice %227 {offsets = [0, 24], sizes = [8, 8], strides = [1, 1]} : vector<8x32xf32> to vector<8x8xf32>
    %312 = arith.truncf %311 : vector<8x8xf32> to vector<8x8xbf16>
    %313 = vector.extract_strided_slice %228 {offsets = [0, 24], sizes = [8, 8], strides = [1, 1]} : vector<8x32xf32> to vector<8x8xf32>
    %314 = arith.truncf %313 : vector<8x8xf32> to vector<8x8xbf16>
    %315 = vector.extract_strided_slice %229 {offsets = [0, 24], sizes = [8, 8], strides = [1, 1]} : vector<8x32xf32> to vector<8x8xf32>
    %316 = arith.truncf %315 : vector<8x8xf32> to vector<8x8xbf16>
    "tpu.trace_start"() <{level = 10 : i32, message = "qd,kd->qk"}> : () -> ()
    %cst_119 = arith.constant dense<0.000000e+00> : vector<8x8xf32>
    %317 = tpu.matmul %312, %314, %cst_119 {dimension_numbers = #tpu.dot_dimension_numbers<[1], [1], [0], [0], [0, 0, 1, 0], [], []>} : vector<8x8xbf16>, vector<8x8xbf16>, vector<8x8xf32> -> vector<8x8xf32>
    "tpu.trace_stop"() : () -> ()
    %cst_120 = arith.constant 0.353553385 : f32
    %318 = vector.broadcast %cst_120 : f32 to vector<8x8xf32>
    %319 = arith.mulf %317, %318 : vector<8x8xf32>
    %320 = arith.addf %319, %3 : vector<8x8xf32>
    %cst_121 = arith.constant dense<0xFF800000> : vector<8xf32>
    %321 = vector.multi_reduction <maximumf>, %320, %cst_121 [1] : vector<8x8xf32> to vector<8xf32>
    %322 = vector.shape_cast %321 : vector<8xf32> to vector<8x1xf32>
    %323 = vector.broadcast %322 : vector<8x1xf32> to vector<8x8xf32>
    %324 = arith.subf %320, %323 : vector<8x8xf32>
    %325 = math.exp %324 : vector<8x8xf32>
    %cst_122 = arith.constant dense<0.000000e+00> : vector<8xf32>
    %326 = vector.multi_reduction <add>, %325, %cst_122 [1] : vector<8x8xf32> to vector<8xf32>
    %327 = vector.shape_cast %326 : vector<8xf32> to vector<8x1xf32>
    %328 = tpu.reciprocal %327 {approx = true} : vector<8x1xf32> -> vector<8x1xf32>
    %329 = vector.broadcast %328 : vector<8x1xf32> to vector<8x8xf32>
    %330 = arith.mulf %325, %329 : vector<8x8xf32>
    %331 = arith.truncf %330 : vector<8x8xf32> to vector<8x8xbf16>
    %cst_123 = arith.constant dense<0.000000e+00> : vector<8x8xf32>
    %332 = tpu.matmul %331, %316, %cst_123 {dimension_numbers = #tpu.dot_dimension_numbers<[1], [0], [0], [1], [0, 0, 1, 1], [], []>} : vector<8x8xbf16>, vector<8x8xbf16>, vector<8x8xf32> -> vector<8x8xf32>
    %333 = arith.truncf %332 : vector<8x8xf32> to vector<8x8xbf16>
    %334 = vector.extract_strided_slice %231 {offsets = [24, 0], sizes = [8, 32], strides = [1, 1]} : vector<32x32xbf16> to vector<8x32xbf16>
    %cst_124 = arith.constant dense<0.000000e+00> : vector<8x32xf32>
    %335 = tpu.matmul %333, %334, %cst_124 {dimension_numbers = #tpu.dot_dimension_numbers<[1], [0], [0], [1], [0, 0, 1, 1], [], []>} : vector<8x8xbf16>, vector<8x32xbf16>, vector<8x32xf32> -> vector<8x32xf32>
    %336 = arith.addf %310, %335 : vector<8x32xf32>
    %337 = vector.broadcast %233 : vector<1x32xf32> to vector<8x32xf32>
    %338 = arith.addf %336, %337 : vector<8x32xf32>
    %339 = arith.addf %193, %338 : vector<8x32xf32>
    %c1_125 = arith.constant 1 : index
    %c0_126 = arith.constant 0 : index
    %c0_127 = arith.constant 0 : index
    %340 = vector.load %arg9[%c1_125, %c0_126, %c0_127] : memref<2x1x32xf32, #tpu.memory_space<vmem>>, vector<1x1x32xf32>
    %341 = vector.shape_cast %340 : vector<1x1x32xf32> to vector<1x32xf32>
    %c1_128 = arith.constant 1 : index
    %c0_129 = arith.constant 0 : index
    %c0_130 = arith.constant 0 : index
    %342 = vector.load %arg10[%c1_128, %c0_129, %c0_130] : memref<2x1x32xf32, #tpu.memory_space<vmem>>, vector<1x1x32xf32>
    %343 = vector.shape_cast %342 : vector<1x1x32xf32> to vector<1x32xf32>
    %cst_131 = arith.constant dense<0.000000e+00> : vector<8xf32>
    %344 = vector.multi_reduction <add>, %339, %cst_131 [1] : vector<8x32xf32> to vector<8xf32>
    %345 = vector.shape_cast %344 : vector<8xf32> to vector<8x1xf32>
    %cst_132 = arith.constant 3.200000e+01 : f32
    %346 = vector.broadcast %cst_132 : f32 to vector<8x1xf32>
    %347 = arith.divf %345, %346 : vector<8x1xf32>
    %348 = vector.broadcast %347 : vector<8x1xf32> to vector<8x32xf32>
    %349 = arith.subf %339, %348 : vector<8x32xf32>
    %350 = arith.mulf %349, %349 : vector<8x32xf32>
    %cst_133 = arith.constant dense<0.000000e+00> : vector<8xf32>
    %351 = vector.multi_reduction <add>, %350, %cst_133 [1] : vector<8x32xf32> to vector<8xf32>
    %352 = vector.shape_cast %351 : vector<8xf32> to vector<8x1xf32>
    %cst_134 = arith.constant 0.0322580636 : f32
    %353 = vector.broadcast %cst_134 : f32 to vector<8x1xf32>
    %354 = arith.mulf %352, %353 : vector<8x1xf32>
    %355 = math.sqrt %354 : vector<8x1xf32>
    %cst_135 = arith.constant 9.99999997E-7 : f32
    %356 = vector.broadcast %cst_135 : f32 to vector<8x1xf32>
    %357 = arith.addf %355, %356 : vector<8x1xf32>
    %358 = tpu.reciprocal %357 {approx = true} : vector<8x1xf32> -> vector<8x1xf32>
    %359 = vector.broadcast %341 : vector<1x32xf32> to vector<8x32xf32>
    %360 = arith.mulf %359, %349 : vector<8x32xf32>
    %361 = vector.broadcast %358 : vector<8x1xf32> to vector<8x32xf32>
    %362 = arith.mulf %360, %361 : vector<8x32xf32>
    %363 = vector.broadcast %343 : vector<1x32xf32> to vector<8x32xf32>
    %364 = arith.addf %362, %363 : vector<8x32xf32>
    %c1_136 = arith.constant 1 : index
    %c0_137 = arith.constant 0 : index
    %c0_138 = arith.constant 0 : index
    %365 = vector.load %arg11[%c1_136, %c0_137, %c0_138] : memref<2x32x64xbf16, #tpu.memory_space<vmem>>, vector<1x32x64xbf16>
    %366 = vector.shape_cast %365 : vector<1x32x64xbf16> to vector<32x64xbf16>
    %367 = arith.truncf %364 : vector<8x32xf32> to vector<8x32xbf16>
    %cst_139 = arith.constant dense<0.000000e+00> : vector<8x64xf32>
    %368 = tpu.matmul %367, %366, %cst_139 {dimension_numbers = #tpu.dot_dimension_numbers<[1], [0], [0], [1], [0, 0, 1, 1], [], []>} : vector<8x32xbf16>, vector<32x64xbf16>, vector<8x64xf32> -> vector<8x64xf32>
    %c1_140 = arith.constant 1 : index
    %c0_141 = arith.constant 0 : index
    %c0_142 = arith.constant 0 : index
    %369 = vector.load %arg12[%c1_140, %c0_141, %c0_142] : memref<2x1x64xf32, #tpu.memory_space<vmem>>, vector<1x1x64xf32>
    %370 = vector.shape_cast %369 : vector<1x1x64xf32> to vector<1x64xf32>
    %371 = vector.broadcast %370 : vector<1x64xf32> to vector<8x64xf32>
    %372 = arith.addf %368, %371 : vector<8x64xf32>
    %cst_143 = arith.constant 0.000000e+00 : f32
    %373 = vector.broadcast %cst_143 : f32 to vector<8x64xf32>
    %374 = arith.maximumf %372, %373 : vector<8x64xf32>
    %c1_144 = arith.constant 1 : index
    %c0_145 = arith.constant 0 : index
    %c0_146 = arith.constant 0 : index
    %375 = vector.load %arg13[%c1_144, %c0_145, %c0_146] : memref<2x64x32xbf16, #tpu.memory_space<vmem>>, vector<1x64x32xbf16>
    %376 = vector.shape_cast %375 : vector<1x64x32xbf16> to vector<64x32xbf16>
    %377 = arith.truncf %374 : vector<8x64xf32> to vector<8x64xbf16>
    %cst_147 = arith.constant dense<0.000000e+00> : vector<8x32xf32>
    %378 = tpu.matmul %377, %376, %cst_147 {dimension_numbers = #tpu.dot_dimension_numbers<[1], [0], [0], [1], [0, 0, 1, 1], [], []>} : vector<8x64xbf16>, vector<64x32xbf16>, vector<8x32xf32> -> vector<8x32xf32>
    %379 = arith.addf %339, %378 : vector<8x32xf32>
    %c1_148 = arith.constant 1 : index
    %c0_149 = arith.constant 0 : index
    %c0_150 = arith.constant 0 : index
    %380 = vector.load %arg14[%c1_148, %c0_149, %c0_150] : memref<2x1x32xf32, #tpu.memory_space<vmem>>, vector<1x1x32xf32>
    %381 = vector.shape_cast %380 : vector<1x1x32xf32> to vector<1x32xf32>
    %382 = vector.broadcast %381 : vector<1x32xf32> to vector<8x32xf32>
    %383 = arith.addf %379, %382 : vector<8x32xf32>
    %c0_151 = arith.constant 0 : index
    %c0_152 = arith.constant 0 : index
    %384 = vector.load %arg15[%c0_151, %c0_152] : memref<1x32xf32, #tpu.memory_space<vmem>>, vector<1x32xf32>
    %c0_153 = arith.constant 0 : index
    %c0_154 = arith.constant 0 : index
    %385 = vector.load %arg16[%c0_153, %c0_154] : memref<1x32xf32, #tpu.memory_space<vmem>>, vector<1x32xf32>
    %cst_155 = arith.constant dense<0.000000e+00> : vector<8xf32>
    %386 = vector.multi_reduction <add>, %383, %cst_155 [1] : vector<8x32xf32> to vector<8xf32>
    %387 = vector.shape_cast %386 : vector<8xf32> to vector<8x1xf32>
    %cst_156 = arith.constant 3.200000e+01 : f32
    %388 = vector.broadcast %cst_156 : f32 to vector<8x1xf32>
    %389 = arith.divf %387, %388 : vector<8x1xf32>
    %390 = vector.broadcast %389 : vector<8x1xf32> to vector<8x32xf32>
    %391 = arith.subf %383, %390 : vector<8x32xf32>
    %392 = arith.mulf %391, %391 : vector<8x32xf32>
    %cst_157 = arith.constant dense<0.000000e+00> : vector<8xf32>
    %393 = vector.multi_reduction <add>, %392, %cst_157 [1] : vector<8x32xf32> to vector<8xf32>
    %394 = vector.shape_cast %393 : vector<8xf32> to vector<8x1xf32>
    %cst_158 = arith.constant 0.0322580636 : f32
    %395 = vector.broadcast %cst_158 : f32 to vector<8x1xf32>
    %396 = arith.mulf %394, %395 : vector<8x1xf32>
    %397 = math.sqrt %396 : vector<8x1xf32>
    %cst_159 = arith.constant 9.99999997E-7 : f32
    %398 = vector.broadcast %cst_159 : f32 to vector<8x1xf32>
    %399 = arith.addf %397, %398 : vector<8x1xf32>
    %400 = tpu.reciprocal %399 {approx = true} : vector<8x1xf32> -> vector<8x1xf32>
    %401 = vector.broadcast %384 : vector<1x32xf32> to vector<8x32xf32>
    %402 = arith.mulf %401, %391 : vector<8x32xf32>
    %403 = vector.broadcast %400 : vector<8x1xf32> to vector<8x32xf32>
    %404 = arith.mulf %402, %403 : vector<8x32xf32>
    %405 = vector.broadcast %385 : vector<1x32xf32> to vector<8x32xf32>
    %406 = arith.addf %404, %405 : vector<8x32xf32>
    %c0_160 = arith.constant 0 : index
    %c0_161 = arith.constant 0 : index
    %c0_162 = arith.constant 0 : index
    %407 = vector.load %arg17[%c0_160, %c0_161, %c0_162] : memref<1x8x32xf32, #tpu.memory_space<vmem>>, vector<1x8x32xf32>
    %408 = vector.shape_cast %407 : vector<1x8x32xf32> to vector<8x32xf32>
    %409 = vector.shape_cast %406 : vector<8x32xf32> to vector<1x8x32xf32>
    tpu.vector_store %arg17[%c0_160, %c0_161, %c0_162], %409 {strides = array<i32>} : memref<1x8x32xf32, #tpu.memory_space<vmem>>, vector<1x8x32xf32>,
    return
  }
  func.func @transform_0(%arg0: i32) -> (i32, i32, i32) {
    %c0_i32 = arith.constant 0 : i32
    %c0_i32_0 = arith.constant 0 : i32
    %c0_i32_1 = arith.constant 0 : i32
    return %arg0, %c0_i32, %c0_i32_0 : i32, i32, i32
  }
  func.func @transform_1(%arg0: i32) -> (i32, i32, i32) {
    %c0_i32 = arith.constant 0 : i32
    %c0_i32_0 = arith.constant 0 : i32
    %c0_i32_1 = arith.constant 0 : i32
    return %arg0, %c0_i32, %c0_i32_0 : i32, i32, i32
  }
  func.func @transform_2(%arg0: i32) -> (i32, i32, i32) {
    %c0_i32 = arith.constant 0 : i32
    %c0_i32_0 = arith.constant 0 : i32
    %c0_i32_1 = arith.constant 0 : i32
    %c0_i32_2 = arith.constant 0 : i32
    return %c0_i32, %c0_i32_0, %c0_i32_1 : i32, i32, i32
  }
  func.func @transform_3(%arg0: i32) -> (i32, i32, i32) {
    %c0_i32 = arith.constant 0 : i32
    %c0_i32_0 = arith.constant 0 : i32
    %c0_i32_1 = arith.constant 0 : i32
    %c0_i32_2 = arith.constant 0 : i32
    return %c0_i32, %c0_i32_0, %c0_i32_1 : i32, i32, i32
  }
  func.func @transform_4(%arg0: i32) -> (i32, i32, i32) {
    %c0_i32 = arith.constant 0 : i32
    %c0_i32_0 = arith.constant 0 : i32
    %c0_i32_1 = arith.constant 0 : i32
    %c0_i32_2 = arith.constant 0 : i32
    return %c0_i32, %c0_i32_0, %c0_i32_1 : i32, i32, i32
  }
  func.func @transform_5(%arg0: i32) -> (i32, i32, i32) {
    %c0_i32 = arith.constant 0 : i32
    %c0_i32_0 = arith.constant 0 : i32
    %c0_i32_1 = arith.constant 0 : i32
    %c0_i32_2 = arith.constant 0 : i32
    return %c0_i32, %c0_i32_0, %c0_i32_1 : i32, i32, i32
  }
  func.func @transform_6(%arg0: i32) -> (i32, i32, i32) {
    %c0_i32 = arith.constant 0 : i32
    %c0_i32_0 = arith.constant 0 : i32
    %c0_i32_1 = arith.constant 0 : i32
    %c0_i32_2 = arith.constant 0 : i32
    return %c0_i32, %c0_i32_0, %c0_i32_1 : i32, i32, i32
  }
  func.func @transform_7(%arg0: i32) -> (i32, i32, i32) {
    %c0_i32 = arith.constant 0 : i32
    %c0_i32_0 = arith.constant 0 : i32
    %c0_i32_1 = arith.constant 0 : i32
    %c0_i32_2 = arith.constant 0 : i32
    return %c0_i32, %c0_i32_0, %c0_i32_1 : i32, i32, i32
  }
  func.func @transform_8(%arg0: i32) -> (i32, i32, i32) {
    %c0_i32 = arith.constant 0 : i32
    %c0_i32_0 = arith.constant 0 : i32
    %c0_i32_1 = arith.constant 0 : i32
    %c0_i32_2 = arith.constant 0 : i32
    return %c0_i32, %c0_i32_0, %c0_i32_1 : i32, i32, i32
  }
  func.func @transform_9(%arg0: i32) -> (i32, i32, i32) {
    %c0_i32 = arith.constant 0 : i32
    %c0_i32_0 = arith.constant 0 : i32
    %c0_i32_1 = arith.constant 0 : i32
    %c0_i32_2 = arith.constant 0 : i32
    return %c0_i32, %c0_i32_0, %c0_i32_1 : i32, i32, i32
  }
  func.func @transform_10(%arg0: i32) -> (i32, i32, i32) {
    %c0_i32 = arith.constant 0 : i32
    %c0_i32_0 = arith.constant 0 : i32
    %c0_i32_1 = arith.constant 0 : i32
    %c0_i32_2 = arith.constant 0 : i32
    return %c0_i32, %c0_i32_0, %c0_i32_1 : i32, i32, i32
  }
  func.func @transform_11(%arg0: i32) -> (i32, i32, i32) {
    %c0_i32 = arith.constant 0 : i32
    %c0_i32_0 = arith.constant 0 : i32
    %c0_i32_1 = arith.constant 0 : i32
    %c0_i32_2 = arith.constant 0 : i32
    return %c0_i32, %c0_i32_0, %c0_i32_1 : i32, i32, i32
  }
  func.func @transform_12(%arg0: i32) -> (i32, i32, i32) {
    %c0_i32 = arith.constant 0 : i32
    %c0_i32_0 = arith.constant 0 : i32
    %c0_i32_1 = arith.constant 0 : i32
    %c0_i32_2 = arith.constant 0 : i32
    return %c0_i32, %c0_i32_0, %c0_i32_1 : i32, i32, i32
  }
  func.func @transform_13(%arg0: i32) -> (i32, i32, i32) {
    %c0_i32 = arith.constant 0 : i32
    %c0_i32_0 = arith.constant 0 : i32
    %c0_i32_1 = arith.constant 0 : i32
    %c0_i32_2 = arith.constant 0 : i32
    return %c0_i32, %c0_i32_0, %c0_i32_1 : i32, i32, i32
  }
  func.func @transform_14(%arg0: i32) -> (i32, i32) {
    %c0_i32 = arith.constant 0 : i32
    %c0_i32_0 = arith.constant 0 : i32
    %c0_i32_1 = arith.constant 0 : i32
    return %c0_i32, %c0_i32_0 : i32, i32
  }
  func.func @transform_15(%arg0: i32) -> (i32, i32) {
    %c0_i32 = arith.constant 0 : i32
    %c0_i32_0 = arith.constant 0 : i32
    %c0_i32_1 = arith.constant 0 : i32
    return %c0_i32, %c0_i32_0 : i32, i32
  }
  func.func @transform_16(%arg0: i32) -> (i32, i32, i32) {
    %c0_i32 = arith.constant 0 : i32
    %c0_i32_0 = arith.constant 0 : i32
    %c0_i32_1 = arith.constant 0 : i32
    return %arg0, %c0_i32, %c0_i32_0 : i32, i32, i32
  }
}

module attributes {stable_mosaic.version = 11 : i64} {
  func.func @_decoder_kernel(%arg0: i32, %arg1: memref<1x8x32xf32, #tpu.memory_space<vmem>>, %arg2: memref<1x8x32xf32, #tpu.memory_space<vmem>>, %arg3: memref<1x8x8xf32, #tpu.memory_space<vmem>>, %arg4: memref<1x8x8xf32, #tpu.memory_space<vmem>>, %arg5: memref<2x1x32xf32, #tpu.memory_space<vmem>>, %arg6: memref<2x1x32xf32, #tpu.memory_space<vmem>>, %arg7: memref<2x32x96xbf16, #tpu.memory_space<vmem>>, %arg8: memref<2x1x96xf32, #tpu.memory_space<vmem>>, %arg9: memref<2x32x32xbf16, #tpu.memory_space<vmem>>, %arg10: memref<2x1x32xf32, #tpu.memory_space<vmem>>, %arg11: memref<2x1x32xf32, #tpu.memory_space<vmem>>, %arg12: memref<2x1x32xf32, #tpu.memory_space<vmem>>, %arg13: memref<2x32x32xbf16, #tpu.memory_space<vmem>>, %arg14: memref<2x1x32xf32, #tpu.memory_space<vmem>>, %arg15: memref<2x32x64xbf16, #tpu.memory_space<vmem>>, %arg16: memref<2x1x64xf32, #tpu.memory_space<vmem>>, %arg17: memref<2x32x32xbf16, #tpu.memory_space<vmem>>, %arg18: memref<2x1x32xf32, #tpu.memory_space<vmem>>, %arg19: memref<2x1x32xf32, #tpu.memory_space<vmem>>, %arg20: memref<2x1x32xf32, #tpu.memory_space<vmem>>, %arg21: memref<2x32x64xbf16, #tpu.memory_space<vmem>>, %arg22: memref<2x1x64xf32, #tpu.memory_space<vmem>>, %arg23: memref<2x64x32xbf16, #tpu.memory_space<vmem>>, %arg24: memref<2x1x32xf32, #tpu.memory_space<vmem>>, %arg25: memref<1x32xf32, #tpu.memory_space<vmem>>, %arg26: memref<1x32xf32, #tpu.memory_space<vmem>>, %arg27: memref<32x16xbf16, #tpu.memory_space<vmem>>, %arg28: memref<1x16xf32, #tpu.memory_space<vmem>>, %arg29: memref<1x8x16xf32, #tpu.memory_space<vmem>>) attributes {dimension_semantics = [#tpu.dimension_semantics<parallel>], iteration_bounds = array<i64: 2>, scalar_prefetch = 0 : i64, scratch_operands = 0 : i64, tpu.core_type = #tpu.core_type<tc>, window_params = [{transform_indices = @transform_0, window_bounds = array<i64: 1, 8, 32>}, {transform_indices = @transform_1, window_bounds = array<i64: 1, 8, 32>}, {transform_indices = @transform_2, window_bounds = array<i64: 1, 8, 8>}, {transform_indices = @transform_3, window_bounds = array<i64: 1, 8, 8>}, {pipeline_mode = #tpu.pipeline_mode<synchronous>, transform_indices = @transform_4, window_bounds = array<i64: 2, 1, 32>}, {pipeline_mode = #tpu.pipeline_mode<synchronous>, transform_indices = @transform_5, window_bounds = array<i64: 2, 1, 32>}, {pipeline_mode = #tpu.pipeline_mode<synchronous>, transform_indices = @transform_6, window_bounds = array<i64: 2, 32, 96>}, {pipeline_mode = #tpu.pipeline_mode<synchronous>, transform_indices = @transform_7, window_bounds = array<i64: 2, 1, 96>}, {pipeline_mode = #tpu.pipeline_mode<synchronous>, transform_indices = @transform_8, window_bounds = array<i64: 2, 32, 32>}, {pipeline_mode = #tpu.pipeline_mode<synchronous>, transform_indices = @transform_9, window_bounds = array<i64: 2, 1, 32>}, {pipeline_mode = #tpu.pipeline_mode<synchronous>, transform_indices = @transform_10, window_bounds = array<i64: 2, 1, 32>}, {pipeline_mode = #tpu.pipeline_mode<synchronous>, transform_indices = @transform_11, window_bounds = array<i64: 2, 1, 32>}, {pipeline_mode = #tpu.pipeline_mode<synchronous>, transform_indices = @transform_12, window_bounds = array<i64: 2, 32, 32>}, {pipeline_mode = #tpu.pipeline_mode<synchronous>, transform_indices = @transform_13, window_bounds = array<i64: 2, 1, 32>}, {pipeline_mode = #tpu.pipeline_mode<synchronous>, transform_indices = @transform_14, window_bounds = array<i64: 2, 32, 64>}, {pipeline_mode = #tpu.pipeline_mode<synchronous>, transform_indices = @transform_15, window_bounds = array<i64: 2, 1, 64>}, {pipeline_mode = #tpu.pipeline_mode<synchronous>, transform_indices = @transform_16, window_bounds = array<i64: 2, 32, 32>}, {pipeline_mode = #tpu.pipeline_mode<synchronous>, transform_indices = @transform_17, window_bounds = array<i64: 2, 1, 32>}, {pipeline_mode = #tpu.pipeline_mode<synchronous>, transform_indices = @transform_18, window_bounds = array<i64: 2, 1, 32>}, {pipeline_mode = #tpu.pipeline_mode<synchronous>, transform_indices = @transform_19, window_bounds = array<i64: 2, 1, 32>}, {pipeline_mode = #tpu.pipeline_mode<synchronous>, transform_indices = @transform_20, window_bounds = array<i64: 2, 32, 64>}, {pipeline_mode = #tpu.pipeline_mode<synchronous>, transform_indices = @transform_21, window_bounds = array<i64: 2, 1, 64>}, {pipeline_mode = #tpu.pipeline_mode<synchronous>, transform_indices = @transform_22, window_bounds = array<i64: 2, 64, 32>}, {pipeline_mode = #tpu.pipeline_mode<synchronous>, transform_indices = @transform_23, window_bounds = array<i64: 2, 1, 32>}, {pipeline_mode = #tpu.pipeline_mode<synchronous>, transform_indices = @transform_24, window_bounds = array<i64: 1, 32>}, {pipeline_mode = #tpu.pipeline_mode<synchronous>, transform_indices = @transform_25, window_bounds = array<i64: 1, 32>}, {pipeline_mode = #tpu.pipeline_mode<synchronous>, transform_indices = @transform_26, window_bounds = array<i64: 32, 16>}, {pipeline_mode = #tpu.pipeline_mode<synchronous>, transform_indices = @transform_27, window_bounds = array<i64: 1, 16>}, {transform_indices = @transform_28, window_bounds = array<i64: 1, 8, 16>}]} {
    %c0 = arith.constant 0 : index
    %c0_0 = arith.constant 0 : index
    %c0_1 = arith.constant 0 : index
    %0 = vector.load %arg1[%c0, %c0_0, %c0_1] : memref<1x8x32xf32, #tpu.memory_space<vmem>>, vector<1x8x32xf32>
    %1 = vector.shape_cast %0 : vector<1x8x32xf32> to vector<8x32xf32>
    %c0_2 = arith.constant 0 : index
    %c0_3 = arith.constant 0 : index
    %c0_4 = arith.constant 0 : index
    %2 = vector.load %arg2[%c0_2, %c0_3, %c0_4] : memref<1x8x32xf32, #tpu.memory_space<vmem>>, vector<1x8x32xf32>
    %3 = vector.shape_cast %2 : vector<1x8x32xf32> to vector<8x32xf32>
    %c0_5 = arith.constant 0 : index
    %c0_6 = arith.constant 0 : index
    %c0_7 = arith.constant 0 : index
    %4 = vector.load %arg3[%c0_5, %c0_6, %c0_7] : memref<1x8x8xf32, #tpu.memory_space<vmem>>, vector<1x8x8xf32>
    %5 = vector.shape_cast %4 : vector<1x8x8xf32> to vector<8x8xf32>
    %c0_8 = arith.constant 0 : index
    %c0_9 = arith.constant 0 : index
    %c0_10 = arith.constant 0 : index
    %6 = vector.load %arg4[%c0_8, %c0_9, %c0_10] : memref<1x8x8xf32, #tpu.memory_space<vmem>>, vector<1x8x8xf32>
    %7 = vector.shape_cast %6 : vector<1x8x8xf32> to vector<8x8xf32>
    %c0_11 = arith.constant 0 : index
    %c0_12 = arith.constant 0 : index
    %c0_13 = arith.constant 0 : index
    %8 = vector.load %arg5[%c0_11, %c0_12, %c0_13] : memref<2x1x32xf32, #tpu.memory_space<vmem>>, vector<1x1x32xf32>
    %9 = vector.shape_cast %8 : vector<1x1x32xf32> to vector<1x32xf32>
    %c0_14 = arith.constant 0 : index
    %c0_15 = arith.constant 0 : index
    %c0_16 = arith.constant 0 : index
    %10 = vector.load %arg6[%c0_14, %c0_15, %c0_16] : memref<2x1x32xf32, #tpu.memory_space<vmem>>, vector<1x1x32xf32>
    %11 = vector.shape_cast %10 : vector<1x1x32xf32> to vector<1x32xf32>
    %cst = arith.constant dense<0.000000e+00> : vector<8xf32>
    %12 = vector.multi_reduction <add>, %1, %cst [1] : vector<8x32xf32> to vector<8xf32>
    %13 = vector.shape_cast %12 : vector<8xf32> to vector<8x1xf32>
    %cst_17 = arith.constant 3.200000e+01 : f32
    %14 = vector.broadcast %cst_17 : f32 to vector<8x1xf32>
    %15 = arith.divf %13, %14 : vector<8x1xf32>
    %16 = vector.broadcast %15 : vector<8x1xf32> to vector<8x32xf32>
    %17 = arith.subf %1, %16 : vector<8x32xf32>
    %18 = arith.mulf %17, %17 : vector<8x32xf32>
    %cst_18 = arith.constant dense<0.000000e+00> : vector<8xf32>
    %19 = vector.multi_reduction <add>, %18, %cst_18 [1] : vector<8x32xf32> to vector<8xf32>
    %20 = vector.shape_cast %19 : vector<8xf32> to vector<8x1xf32>
    %cst_19 = arith.constant 0.0322580636 : f32
    %21 = vector.broadcast %cst_19 : f32 to vector<8x1xf32>
    %22 = arith.mulf %20, %21 : vector<8x1xf32>
    %23 = math.sqrt %22 : vector<8x1xf32>
    %cst_20 = arith.constant 9.99999997E-7 : f32
    %24 = vector.broadcast %cst_20 : f32 to vector<8x1xf32>
    %25 = arith.addf %23, %24 : vector<8x1xf32>
    %26 = tpu.reciprocal %25 {approx = true} : vector<8x1xf32> -> vector<8x1xf32>
    %27 = vector.broadcast %9 : vector<1x32xf32> to vector<8x32xf32>
    %28 = arith.mulf %27, %17 : vector<8x32xf32>
    %29 = vector.broadcast %26 : vector<8x1xf32> to vector<8x32xf32>
    %30 = arith.mulf %28, %29 : vector<8x32xf32>
    %31 = vector.broadcast %11 : vector<1x32xf32> to vector<8x32xf32>
    %32 = arith.addf %30, %31 : vector<8x32xf32>
    %c0_21 = arith.constant 0 : index
    %c0_22 = arith.constant 0 : index
    %c0_23 = arith.constant 0 : index
    %33 = vector.load %arg7[%c0_21, %c0_22, %c0_23] : memref<2x32x96xbf16, #tpu.memory_space<vmem>>, vector<1x32x96xbf16>
    %34 = vector.shape_cast %33 : vector<1x32x96xbf16> to vector<32x96xbf16>
    %35 = arith.truncf %32 : vector<8x32xf32> to vector<8x32xbf16>
    %cst_24 = arith.constant dense<0.000000e+00> : vector<8x96xf32>
    %36 = tpu.matmul %35, %34, %cst_24 {dimension_numbers = #tpu.dot_dimension_numbers<[1], [0], [0], [1], [0, 0, 1, 1], [], []>} : vector<8x32xbf16>, vector<32x96xbf16>, vector<8x96xf32> -> vector<8x96xf32>
    %c0_25 = arith.constant 0 : index
    %c0_26 = arith.constant 0 : index
    %c0_27 = arith.constant 0 : index
    %37 = vector.load %arg8[%c0_25, %c0_26, %c0_27] : memref<2x1x96xf32, #tpu.memory_space<vmem>>, vector<1x1x96xf32>
    %38 = vector.shape_cast %37 : vector<1x1x96xf32> to vector<1x96xf32>
    %39 = vector.broadcast %38 : vector<1x96xf32> to vector<8x96xf32>
    %40 = arith.addf %36, %39 : vector<8x96xf32>
    %41 = vector.extract_strided_slice %40 {offsets = [0, 0], sizes = [8, 32], strides = [1, 1]} : vector<8x96xf32> to vector<8x32xf32>
    %42 = vector.extract_strided_slice %40 {offsets = [0, 32], sizes = [8, 32], strides = [1, 1]} : vector<8x96xf32> to vector<8x32xf32>
    %43 = vector.extract_strided_slice %40 {offsets = [0, 64], sizes = [8, 32], strides = [1, 1]} : vector<8x96xf32> to vector<8x32xf32>
    %c0_28 = arith.constant 0 : index
    %c0_29 = arith.constant 0 : index
    %c0_30 = arith.constant 0 : index
    %44 = vector.load %arg9[%c0_28, %c0_29, %c0_30] : memref<2x32x32xbf16, #tpu.memory_space<vmem>>, vector<1x32x32xbf16>
    %45 = vector.shape_cast %44 : vector<1x32x32xbf16> to vector<32x32xbf16>
    %c0_31 = arith.constant 0 : index
    %c0_32 = arith.constant 0 : index
    %c0_33 = arith.constant 0 : index
    %46 = vector.load %arg10[%c0_31, %c0_32, %c0_33] : memref<2x1x32xf32, #tpu.memory_space<vmem>>, vector<1x1x32xf32>
    %47 = vector.shape_cast %46 : vector<1x1x32xf32> to vector<1x32xf32>
    %48 = vector.extract_strided_slice %41 {offsets = [0, 0], sizes = [8, 8], strides = [1, 1]} : vector<8x32xf32> to vector<8x8xf32>
    %49 = arith.truncf %48 : vector<8x8xf32> to vector<8x8xbf16>
    %50 = vector.extract_strided_slice %42 {offsets = [0, 0], sizes = [8, 8], strides = [1, 1]} : vector<8x32xf32> to vector<8x8xf32>
    %51 = arith.truncf %50 : vector<8x8xf32> to vector<8x8xbf16>
    %52 = vector.extract_strided_slice %43 {offsets = [0, 0], sizes = [8, 8], strides = [1, 1]} : vector<8x32xf32> to vector<8x8xf32>
    %53 = arith.truncf %52 : vector<8x8xf32> to vector<8x8xbf16>
    "tpu.trace_start"() <{level = 10 : i32, message = "qd,kd->qk"}> : () -> ()
    %cst_34 = arith.constant dense<0.000000e+00> : vector<8x8xf32>
    %54 = tpu.matmul %49, %51, %cst_34 {dimension_numbers = #tpu.dot_dimension_numbers<[1], [1], [0], [0], [0, 0, 1, 0], [], []>} : vector<8x8xbf16>, vector<8x8xbf16>, vector<8x8xf32> -> vector<8x8xf32>
    "tpu.trace_stop"() : () -> ()
    %cst_35 = arith.constant 0.353553385 : f32
    %55 = vector.broadcast %cst_35 : f32 to vector<8x8xf32>
    %56 = arith.mulf %54, %55 : vector<8x8xf32>
    %57 = arith.addf %56, %5 : vector<8x8xf32>
    %cst_36 = arith.constant dense<0xFF800000> : vector<8xf32>
    %58 = vector.multi_reduction <maximumf>, %57, %cst_36 [1] : vector<8x8xf32> to vector<8xf32>
    %59 = vector.shape_cast %58 : vector<8xf32> to vector<8x1xf32>
    %60 = vector.broadcast %59 : vector<8x1xf32> to vector<8x8xf32>
    %61 = arith.subf %57, %60 : vector<8x8xf32>
    %62 = math.exp %61 : vector<8x8xf32>
    %cst_37 = arith.constant dense<0.000000e+00> : vector<8xf32>
    %63 = vector.multi_reduction <add>, %62, %cst_37 [1] : vector<8x8xf32> to vector<8xf32>
    %64 = vector.shape_cast %63 : vector<8xf32> to vector<8x1xf32>
    %65 = tpu.reciprocal %64 {approx = true} : vector<8x1xf32> -> vector<8x1xf32>
    %66 = vector.broadcast %65 : vector<8x1xf32> to vector<8x8xf32>
    %67 = arith.mulf %62, %66 : vector<8x8xf32>
    %68 = arith.truncf %67 : vector<8x8xf32> to vector<8x8xbf16>
    %cst_38 = arith.constant dense<0.000000e+00> : vector<8x8xf32>
    %69 = tpu.matmul %68, %53, %cst_38 {dimension_numbers = #tpu.dot_dimension_numbers<[1], [0], [0], [1], [0, 0, 1, 1], [], []>} : vector<8x8xbf16>, vector<8x8xbf16>, vector<8x8xf32> -> vector<8x8xf32>
    %70 = arith.truncf %69 : vector<8x8xf32> to vector<8x8xbf16>
    %71 = vector.extract_strided_slice %45 {offsets = [0, 0], sizes = [8, 32], strides = [1, 1]} : vector<32x32xbf16> to vector<8x32xbf16>
    %cst_39 = arith.constant dense<0.000000e+00> : vector<8x32xf32>
    %72 = tpu.matmul %70, %71, %cst_39 {dimension_numbers = #tpu.dot_dimension_numbers<[1], [0], [0], [1], [0, 0, 1, 1], [], []>} : vector<8x8xbf16>, vector<8x32xbf16>, vector<8x32xf32> -> vector<8x32xf32>
    %73 = vector.extract_strided_slice %41 {offsets = [0, 8], sizes = [8, 8], strides = [1, 1]} : vector<8x32xf32> to vector<8x8xf32>
    %74 = arith.truncf %73 : vector<8x8xf32> to vector<8x8xbf16>
    %75 = vector.extract_strided_slice %42 {offsets = [0, 8], sizes = [8, 8], strides = [1, 1]} : vector<8x32xf32> to vector<8x8xf32>
    %76 = arith.truncf %75 : vector<8x8xf32> to vector<8x8xbf16>
    %77 = vector.extract_strided_slice %43 {offsets = [0, 8], sizes = [8, 8], strides = [1, 1]} : vector<8x32xf32> to vector<8x8xf32>
    %78 = arith.truncf %77 : vector<8x8xf32> to vector<8x8xbf16>
    "tpu.trace_start"() <{level = 10 : i32, message = "qd,kd->qk"}> : () -> ()
    %cst_40 = arith.constant dense<0.000000e+00> : vector<8x8xf32>
    %79 = tpu.matmul %74, %76, %cst_40 {dimension_numbers = #tpu.dot_dimension_numbers<[1], [1], [0], [0], [0, 0, 1, 0], [], []>} : vector<8x8xbf16>, vector<8x8xbf16>, vector<8x8xf32> -> vector<8x8xf32>
    "tpu.trace_stop"() : () -> ()
    %cst_41 = arith.constant 0.353553385 : f32
    %80 = vector.broadcast %cst_41 : f32 to vector<8x8xf32>
    %81 = arith.mulf %79, %80 : vector<8x8xf32>
    %82 = arith.addf %81, %5 : vector<8x8xf32>
    %cst_42 = arith.constant dense<0xFF800000> : vector<8xf32>
    %83 = vector.multi_reduction <maximumf>, %82, %cst_42 [1] : vector<8x8xf32> to vector<8xf32>
    %84 = vector.shape_cast %83 : vector<8xf32> to vector<8x1xf32>
    %85 = vector.broadcast %84 : vector<8x1xf32> to vector<8x8xf32>
    %86 = arith.subf %82, %85 : vector<8x8xf32>
    %87 = math.exp %86 : vector<8x8xf32>
    %cst_43 = arith.constant dense<0.000000e+00> : vector<8xf32>
    %88 = vector.multi_reduction <add>, %87, %cst_43 [1] : vector<8x8xf32> to vector<8xf32>
    %89 = vector.shape_cast %88 : vector<8xf32> to vector<8x1xf32>
    %90 = tpu.reciprocal %89 {approx = true} : vector<8x1xf32> -> vector<8x1xf32>
    %91 = vector.broadcast %90 : vector<8x1xf32> to vector<8x8xf32>
    %92 = arith.mulf %87, %91 : vector<8x8xf32>
    %93 = arith.truncf %92 : vector<8x8xf32> to vector<8x8xbf16>
    %cst_44 = arith.constant dense<0.000000e+00> : vector<8x8xf32>
    %94 = tpu.matmul %93, %78, %cst_44 {dimension_numbers = #tpu.dot_dimension_numbers<[1], [0], [0], [1], [0, 0, 1, 1], [], []>} : vector<8x8xbf16>, vector<8x8xbf16>, vector<8x8xf32> -> vector<8x8xf32>
    %95 = arith.truncf %94 : vector<8x8xf32> to vector<8x8xbf16>
    %96 = vector.extract_strided_slice %45 {offsets = [8, 0], sizes = [8, 32], strides = [1, 1]} : vector<32x32xbf16> to vector<8x32xbf16>
    %cst_45 = arith.constant dense<0.000000e+00> : vector<8x32xf32>
    %97 = tpu.matmul %95, %96, %cst_45 {dimension_numbers = #tpu.dot_dimension_numbers<[1], [0], [0], [1], [0, 0, 1, 1], [], []>} : vector<8x8xbf16>, vector<8x32xbf16>, vector<8x32xf32> -> vector<8x32xf32>
    %98 = arith.addf %72, %97 : vector<8x32xf32>
    %99 = vector.extract_strided_slice %41 {offsets = [0, 16], sizes = [8, 8], strides = [1, 1]} : vector<8x32xf32> to vector<8x8xf32>
    %100 = arith.truncf %99 : vector<8x8xf32> to vector<8x8xbf16>
    %101 = vector.extract_strided_slice %42 {offsets = [0, 16], sizes = [8, 8], strides = [1, 1]} : vector<8x32xf32> to vector<8x8xf32>
    %102 = arith.truncf %101 : vector<8x8xf32> to vector<8x8xbf16>
    %103 = vector.extract_strided_slice %43 {offsets = [0, 16], sizes = [8, 8], strides = [1, 1]} : vector<8x32xf32> to vector<8x8xf32>
    %104 = arith.truncf %103 : vector<8x8xf32> to vector<8x8xbf16>
    "tpu.trace_start"() <{level = 10 : i32, message = "qd,kd->qk"}> : () -> ()
    %cst_46 = arith.constant dense<0.000000e+00> : vector<8x8xf32>
    %105 = tpu.matmul %100, %102, %cst_46 {dimension_numbers = #tpu.dot_dimension_numbers<[1], [1], [0], [0], [0, 0, 1, 0], [], []>} : vector<8x8xbf16>, vector<8x8xbf16>, vector<8x8xf32> -> vector<8x8xf32>
    "tpu.trace_stop"() : () -> ()
    %cst_47 = arith.constant 0.353553385 : f32
    %106 = vector.broadcast %cst_47 : f32 to vector<8x8xf32>
    %107 = arith.mulf %105, %106 : vector<8x8xf32>
    %108 = arith.addf %107, %5 : vector<8x8xf32>
    %cst_48 = arith.constant dense<0xFF800000> : vector<8xf32>
    %109 = vector.multi_reduction <maximumf>, %108, %cst_48 [1] : vector<8x8xf32> to vector<8xf32>
    %110 = vector.shape_cast %109 : vector<8xf32> to vector<8x1xf32>
    %111 = vector.broadcast %110 : vector<8x1xf32> to vector<8x8xf32>
    %112 = arith.subf %108, %111 : vector<8x8xf32>
    %113 = math.exp %112 : vector<8x8xf32>
    %cst_49 = arith.constant dense<0.000000e+00> : vector<8xf32>
    %114 = vector.multi_reduction <add>, %113, %cst_49 [1] : vector<8x8xf32> to vector<8xf32>
    %115 = vector.shape_cast %114 : vector<8xf32> to vector<8x1xf32>
    %116 = tpu.reciprocal %115 {approx = true} : vector<8x1xf32> -> vector<8x1xf32>
    %117 = vector.broadcast %116 : vector<8x1xf32> to vector<8x8xf32>
    %118 = arith.mulf %113, %117 : vector<8x8xf32>
    %119 = arith.truncf %118 : vector<8x8xf32> to vector<8x8xbf16>
    %cst_50 = arith.constant dense<0.000000e+00> : vector<8x8xf32>
    %120 = tpu.matmul %119, %104, %cst_50 {dimension_numbers = #tpu.dot_dimension_numbers<[1], [0], [0], [1], [0, 0, 1, 1], [], []>} : vector<8x8xbf16>, vector<8x8xbf16>, vector<8x8xf32> -> vector<8x8xf32>
    %121 = arith.truncf %120 : vector<8x8xf32> to vector<8x8xbf16>
    %122 = vector.extract_strided_slice %45 {offsets = [16, 0], sizes = [8, 32], strides = [1, 1]} : vector<32x32xbf16> to vector<8x32xbf16>
    %cst_51 = arith.constant dense<0.000000e+00> : vector<8x32xf32>
    %123 = tpu.matmul %121, %122, %cst_51 {dimension_numbers = #tpu.dot_dimension_numbers<[1], [0], [0], [1], [0, 0, 1, 1], [], []>} : vector<8x8xbf16>, vector<8x32xbf16>, vector<8x32xf32> -> vector<8x32xf32>
    %124 = arith.addf %98, %123 : vector<8x32xf32>
    %125 = vector.extract_strided_slice %41 {offsets = [0, 24], sizes = [8, 8], strides = [1, 1]} : vector<8x32xf32> to vector<8x8xf32>
    %126 = arith.truncf %125 : vector<8x8xf32> to vector<8x8xbf16>
    %127 = vector.extract_strided_slice %42 {offsets = [0, 24], sizes = [8, 8], strides = [1, 1]} : vector<8x32xf32> to vector<8x8xf32>
    %128 = arith.truncf %127 : vector<8x8xf32> to vector<8x8xbf16>
    %129 = vector.extract_strided_slice %43 {offsets = [0, 24], sizes = [8, 8], strides = [1, 1]} : vector<8x32xf32> to vector<8x8xf32>
    %130 = arith.truncf %129 : vector<8x8xf32> to vector<8x8xbf16>
    "tpu.trace_start"() <{level = 10 : i32, message = "qd,kd->qk"}> : () -> ()
    %cst_52 = arith.constant dense<0.000000e+00> : vector<8x8xf32>
    %131 = tpu.matmul %126, %128, %cst_52 {dimension_numbers = #tpu.dot_dimension_numbers<[1], [1], [0], [0], [0, 0, 1, 0], [], []>} : vector<8x8xbf16>, vector<8x8xbf16>, vector<8x8xf32> -> vector<8x8xf32>
    "tpu.trace_stop"() : () -> ()
    %cst_53 = arith.constant 0.353553385 : f32
    %132 = vector.broadcast %cst_53 : f32 to vector<8x8xf32>
    %133 = arith.mulf %131, %132 : vector<8x8xf32>
    %134 = arith.addf %133, %5 : vector<8x8xf32>
    %cst_54 = arith.constant dense<0xFF800000> : vector<8xf32>
    %135 = vector.multi_reduction <maximumf>, %134, %cst_54 [1] : vector<8x8xf32> to vector<8xf32>
    %136 = vector.shape_cast %135 : vector<8xf32> to vector<8x1xf32>
    %137 = vector.broadcast %136 : vector<8x1xf32> to vector<8x8xf32>
    %138 = arith.subf %134, %137 : vector<8x8xf32>
    %139 = math.exp %138 : vector<8x8xf32>
    %cst_55 = arith.constant dense<0.000000e+00> : vector<8xf32>
    %140 = vector.multi_reduction <add>, %139, %cst_55 [1] : vector<8x8xf32> to vector<8xf32>
    %141 = vector.shape_cast %140 : vector<8xf32> to vector<8x1xf32>
    %142 = tpu.reciprocal %141 {approx = true} : vector<8x1xf32> -> vector<8x1xf32>
    %143 = vector.broadcast %142 : vector<8x1xf32> to vector<8x8xf32>
    %144 = arith.mulf %139, %143 : vector<8x8xf32>
    %145 = arith.truncf %144 : vector<8x8xf32> to vector<8x8xbf16>
    %cst_56 = arith.constant dense<0.000000e+00> : vector<8x8xf32>
    %146 = tpu.matmul %145, %130, %cst_56 {dimension_numbers = #tpu.dot_dimension_numbers<[1], [0], [0], [1], [0, 0, 1, 1], [], []>} : vector<8x8xbf16>, vector<8x8xbf16>, vector<8x8xf32> -> vector<8x8xf32>
    %147 = arith.truncf %146 : vector<8x8xf32> to vector<8x8xbf16>
    %148 = vector.extract_strided_slice %45 {offsets = [24, 0], sizes = [8, 32], strides = [1, 1]} : vector<32x32xbf16> to vector<8x32xbf16>
    %cst_57 = arith.constant dense<0.000000e+00> : vector<8x32xf32>
    %149 = tpu.matmul %147, %148, %cst_57 {dimension_numbers = #tpu.dot_dimension_numbers<[1], [0], [0], [1], [0, 0, 1, 1], [], []>} : vector<8x8xbf16>, vector<8x32xbf16>, vector<8x32xf32> -> vector<8x32xf32>
    %150 = arith.addf %124, %149 : vector<8x32xf32>
    %151 = vector.broadcast %47 : vector<1x32xf32> to vector<8x32xf32>
    %152 = arith.addf %150, %151 : vector<8x32xf32>
    %153 = arith.addf %1, %152 : vector<8x32xf32>
    %c0_58 = arith.constant 0 : index
    %c0_59 = arith.constant 0 : index
    %c0_60 = arith.constant 0 : index
    %154 = vector.load %arg11[%c0_58, %c0_59, %c0_60] : memref<2x1x32xf32, #tpu.memory_space<vmem>>, vector<1x1x32xf32>
    %155 = vector.shape_cast %154 : vector<1x1x32xf32> to vector<1x32xf32>
    %c0_61 = arith.constant 0 : index
    %c0_62 = arith.constant 0 : index
    %c0_63 = arith.constant 0 : index
    %156 = vector.load %arg12[%c0_61, %c0_62, %c0_63] : memref<2x1x32xf32, #tpu.memory_space<vmem>>, vector<1x1x32xf32>
    %157 = vector.shape_cast %156 : vector<1x1x32xf32> to vector<1x32xf32>
    %cst_64 = arith.constant dense<0.000000e+00> : vector<8xf32>
    %158 = vector.multi_reduction <add>, %153, %cst_64 [1] : vector<8x32xf32> to vector<8xf32>
    %159 = vector.shape_cast %158 : vector<8xf32> to vector<8x1xf32>
    %cst_65 = arith.constant 3.200000e+01 : f32
    %160 = vector.broadcast %cst_65 : f32 to vector<8x1xf32>
    %161 = arith.divf %159, %160 : vector<8x1xf32>
    %162 = vector.broadcast %161 : vector<8x1xf32> to vector<8x32xf32>
    %163 = arith.subf %153, %162 : vector<8x32xf32>
    %164 = arith.mulf %163, %163 : vector<8x32xf32>
    %cst_66 = arith.constant dense<0.000000e+00> : vector<8xf32>
    %165 = vector.multi_reduction <add>, %164, %cst_66 [1] : vector<8x32xf32> to vector<8xf32>
    %166 = vector.shape_cast %165 : vector<8xf32> to vector<8x1xf32>
    %cst_67 = arith.constant 0.0322580636 : f32
    %167 = vector.broadcast %cst_67 : f32 to vector<8x1xf32>
    %168 = arith.mulf %166, %167 : vector<8x1xf32>
    %169 = math.sqrt %168 : vector<8x1xf32>
    %cst_68 = arith.constant 9.99999997E-7 : f32
    %170 = vector.broadcast %cst_68 : f32 to vector<8x1xf32>
    %171 = arith.addf %169, %170 : vector<8x1xf32>
    %172 = tpu.reciprocal %171 {approx = true} : vector<8x1xf32> -> vector<8x1xf32>
    %173 = vector.broadcast %155 : vector<1x32xf32> to vector<8x32xf32>
    %174 = arith.mulf %173, %163 : vector<8x32xf32>
    %175 = vector.broadcast %172 : vector<8x1xf32> to vector<8x32xf32>
    %176 = arith.mulf %174, %175 : vector<8x32xf32>
    %177 = vector.broadcast %157 : vector<1x32xf32> to vector<8x32xf32>
    %178 = arith.addf %176, %177 : vector<8x32xf32>
    %c0_69 = arith.constant 0 : index
    %c0_70 = arith.constant 0 : index
    %c0_71 = arith.constant 0 : index
    %179 = vector.load %arg13[%c0_69, %c0_70, %c0_71] : memref<2x32x32xbf16, #tpu.memory_space<vmem>>, vector<1x32x32xbf16>
    %180 = vector.shape_cast %179 : vector<1x32x32xbf16> to vector<32x32xbf16>
    %181 = arith.truncf %178 : vector<8x32xf32> to vector<8x32xbf16>
    %cst_72 = arith.constant dense<0.000000e+00> : vector<8x32xf32>
    %182 = tpu.matmul %181, %180, %cst_72 {dimension_numbers = #tpu.dot_dimension_numbers<[1], [0], [0], [1], [0, 0, 1, 1], [], []>} : vector<8x32xbf16>, vector<32x32xbf16>, vector<8x32xf32> -> vector<8x32xf32>
    %c0_73 = arith.constant 0 : index
    %c0_74 = arith.constant 0 : index
    %c0_75 = arith.constant 0 : index
    %183 = vector.load %arg14[%c0_73, %c0_74, %c0_75] : memref<2x1x32xf32, #tpu.memory_space<vmem>>, vector<1x1x32xf32>
    %184 = vector.shape_cast %183 : vector<1x1x32xf32> to vector<1x32xf32>
    %185 = vector.broadcast %184 : vector<1x32xf32> to vector<8x32xf32>
    %186 = arith.addf %182, %185 : vector<8x32xf32>
    %c0_76 = arith.constant 0 : index
    %c0_77 = arith.constant 0 : index
    %c0_78 = arith.constant 0 : index
    %187 = vector.load %arg15[%c0_76, %c0_77, %c0_78] : memref<2x32x64xbf16, #tpu.memory_space<vmem>>, vector<1x32x64xbf16>
    %188 = vector.shape_cast %187 : vector<1x32x64xbf16> to vector<32x64xbf16>
    %189 = arith.truncf %3 : vector<8x32xf32> to vector<8x32xbf16>
    %cst_79 = arith.constant dense<0.000000e+00> : vector<8x64xf32>
    %190 = tpu.matmul %189, %188, %cst_79 {dimension_numbers = #tpu.dot_dimension_numbers<[1], [0], [0], [1], [0, 0, 1, 1], [], []>} : vector<8x32xbf16>, vector<32x64xbf16>, vector<8x64xf32> -> vector<8x64xf32>
    %c0_80 = arith.constant 0 : index
    %c0_81 = arith.constant 0 : index
    %c0_82 = arith.constant 0 : index
    %191 = vector.load %arg16[%c0_80, %c0_81, %c0_82] : memref<2x1x64xf32, #tpu.memory_space<vmem>>, vector<1x1x64xf32>
    %192 = vector.shape_cast %191 : vector<1x1x64xf32> to vector<1x64xf32>
    %193 = vector.broadcast %192 : vector<1x64xf32> to vector<8x64xf32>
    %194 = arith.addf %190, %193 : vector<8x64xf32>
    %195 = vector.extract_strided_slice %194 {offsets = [0, 0], sizes = [8, 32], strides = [1, 1]} : vector<8x64xf32> to vector<8x32xf32>
    %196 = vector.extract_strided_slice %194 {offsets = [0, 32], sizes = [8, 32], strides = [1, 1]} : vector<8x64xf32> to vector<8x32xf32>
    %c0_83 = arith.constant 0 : index
    %c0_84 = arith.constant 0 : index
    %c0_85 = arith.constant 0 : index
    %197 = vector.load %arg17[%c0_83, %c0_84, %c0_85] : memref<2x32x32xbf16, #tpu.memory_space<vmem>>, vector<1x32x32xbf16>
    %198 = vector.shape_cast %197 : vector<1x32x32xbf16> to vector<32x32xbf16>
    %c0_86 = arith.constant 0 : index
    %c0_87 = arith.constant 0 : index
    %c0_88 = arith.constant 0 : index
    %199 = vector.load %arg18[%c0_86, %c0_87, %c0_88] : memref<2x1x32xf32, #tpu.memory_space<vmem>>, vector<1x1x32xf32>
    %200 = vector.shape_cast %199 : vector<1x1x32xf32> to vector<1x32xf32>
    %201 = vector.extract_strided_slice %186 {offsets = [0, 0], sizes = [8, 8], strides = [1, 1]} : vector<8x32xf32> to vector<8x8xf32>
    %202 = arith.truncf %201 : vector<8x8xf32> to vector<8x8xbf16>
    %203 = vector.extract_strided_slice %195 {offsets = [0, 0], sizes = [8, 8], strides = [1, 1]} : vector<8x32xf32> to vector<8x8xf32>
    %204 = arith.truncf %203 : vector<8x8xf32> to vector<8x8xbf16>
    %205 = vector.extract_strided_slice %196 {offsets = [0, 0], sizes = [8, 8], strides = [1, 1]} : vector<8x32xf32> to vector<8x8xf32>
    %206 = arith.truncf %205 : vector<8x8xf32> to vector<8x8xbf16>
    "tpu.trace_start"() <{level = 10 : i32, message = "qd,kd->qk"}> : () -> ()
    %cst_89 = arith.constant dense<0.000000e+00> : vector<8x8xf32>
    %207 = tpu.matmul %202, %204, %cst_89 {dimension_numbers = #tpu.dot_dimension_numbers<[1], [1], [0], [0], [0, 0, 1, 0], [], []>} : vector<8x8xbf16>, vector<8x8xbf16>, vector<8x8xf32> -> vector<8x8xf32>
    "tpu.trace_stop"() : () -> ()
    %cst_90 = arith.constant 0.353553385 : f32
    %208 = vector.broadcast %cst_90 : f32 to vector<8x8xf32>
    %209 = arith.mulf %207, %208 : vector<8x8xf32>
    %210 = arith.addf %209, %7 : vector<8x8xf32>
    %cst_91 = arith.constant dense<0xFF800000> : vector<8xf32>
    %211 = vector.multi_reduction <maximumf>, %210, %cst_91 [1] : vector<8x8xf32> to vector<8xf32>
    %212 = vector.shape_cast %211 : vector<8xf32> to vector<8x1xf32>
    %213 = vector.broadcast %212 : vector<8x1xf32> to vector<8x8xf32>
    %214 = arith.subf %210, %213 : vector<8x8xf32>
    %215 = math.exp %214 : vector<8x8xf32>
    %cst_92 = arith.constant dense<0.000000e+00> : vector<8xf32>
    %216 = vector.multi_reduction <add>, %215, %cst_92 [1] : vector<8x8xf32> to vector<8xf32>
    %217 = vector.shape_cast %216 : vector<8xf32> to vector<8x1xf32>
    %218 = tpu.reciprocal %217 {approx = true} : vector<8x1xf32> -> vector<8x1xf32>
    %219 = vector.broadcast %218 : vector<8x1xf32> to vector<8x8xf32>
    %220 = arith.mulf %215, %219 : vector<8x8xf32>
    %221 = arith.truncf %220 : vector<8x8xf32> to vector<8x8xbf16>
    %cst_93 = arith.constant dense<0.000000e+00> : vector<8x8xf32>
    %222 = tpu.matmul %221, %206, %cst_93 {dimension_numbers = #tpu.dot_dimension_numbers<[1], [0], [0], [1], [0, 0, 1, 1], [], []>} : vector<8x8xbf16>, vector<8x8xbf16>, vector<8x8xf32> -> vector<8x8xf32>
    %223 = arith.truncf %222 : vector<8x8xf32> to vector<8x8xbf16>
    %224 = vector.extract_strided_slice %198 {offsets = [0, 0], sizes = [8, 32], strides = [1, 1]} : vector<32x32xbf16> to vector<8x32xbf16>
    %cst_94 = arith.constant dense<0.000000e+00> : vector<8x32xf32>
    %225 = tpu.matmul %223, %224, %cst_94 {dimension_numbers = #tpu.dot_dimension_numbers<[1], [0], [0], [1], [0, 0, 1, 1], [], []>} : vector<8x8xbf16>, vector<8x32xbf16>, vector<8x32xf32> -> vector<8x32xf32>
    %226 = vector.extract_strided_slice %186 {offsets = [0, 8], sizes = [8, 8], strides = [1, 1]} : vector<8x32xf32> to vector<8x8xf32>
    %227 = arith.truncf %226 : vector<8x8xf32> to vector<8x8xbf16>
    %228 = vector.extract_strided_slice %195 {offsets = [0, 8], sizes = [8, 8], strides = [1, 1]} : vector<8x32xf32> to vector<8x8xf32>
    %229 = arith.truncf %228 : vector<8x8xf32> to vector<8x8xbf16>
    %230 = vector.extract_strided_slice %196 {offsets = [0, 8], sizes = [8, 8], strides = [1, 1]} : vector<8x32xf32> to vector<8x8xf32>
    %231 = arith.truncf %230 : vector<8x8xf32> to vector<8x8xbf16>
    "tpu.trace_start"() <{level = 10 : i32, message = "qd,kd->qk"}> : () -> ()
    %cst_95 = arith.constant dense<0.000000e+00> : vector<8x8xf32>
    %232 = tpu.matmul %227, %229, %cst_95 {dimension_numbers = #tpu.dot_dimension_numbers<[1], [1], [0], [0], [0, 0, 1, 0], [], []>} : vector<8x8xbf16>, vector<8x8xbf16>, vector<8x8xf32> -> vector<8x8xf32>
    "tpu.trace_stop"() : () -> ()
    %cst_96 = arith.constant 0.353553385 : f32
    %233 = vector.broadcast %cst_96 : f32 to vector<8x8xf32>
    %234 = arith.mulf %232, %233 : vector<8x8xf32>
    %235 = arith.addf %234, %7 : vector<8x8xf32>
    %cst_97 = arith.constant dense<0xFF800000> : vector<8xf32>
    %236 = vector.multi_reduction <maximumf>, %235, %cst_97 [1] : vector<8x8xf32> to vector<8xf32>
    %237 = vector.shape_cast %236 : vector<8xf32> to vector<8x1xf32>
    %238 = vector.broadcast %237 : vector<8x1xf32> to vector<8x8xf32>
    %239 = arith.subf %235, %238 : vector<8x8xf32>
    %240 = math.exp %239 : vector<8x8xf32>
    %cst_98 = arith.constant dense<0.000000e+00> : vector<8xf32>
    %241 = vector.multi_reduction <add>, %240, %cst_98 [1] : vector<8x8xf32> to vector<8xf32>
    %242 = vector.shape_cast %241 : vector<8xf32> to vector<8x1xf32>
    %243 = tpu.reciprocal %242 {approx = true} : vector<8x1xf32> -> vector<8x1xf32>
    %244 = vector.broadcast %243 : vector<8x1xf32> to vector<8x8xf32>
    %245 = arith.mulf %240, %244 : vector<8x8xf32>
    %246 = arith.truncf %245 : vector<8x8xf32> to vector<8x8xbf16>
    %cst_99 = arith.constant dense<0.000000e+00> : vector<8x8xf32>
    %247 = tpu.matmul %246, %231, %cst_99 {dimension_numbers = #tpu.dot_dimension_numbers<[1], [0], [0], [1], [0, 0, 1, 1], [], []>} : vector<8x8xbf16>, vector<8x8xbf16>, vector<8x8xf32> -> vector<8x8xf32>
    %248 = arith.truncf %247 : vector<8x8xf32> to vector<8x8xbf16>
    %249 = vector.extract_strided_slice %198 {offsets = [8, 0], sizes = [8, 32], strides = [1, 1]} : vector<32x32xbf16> to vector<8x32xbf16>
    %cst_100 = arith.constant dense<0.000000e+00> : vector<8x32xf32>
    %250 = tpu.matmul %248, %249, %cst_100 {dimension_numbers = #tpu.dot_dimension_numbers<[1], [0], [0], [1], [0, 0, 1, 1], [], []>} : vector<8x8xbf16>, vector<8x32xbf16>, vector<8x32xf32> -> vector<8x32xf32>
    %251 = arith.addf %225, %250 : vector<8x32xf32>
    %252 = vector.extract_strided_slice %186 {offsets = [0, 16], sizes = [8, 8], strides = [1, 1]} : vector<8x32xf32> to vector<8x8xf32>
    %253 = arith.truncf %252 : vector<8x8xf32> to vector<8x8xbf16>
    %254 = vector.extract_strided_slice %195 {offsets = [0, 16], sizes = [8, 8], strides = [1, 1]} : vector<8x32xf32> to vector<8x8xf32>
    %255 = arith.truncf %254 : vector<8x8xf32> to vector<8x8xbf16>
    %256 = vector.extract_strided_slice %196 {offsets = [0, 16], sizes = [8, 8], strides = [1, 1]} : vector<8x32xf32> to vector<8x8xf32>
    %257 = arith.truncf %256 : vector<8x8xf32> to vector<8x8xbf16>
    "tpu.trace_start"() <{level = 10 : i32, message = "qd,kd->qk"}> : () -> ()
    %cst_101 = arith.constant dense<0.000000e+00> : vector<8x8xf32>
    %258 = tpu.matmul %253, %255, %cst_101 {dimension_numbers = #tpu.dot_dimension_numbers<[1], [1], [0], [0], [0, 0, 1, 0], [], []>} : vector<8x8xbf16>, vector<8x8xbf16>, vector<8x8xf32> -> vector<8x8xf32>
    "tpu.trace_stop"() : () -> ()
    %cst_102 = arith.constant 0.353553385 : f32
    %259 = vector.broadcast %cst_102 : f32 to vector<8x8xf32>
    %260 = arith.mulf %258, %259 : vector<8x8xf32>
    %261 = arith.addf %260, %7 : vector<8x8xf32>
    %cst_103 = arith.constant dense<0xFF800000> : vector<8xf32>
    %262 = vector.multi_reduction <maximumf>, %261, %cst_103 [1] : vector<8x8xf32> to vector<8xf32>
    %263 = vector.shape_cast %262 : vector<8xf32> to vector<8x1xf32>
    %264 = vector.broadcast %263 : vector<8x1xf32> to vector<8x8xf32>
    %265 = arith.subf %261, %264 : vector<8x8xf32>
    %266 = math.exp %265 : vector<8x8xf32>
    %cst_104 = arith.constant dense<0.000000e+00> : vector<8xf32>
    %267 = vector.multi_reduction <add>, %266, %cst_104 [1] : vector<8x8xf32> to vector<8xf32>
    %268 = vector.shape_cast %267 : vector<8xf32> to vector<8x1xf32>
    %269 = tpu.reciprocal %268 {approx = true} : vector<8x1xf32> -> vector<8x1xf32>
    %270 = vector.broadcast %269 : vector<8x1xf32> to vector<8x8xf32>
    %271 = arith.mulf %266, %270 : vector<8x8xf32>
    %272 = arith.truncf %271 : vector<8x8xf32> to vector<8x8xbf16>
    %cst_105 = arith.constant dense<0.000000e+00> : vector<8x8xf32>
    %273 = tpu.matmul %272, %257, %cst_105 {dimension_numbers = #tpu.dot_dimension_numbers<[1], [0], [0], [1], [0, 0, 1, 1], [], []>} : vector<8x8xbf16>, vector<8x8xbf16>, vector<8x8xf32> -> vector<8x8xf32>
    %274 = arith.truncf %273 : vector<8x8xf32> to vector<8x8xbf16>
    %275 = vector.extract_strided_slice %198 {offsets = [16, 0], sizes = [8, 32], strides = [1, 1]} : vector<32x32xbf16> to vector<8x32xbf16>
    %cst_106 = arith.constant dense<0.000000e+00> : vector<8x32xf32>
    %276 = tpu.matmul %274, %275, %cst_106 {dimension_numbers = #tpu.dot_dimension_numbers<[1], [0], [0], [1], [0, 0, 1, 1], [], []>} : vector<8x8xbf16>, vector<8x32xbf16>, vector<8x32xf32> -> vector<8x32xf32>
    %277 = arith.addf %251, %276 : vector<8x32xf32>
    %278 = vector.extract_strided_slice %186 {offsets = [0, 24], sizes = [8, 8], strides = [1, 1]} : vector<8x32xf32> to vector<8x8xf32>
    %279 = arith.truncf %278 : vector<8x8xf32> to vector<8x8xbf16>
    %280 = vector.extract_strided_slice %195 {offsets = [0, 24], sizes = [8, 8], strides = [1, 1]} : vector<8x32xf32> to vector<8x8xf32>
    %281 = arith.truncf %280 : vector<8x8xf32> to vector<8x8xbf16>
    %282 = vector.extract_strided_slice %196 {offsets = [0, 24], sizes = [8, 8], strides = [1, 1]} : vector<8x32xf32> to vector<8x8xf32>
    %283 = arith.truncf %282 : vector<8x8xf32> to vector<8x8xbf16>
    "tpu.trace_start"() <{level = 10 : i32, message = "qd,kd->qk"}> : () -> ()
    %cst_107 = arith.constant dense<0.000000e+00> : vector<8x8xf32>
    %284 = tpu.matmul %279, %281, %cst_107 {dimension_numbers = #tpu.dot_dimension_numbers<[1], [1], [0], [0], [0, 0, 1, 0], [], []>} : vector<8x8xbf16>, vector<8x8xbf16>, vector<8x8xf32> -> vector<8x8xf32>
    "tpu.trace_stop"() : () -> ()
    %cst_108 = arith.constant 0.353553385 : f32
    %285 = vector.broadcast %cst_108 : f32 to vector<8x8xf32>
    %286 = arith.mulf %284, %285 : vector<8x8xf32>
    %287 = arith.addf %286, %7 : vector<8x8xf32>
    %cst_109 = arith.constant dense<0xFF800000> : vector<8xf32>
    %288 = vector.multi_reduction <maximumf>, %287, %cst_109 [1] : vector<8x8xf32> to vector<8xf32>
    %289 = vector.shape_cast %288 : vector<8xf32> to vector<8x1xf32>
    %290 = vector.broadcast %289 : vector<8x1xf32> to vector<8x8xf32>
    %291 = arith.subf %287, %290 : vector<8x8xf32>
    %292 = math.exp %291 : vector<8x8xf32>
    %cst_110 = arith.constant dense<0.000000e+00> : vector<8xf32>
    %293 = vector.multi_reduction <add>, %292, %cst_110 [1] : vector<8x8xf32> to vector<8xf32>
    %294 = vector.shape_cast %293 : vector<8xf32> to vector<8x1xf32>
    %295 = tpu.reciprocal %294 {approx = true} : vector<8x1xf32> -> vector<8x1xf32>
    %296 = vector.broadcast %295 : vector<8x1xf32> to vector<8x8xf32>
    %297 = arith.mulf %292, %296 : vector<8x8xf32>
    %298 = arith.truncf %297 : vector<8x8xf32> to vector<8x8xbf16>
    %cst_111 = arith.constant dense<0.000000e+00> : vector<8x8xf32>
    %299 = tpu.matmul %298, %283, %cst_111 {dimension_numbers = #tpu.dot_dimension_numbers<[1], [0], [0], [1], [0, 0, 1, 1], [], []>} : vector<8x8xbf16>, vector<8x8xbf16>, vector<8x8xf32> -> vector<8x8xf32>
    %300 = arith.truncf %299 : vector<8x8xf32> to vector<8x8xbf16>
    %301 = vector.extract_strided_slice %198 {offsets = [24, 0], sizes = [8, 32], strides = [1, 1]} : vector<32x32xbf16> to vector<8x32xbf16>
    %cst_112 = arith.constant dense<0.000000e+00> : vector<8x32xf32>
    %302 = tpu.matmul %300, %301, %cst_112 {dimension_numbers = #tpu.dot_dimension_numbers<[1], [0], [0], [1], [0, 0, 1, 1], [], []>} : vector<8x8xbf16>, vector<8x32xbf16>, vector<8x32xf32> -> vector<8x32xf32>
    %303 = arith.addf %277, %302 : vector<8x32xf32>
    %304 = vector.broadcast %200 : vector<1x32xf32> to vector<8x32xf32>
    %305 = arith.addf %303, %304 : vector<8x32xf32>
    %306 = arith.addf %153, %305 : vector<8x32xf32>
    %c0_113 = arith.constant 0 : index
    %c0_114 = arith.constant 0 : index
    %c0_115 = arith.constant 0 : index
    %307 = vector.load %arg19[%c0_113, %c0_114, %c0_115] : memref<2x1x32xf32, #tpu.memory_space<vmem>>, vector<1x1x32xf32>
    %308 = vector.shape_cast %307 : vector<1x1x32xf32> to vector<1x32xf32>
    %c0_116 = arith.constant 0 : index
    %c0_117 = arith.constant 0 : index
    %c0_118 = arith.constant 0 : index
    %309 = vector.load %arg20[%c0_116, %c0_117, %c0_118] : memref<2x1x32xf32, #tpu.memory_space<vmem>>, vector<1x1x32xf32>
    %310 = vector.shape_cast %309 : vector<1x1x32xf32> to vector<1x32xf32>
    %cst_119 = arith.constant dense<0.000000e+00> : vector<8xf32>
    %311 = vector.multi_reduction <add>, %306, %cst_119 [1] : vector<8x32xf32> to vector<8xf32>
    %312 = vector.shape_cast %311 : vector<8xf32> to vector<8x1xf32>
    %cst_120 = arith.constant 3.200000e+01 : f32
    %313 = vector.broadcast %cst_120 : f32 to vector<8x1xf32>
    %314 = arith.divf %312, %313 : vector<8x1xf32>
    %315 = vector.broadcast %314 : vector<8x1xf32> to vector<8x32xf32>
    %316 = arith.subf %306, %315 : vector<8x32xf32>
    %317 = arith.mulf %316, %316 : vector<8x32xf32>
    %cst_121 = arith.constant dense<0.000000e+00> : vector<8xf32>
    %318 = vector.multi_reduction <add>, %317, %cst_121 [1] : vector<8x32xf32> to vector<8xf32>
    %319 = vector.shape_cast %318 : vector<8xf32> to vector<8x1xf32>
    %cst_122 = arith.constant 0.0322580636 : f32
    %320 = vector.broadcast %cst_122 : f32 to vector<8x1xf32>
    %321 = arith.mulf %319, %320 : vector<8x1xf32>
    %322 = math.sqrt %321 : vector<8x1xf32>
    %cst_123 = arith.constant 9.99999997E-7 : f32
    %323 = vector.broadcast %cst_123 : f32 to vector<8x1xf32>
    %324 = arith.addf %322, %323 : vector<8x1xf32>
    %325 = tpu.reciprocal %324 {approx = true} : vector<8x1xf32> -> vector<8x1xf32>
    %326 = vector.broadcast %308 : vector<1x32xf32> to vector<8x32xf32>
    %327 = arith.mulf %326, %316 : vector<8x32xf32>
    %328 = vector.broadcast %325 : vector<8x1xf32> to vector<8x32xf32>
    %329 = arith.mulf %327, %328 : vector<8x32xf32>
    %330 = vector.broadcast %310 : vector<1x32xf32> to vector<8x32xf32>
    %331 = arith.addf %329, %330 : vector<8x32xf32>
    %c0_124 = arith.constant 0 : index
    %c0_125 = arith.constant 0 : index
    %c0_126 = arith.constant 0 : index
    %332 = vector.load %arg21[%c0_124, %c0_125, %c0_126] : memref<2x32x64xbf16, #tpu.memory_space<vmem>>, vector<1x32x64xbf16>
    %333 = vector.shape_cast %332 : vector<1x32x64xbf16> to vector<32x64xbf16>
    %334 = arith.truncf %331 : vector<8x32xf32> to vector<8x32xbf16>
    %cst_127 = arith.constant dense<0.000000e+00> : vector<8x64xf32>
    %335 = tpu.matmul %334, %333, %cst_127 {dimension_numbers = #tpu.dot_dimension_numbers<[1], [0], [0], [1], [0, 0, 1, 1], [], []>} : vector<8x32xbf16>, vector<32x64xbf16>, vector<8x64xf32> -> vector<8x64xf32>
    %c0_128 = arith.constant 0 : index
    %c0_129 = arith.constant 0 : index
    %c0_130 = arith.constant 0 : index
    %336 = vector.load %arg22[%c0_128, %c0_129, %c0_130] : memref<2x1x64xf32, #tpu.memory_space<vmem>>, vector<1x1x64xf32>
    %337 = vector.shape_cast %336 : vector<1x1x64xf32> to vector<1x64xf32>
    %338 = vector.broadcast %337 : vector<1x64xf32> to vector<8x64xf32>
    %339 = arith.addf %335, %338 : vector<8x64xf32>
    %cst_131 = arith.constant 0.000000e+00 : f32
    %340 = vector.broadcast %cst_131 : f32 to vector<8x64xf32>
    %341 = arith.maximumf %339, %340 : vector<8x64xf32>
    %c0_132 = arith.constant 0 : index
    %c0_133 = arith.constant 0 : index
    %c0_134 = arith.constant 0 : index
    %342 = vector.load %arg23[%c0_132, %c0_133, %c0_134] : memref<2x64x32xbf16, #tpu.memory_space<vmem>>, vector<1x64x32xbf16>
    %343 = vector.shape_cast %342 : vector<1x64x32xbf16> to vector<64x32xbf16>
    %344 = arith.truncf %341 : vector<8x64xf32> to vector<8x64xbf16>
    %cst_135 = arith.constant dense<0.000000e+00> : vector<8x32xf32>
    %345 = tpu.matmul %344, %343, %cst_135 {dimension_numbers = #tpu.dot_dimension_numbers<[1], [0], [0], [1], [0, 0, 1, 1], [], []>} : vector<8x64xbf16>, vector<64x32xbf16>, vector<8x32xf32> -> vector<8x32xf32>
    %346 = arith.addf %306, %345 : vector<8x32xf32>
    %c0_136 = arith.constant 0 : index
    %c0_137 = arith.constant 0 : index
    %c0_138 = arith.constant 0 : index
    %347 = vector.load %arg24[%c0_136, %c0_137, %c0_138] : memref<2x1x32xf32, #tpu.memory_space<vmem>>, vector<1x1x32xf32>
    %348 = vector.shape_cast %347 : vector<1x1x32xf32> to vector<1x32xf32>
    %349 = vector.broadcast %348 : vector<1x32xf32> to vector<8x32xf32>
    %350 = arith.addf %346, %349 : vector<8x32xf32>
    %c1 = arith.constant 1 : index
    %c0_139 = arith.constant 0 : index
    %c0_140 = arith.constant 0 : index
    %351 = vector.load %arg5[%c1, %c0_139, %c0_140] : memref<2x1x32xf32, #tpu.memory_space<vmem>>, vector<1x1x32xf32>
    %352 = vector.shape_cast %351 : vector<1x1x32xf32> to vector<1x32xf32>
    %c1_141 = arith.constant 1 : index
    %c0_142 = arith.constant 0 : index
    %c0_143 = arith.constant 0 : index
    %353 = vector.load %arg6[%c1_141, %c0_142, %c0_143] : memref<2x1x32xf32, #tpu.memory_space<vmem>>, vector<1x1x32xf32>
    %354 = vector.shape_cast %353 : vector<1x1x32xf32> to vector<1x32xf32>
    %cst_144 = arith.constant dense<0.000000e+00> : vector<8xf32>
    %355 = vector.multi_reduction <add>, %350, %cst_144 [1] : vector<8x32xf32> to vector<8xf32>
    %356 = vector.shape_cast %355 : vector<8xf32> to vector<8x1xf32>
    %cst_145 = arith.constant 3.200000e+01 : f32
    %357 = vector.broadcast %cst_145 : f32 to vector<8x1xf32>
    %358 = arith.divf %356, %357 : vector<8x1xf32>
    %359 = vector.broadcast %358 : vector<8x1xf32> to vector<8x32xf32>
    %360 = arith.subf %350, %359 : vector<8x32xf32>
    %361 = arith.mulf %360, %360 : vector<8x32xf32>
    %cst_146 = arith.constant dense<0.000000e+00> : vector<8xf32>
    %362 = vector.multi_reduction <add>, %361, %cst_146 [1] : vector<8x32xf32> to vector<8xf32>
    %363 = vector.shape_cast %362 : vector<8xf32> to vector<8x1xf32>
    %cst_147 = arith.constant 0.0322580636 : f32
    %364 = vector.broadcast %cst_147 : f32 to vector<8x1xf32>
    %365 = arith.mulf %363, %364 : vector<8x1xf32>
    %366 = math.sqrt %365 : vector<8x1xf32>
    %cst_148 = arith.constant 9.99999997E-7 : f32
    %367 = vector.broadcast %cst_148 : f32 to vector<8x1xf32>
    %368 = arith.addf %366, %367 : vector<8x1xf32>
    %369 = tpu.reciprocal %368 {approx = true} : vector<8x1xf32> -> vector<8x1xf32>
    %370 = vector.broadcast %352 : vector<1x32xf32> to vector<8x32xf32>
    %371 = arith.mulf %370, %360 : vector<8x32xf32>
    %372 = vector.broadcast %369 : vector<8x1xf32> to vector<8x32xf32>
    %373 = arith.mulf %371, %372 : vector<8x32xf32>
    %374 = vector.broadcast %354 : vector<1x32xf32> to vector<8x32xf32>
    %375 = arith.addf %373, %374 : vector<8x32xf32>
    %c1_149 = arith.constant 1 : index
    %c0_150 = arith.constant 0 : index
    %c0_151 = arith.constant 0 : index
    %376 = vector.load %arg7[%c1_149, %c0_150, %c0_151] : memref<2x32x96xbf16, #tpu.memory_space<vmem>>, vector<1x32x96xbf16>
    %377 = vector.shape_cast %376 : vector<1x32x96xbf16> to vector<32x96xbf16>
    %378 = arith.truncf %375 : vector<8x32xf32> to vector<8x32xbf16>
    %cst_152 = arith.constant dense<0.000000e+00> : vector<8x96xf32>
    %379 = tpu.matmul %378, %377, %cst_152 {dimension_numbers = #tpu.dot_dimension_numbers<[1], [0], [0], [1], [0, 0, 1, 1], [], []>} : vector<8x32xbf16>, vector<32x96xbf16>, vector<8x96xf32> -> vector<8x96xf32>
    %c1_153 = arith.constant 1 : index
    %c0_154 = arith.constant 0 : index
    %c0_155 = arith.constant 0 : index
    %380 = vector.load %arg8[%c1_153, %c0_154, %c0_155] : memref<2x1x96xf32, #tpu.memory_space<vmem>>, vector<1x1x96xf32>
    %381 = vector.shape_cast %380 : vector<1x1x96xf32> to vector<1x96xf32>
    %382 = vector.broadcast %381 : vector<1x96xf32> to vector<8x96xf32>
    %383 = arith.addf %379, %382 : vector<8x96xf32>
    %384 = vector.extract_strided_slice %383 {offsets = [0, 0], sizes = [8, 32], strides = [1, 1]} : vector<8x96xf32> to vector<8x32xf32>
    %385 = vector.extract_strided_slice %383 {offsets = [0, 32], sizes = [8, 32], strides = [1, 1]} : vector<8x96xf32> to vector<8x32xf32>
    %386 = vector.extract_strided_slice %383 {offsets = [0, 64], sizes = [8, 32], strides = [1, 1]} : vector<8x96xf32> to vector<8x32xf32>
    %c1_156 = arith.constant 1 : index
    %c0_157 = arith.constant 0 : index
    %c0_158 = arith.constant 0 : index
    %387 = vector.load %arg9[%c1_156, %c0_157, %c0_158] : memref<2x32x32xbf16, #tpu.memory_space<vmem>>, vector<1x32x32xbf16>
    %388 = vector.shape_cast %387 : vector<1x32x32xbf16> to vector<32x32xbf16>
    %c1_159 = arith.constant 1 : index
    %c0_160 = arith.constant 0 : index
    %c0_161 = arith.constant 0 : index
    %389 = vector.load %arg10[%c1_159, %c0_160, %c0_161] : memref<2x1x32xf32, #tpu.memory_space<vmem>>, vector<1x1x32xf32>
    %390 = vector.shape_cast %389 : vector<1x1x32xf32> to vector<1x32xf32>
    %391 = vector.extract_strided_slice %384 {offsets = [0, 0], sizes = [8, 8], strides = [1, 1]} : vector<8x32xf32> to vector<8x8xf32>
    %392 = arith.truncf %391 : vector<8x8xf32> to vector<8x8xbf16>
    %393 = vector.extract_strided_slice %385 {offsets = [0, 0], sizes = [8, 8], strides = [1, 1]} : vector<8x32xf32> to vector<8x8xf32>
    %394 = arith.truncf %393 : vector<8x8xf32> to vector<8x8xbf16>
    %395 = vector.extract_strided_slice %386 {offsets = [0, 0], sizes = [8, 8], strides = [1, 1]} : vector<8x32xf32> to vector<8x8xf32>
    %396 = arith.truncf %395 : vector<8x8xf32> to vector<8x8xbf16>
    "tpu.trace_start"() <{level = 10 : i32, message = "qd,kd->qk"}> : () -> ()
    %cst_162 = arith.constant dense<0.000000e+00> : vector<8x8xf32>
    %397 = tpu.matmul %392, %394, %cst_162 {dimension_numbers = #tpu.dot_dimension_numbers<[1], [1], [0], [0], [0, 0, 1, 0], [], []>} : vector<8x8xbf16>, vector<8x8xbf16>, vector<8x8xf32> -> vector<8x8xf32>
    "tpu.trace_stop"() : () -> ()
    %cst_163 = arith.constant 0.353553385 : f32
    %398 = vector.broadcast %cst_163 : f32 to vector<8x8xf32>
    %399 = arith.mulf %397, %398 : vector<8x8xf32>
    %400 = arith.addf %399, %5 : vector<8x8xf32>
    %cst_164 = arith.constant dense<0xFF800000> : vector<8xf32>
    %401 = vector.multi_reduction <maximumf>, %400, %cst_164 [1] : vector<8x8xf32> to vector<8xf32>
    %402 = vector.shape_cast %401 : vector<8xf32> to vector<8x1xf32>
    %403 = vector.broadcast %402 : vector<8x1xf32> to vector<8x8xf32>
    %404 = arith.subf %400, %403 : vector<8x8xf32>
    %405 = math.exp %404 : vector<8x8xf32>
    %cst_165 = arith.constant dense<0.000000e+00> : vector<8xf32>
    %406 = vector.multi_reduction <add>, %405, %cst_165 [1] : vector<8x8xf32> to vector<8xf32>
    %407 = vector.shape_cast %406 : vector<8xf32> to vector<8x1xf32>
    %408 = tpu.reciprocal %407 {approx = true} : vector<8x1xf32> -> vector<8x1xf32>
    %409 = vector.broadcast %408 : vector<8x1xf32> to vector<8x8xf32>
    %410 = arith.mulf %405, %409 : vector<8x8xf32>
    %411 = arith.truncf %410 : vector<8x8xf32> to vector<8x8xbf16>
    %cst_166 = arith.constant dense<0.000000e+00> : vector<8x8xf32>
    %412 = tpu.matmul %411, %396, %cst_166 {dimension_numbers = #tpu.dot_dimension_numbers<[1], [0], [0], [1], [0, 0, 1, 1], [], []>} : vector<8x8xbf16>, vector<8x8xbf16>, vector<8x8xf32> -> vector<8x8xf32>
    %413 = arith.truncf %412 : vector<8x8xf32> to vector<8x8xbf16>
    %414 = vector.extract_strided_slice %388 {offsets = [0, 0], sizes = [8, 32], strides = [1, 1]} : vector<32x32xbf16> to vector<8x32xbf16>
    %cst_167 = arith.constant dense<0.000000e+00> : vector<8x32xf32>
    %415 = tpu.matmul %413, %414, %cst_167 {dimension_numbers = #tpu.dot_dimension_numbers<[1], [0], [0], [1], [0, 0, 1, 1], [], []>} : vector<8x8xbf16>, vector<8x32xbf16>, vector<8x32xf32> -> vector<8x32xf32>
    %416 = vector.extract_strided_slice %384 {offsets = [0, 8], sizes = [8, 8], strides = [1, 1]} : vector<8x32xf32> to vector<8x8xf32>
    %417 = arith.truncf %416 : vector<8x8xf32> to vector<8x8xbf16>
    %418 = vector.extract_strided_slice %385 {offsets = [0, 8], sizes = [8, 8], strides = [1, 1]} : vector<8x32xf32> to vector<8x8xf32>
    %419 = arith.truncf %418 : vector<8x8xf32> to vector<8x8xbf16>
    %420 = vector.extract_strided_slice %386 {offsets = [0, 8], sizes = [8, 8], strides = [1, 1]} : vector<8x32xf32> to vector<8x8xf32>
    %421 = arith.truncf %420 : vector<8x8xf32> to vector<8x8xbf16>
    "tpu.trace_start"() <{level = 10 : i32, message = "qd,kd->qk"}> : () -> ()
    %cst_168 = arith.constant dense<0.000000e+00> : vector<8x8xf32>
    %422 = tpu.matmul %417, %419, %cst_168 {dimension_numbers = #tpu.dot_dimension_numbers<[1], [1], [0], [0], [0, 0, 1, 0], [], []>} : vector<8x8xbf16>, vector<8x8xbf16>, vector<8x8xf32> -> vector<8x8xf32>
    "tpu.trace_stop"() : () -> ()
    %cst_169 = arith.constant 0.353553385 : f32
    %423 = vector.broadcast %cst_169 : f32 to vector<8x8xf32>
    %424 = arith.mulf %422, %423 : vector<8x8xf32>
    %425 = arith.addf %424, %5 : vector<8x8xf32>
    %cst_170 = arith.constant dense<0xFF800000> : vector<8xf32>
    %426 = vector.multi_reduction <maximumf>, %425, %cst_170 [1] : vector<8x8xf32> to vector<8xf32>
    %427 = vector.shape_cast %426 : vector<8xf32> to vector<8x1xf32>
    %428 = vector.broadcast %427 : vector<8x1xf32> to vector<8x8xf32>
    %429 = arith.subf %425, %428 : vector<8x8xf32>
    %430 = math.exp %429 : vector<8x8xf32>
    %cst_171 = arith.constant dense<0.000000e+00> : vector<8xf32>
    %431 = vector.multi_reduction <add>, %430, %cst_171 [1] : vector<8x8xf32> to vector<8xf32>
    %432 = vector.shape_cast %431 : vector<8xf32> to vector<8x1xf32>
    %433 = tpu.reciprocal %432 {approx = true} : vector<8x1xf32> -> vector<8x1xf32>
    %434 = vector.broadcast %433 : vector<8x1xf32> to vector<8x8xf32>
    %435 = arith.mulf %430, %434 : vector<8x8xf32>
    %436 = arith.truncf %435 : vector<8x8xf32> to vector<8x8xbf16>
    %cst_172 = arith.constant dense<0.000000e+00> : vector<8x8xf32>
    %437 = tpu.matmul %436, %421, %cst_172 {dimension_numbers = #tpu.dot_dimension_numbers<[1], [0], [0], [1], [0, 0, 1, 1], [], []>} : vector<8x8xbf16>, vector<8x8xbf16>, vector<8x8xf32> -> vector<8x8xf32>
    %438 = arith.truncf %437 : vector<8x8xf32> to vector<8x8xbf16>
    %439 = vector.extract_strided_slice %388 {offsets = [8, 0], sizes = [8, 32], strides = [1, 1]} : vector<32x32xbf16> to vector<8x32xbf16>
    %cst_173 = arith.constant dense<0.000000e+00> : vector<8x32xf32>
    %440 = tpu.matmul %438, %439, %cst_173 {dimension_numbers = #tpu.dot_dimension_numbers<[1], [0], [0], [1], [0, 0, 1, 1], [], []>} : vector<8x8xbf16>, vector<8x32xbf16>, vector<8x32xf32> -> vector<8x32xf32>
    %441 = arith.addf %415, %440 : vector<8x32xf32>
    %442 = vector.extract_strided_slice %384 {offsets = [0, 16], sizes = [8, 8], strides = [1, 1]} : vector<8x32xf32> to vector<8x8xf32>
    %443 = arith.truncf %442 : vector<8x8xf32> to vector<8x8xbf16>
    %444 = vector.extract_strided_slice %385 {offsets = [0, 16], sizes = [8, 8], strides = [1, 1]} : vector<8x32xf32> to vector<8x8xf32>
    %445 = arith.truncf %444 : vector<8x8xf32> to vector<8x8xbf16>
    %446 = vector.extract_strided_slice %386 {offsets = [0, 16], sizes = [8, 8], strides = [1, 1]} : vector<8x32xf32> to vector<8x8xf32>
    %447 = arith.truncf %446 : vector<8x8xf32> to vector<8x8xbf16>
    "tpu.trace_start"() <{level = 10 : i32, message = "qd,kd->qk"}> : () -> ()
    %cst_174 = arith.constant dense<0.000000e+00> : vector<8x8xf32>
    %448 = tpu.matmul %443, %445, %cst_174 {dimension_numbers = #tpu.dot_dimension_numbers<[1], [1], [0], [0], [0, 0, 1, 0], [], []>} : vector<8x8xbf16>, vector<8x8xbf16>, vector<8x8xf32> -> vector<8x8xf32>
    "tpu.trace_stop"() : () -> ()
    %cst_175 = arith.constant 0.353553385 : f32
    %449 = vector.broadcast %cst_175 : f32 to vector<8x8xf32>
    %450 = arith.mulf %448, %449 : vector<8x8xf32>
    %451 = arith.addf %450, %5 : vector<8x8xf32>
    %cst_176 = arith.constant dense<0xFF800000> : vector<8xf32>
    %452 = vector.multi_reduction <maximumf>, %451, %cst_176 [1] : vector<8x8xf32> to vector<8xf32>
    %453 = vector.shape_cast %452 : vector<8xf32> to vector<8x1xf32>
    %454 = vector.broadcast %453 : vector<8x1xf32> to vector<8x8xf32>
    %455 = arith.subf %451, %454 : vector<8x8xf32>
    %456 = math.exp %455 : vector<8x8xf32>
    %cst_177 = arith.constant dense<0.000000e+00> : vector<8xf32>
    %457 = vector.multi_reduction <add>, %456, %cst_177 [1] : vector<8x8xf32> to vector<8xf32>
    %458 = vector.shape_cast %457 : vector<8xf32> to vector<8x1xf32>
    %459 = tpu.reciprocal %458 {approx = true} : vector<8x1xf32> -> vector<8x1xf32>
    %460 = vector.broadcast %459 : vector<8x1xf32> to vector<8x8xf32>
    %461 = arith.mulf %456, %460 : vector<8x8xf32>
    %462 = arith.truncf %461 : vector<8x8xf32> to vector<8x8xbf16>
    %cst_178 = arith.constant dense<0.000000e+00> : vector<8x8xf32>
    %463 = tpu.matmul %462, %447, %cst_178 {dimension_numbers = #tpu.dot_dimension_numbers<[1], [0], [0], [1], [0, 0, 1, 1], [], []>} : vector<8x8xbf16>, vector<8x8xbf16>, vector<8x8xf32> -> vector<8x8xf32>
    %464 = arith.truncf %463 : vector<8x8xf32> to vector<8x8xbf16>
    %465 = vector.extract_strided_slice %388 {offsets = [16, 0], sizes = [8, 32], strides = [1, 1]} : vector<32x32xbf16> to vector<8x32xbf16>
    %cst_179 = arith.constant dense<0.000000e+00> : vector<8x32xf32>
    %466 = tpu.matmul %464, %465, %cst_179 {dimension_numbers = #tpu.dot_dimension_numbers<[1], [0], [0], [1], [0, 0, 1, 1], [], []>} : vector<8x8xbf16>, vector<8x32xbf16>, vector<8x32xf32> -> vector<8x32xf32>
    %467 = arith.addf %441, %466 : vector<8x32xf32>
    %468 = vector.extract_strided_slice %384 {offsets = [0, 24], sizes = [8, 8], strides = [1, 1]} : vector<8x32xf32> to vector<8x8xf32>
    %469 = arith.truncf %468 : vector<8x8xf32> to vector<8x8xbf16>
    %470 = vector.extract_strided_slice %385 {offsets = [0, 24], sizes = [8, 8], strides = [1, 1]} : vector<8x32xf32> to vector<8x8xf32>
    %471 = arith.truncf %470 : vector<8x8xf32> to vector<8x8xbf16>
    %472 = vector.extract_strided_slice %386 {offsets = [0, 24], sizes = [8, 8], strides = [1, 1]} : vector<8x32xf32> to vector<8x8xf32>
    %473 = arith.truncf %472 : vector<8x8xf32> to vector<8x8xbf16>
    "tpu.trace_start"() <{level = 10 : i32, message = "qd,kd->qk"}> : () -> ()
    %cst_180 = arith.constant dense<0.000000e+00> : vector<8x8xf32>
    %474 = tpu.matmul %469, %471, %cst_180 {dimension_numbers = #tpu.dot_dimension_numbers<[1], [1], [0], [0], [0, 0, 1, 0], [], []>} : vector<8x8xbf16>, vector<8x8xbf16>, vector<8x8xf32> -> vector<8x8xf32>
    "tpu.trace_stop"() : () -> ()
    %cst_181 = arith.constant 0.353553385 : f32
    %475 = vector.broadcast %cst_181 : f32 to vector<8x8xf32>
    %476 = arith.mulf %474, %475 : vector<8x8xf32>
    %477 = arith.addf %476, %5 : vector<8x8xf32>
    %cst_182 = arith.constant dense<0xFF800000> : vector<8xf32>
    %478 = vector.multi_reduction <maximumf>, %477, %cst_182 [1] : vector<8x8xf32> to vector<8xf32>
    %479 = vector.shape_cast %478 : vector<8xf32> to vector<8x1xf32>
    %480 = vector.broadcast %479 : vector<8x1xf32> to vector<8x8xf32>
    %481 = arith.subf %477, %480 : vector<8x8xf32>
    %482 = math.exp %481 : vector<8x8xf32>
    %cst_183 = arith.constant dense<0.000000e+00> : vector<8xf32>
    %483 = vector.multi_reduction <add>, %482, %cst_183 [1] : vector<8x8xf32> to vector<8xf32>
    %484 = vector.shape_cast %483 : vector<8xf32> to vector<8x1xf32>
    %485 = tpu.reciprocal %484 {approx = true} : vector<8x1xf32> -> vector<8x1xf32>
    %486 = vector.broadcast %485 : vector<8x1xf32> to vector<8x8xf32>
    %487 = arith.mulf %482, %486 : vector<8x8xf32>
    %488 = arith.truncf %487 : vector<8x8xf32> to vector<8x8xbf16>
    %cst_184 = arith.constant dense<0.000000e+00> : vector<8x8xf32>
    %489 = tpu.matmul %488, %473, %cst_184 {dimension_numbers = #tpu.dot_dimension_numbers<[1], [0], [0], [1], [0, 0, 1, 1], [], []>} : vector<8x8xbf16>, vector<8x8xbf16>, vector<8x8xf32> -> vector<8x8xf32>
    %490 = arith.truncf %489 : vector<8x8xf32> to vector<8x8xbf16>
    %491 = vector.extract_strided_slice %388 {offsets = [24, 0], sizes = [8, 32], strides = [1, 1]} : vector<32x32xbf16> to vector<8x32xbf16>
    %cst_185 = arith.constant dense<0.000000e+00> : vector<8x32xf32>
    %492 = tpu.matmul %490, %491, %cst_185 {dimension_numbers = #tpu.dot_dimension_numbers<[1], [0], [0], [1], [0, 0, 1, 1], [], []>} : vector<8x8xbf16>, vector<8x32xbf16>, vector<8x32xf32> -> vector<8x32xf32>
    %493 = arith.addf %467, %492 : vector<8x32xf32>
    %494 = vector.broadcast %390 : vector<1x32xf32> to vector<8x32xf32>
    %495 = arith.addf %493, %494 : vector<8x32xf32>
    %496 = arith.addf %350, %495 : vector<8x32xf32>
    %c1_186 = arith.constant 1 : index
    %c0_187 = arith.constant 0 : index
    %c0_188 = arith.constant 0 : index
    %497 = vector.load %arg11[%c1_186, %c0_187, %c0_188] : memref<2x1x32xf32, #tpu.memory_space<vmem>>, vector<1x1x32xf32>
    %498 = vector.shape_cast %497 : vector<1x1x32xf32> to vector<1x32xf32>
    %c1_189 = arith.constant 1 : index
    %c0_190 = arith.constant 0 : index
    %c0_191 = arith.constant 0 : index
    %499 = vector.load %arg12[%c1_189, %c0_190, %c0_191] : memref<2x1x32xf32, #tpu.memory_space<vmem>>, vector<1x1x32xf32>
    %500 = vector.shape_cast %499 : vector<1x1x32xf32> to vector<1x32xf32>
    %cst_192 = arith.constant dense<0.000000e+00> : vector<8xf32>
    %501 = vector.multi_reduction <add>, %496, %cst_192 [1] : vector<8x32xf32> to vector<8xf32>
    %502 = vector.shape_cast %501 : vector<8xf32> to vector<8x1xf32>
    %cst_193 = arith.constant 3.200000e+01 : f32
    %503 = vector.broadcast %cst_193 : f32 to vector<8x1xf32>
    %504 = arith.divf %502, %503 : vector<8x1xf32>
    %505 = vector.broadcast %504 : vector<8x1xf32> to vector<8x32xf32>
    %506 = arith.subf %496, %505 : vector<8x32xf32>
    %507 = arith.mulf %506, %506 : vector<8x32xf32>
    %cst_194 = arith.constant dense<0.000000e+00> : vector<8xf32>
    %508 = vector.multi_reduction <add>, %507, %cst_194 [1] : vector<8x32xf32> to vector<8xf32>
    %509 = vector.shape_cast %508 : vector<8xf32> to vector<8x1xf32>
    %cst_195 = arith.constant 0.0322580636 : f32
    %510 = vector.broadcast %cst_195 : f32 to vector<8x1xf32>
    %511 = arith.mulf %509, %510 : vector<8x1xf32>
    %512 = math.sqrt %511 : vector<8x1xf32>
    %cst_196 = arith.constant 9.99999997E-7 : f32
    %513 = vector.broadcast %cst_196 : f32 to vector<8x1xf32>
    %514 = arith.addf %512, %513 : vector<8x1xf32>
    %515 = tpu.reciprocal %514 {approx = true} : vector<8x1xf32> -> vector<8x1xf32>
    %516 = vector.broadcast %498 : vector<1x32xf32> to vector<8x32xf32>
    %517 = arith.mulf %516, %506 : vector<8x32xf32>
    %518 = vector.broadcast %515 : vector<8x1xf32> to vector<8x32xf32>
    %519 = arith.mulf %517, %518 : vector<8x32xf32>
    %520 = vector.broadcast %500 : vector<1x32xf32> to vector<8x32xf32>
    %521 = arith.addf %519, %520 : vector<8x32xf32>
    %c1_197 = arith.constant 1 : index
    %c0_198 = arith.constant 0 : index
    %c0_199 = arith.constant 0 : index
    %522 = vector.load %arg13[%c1_197, %c0_198, %c0_199] : memref<2x32x32xbf16, #tpu.memory_space<vmem>>, vector<1x32x32xbf16>
    %523 = vector.shape_cast %522 : vector<1x32x32xbf16> to vector<32x32xbf16>
    %524 = arith.truncf %521 : vector<8x32xf32> to vector<8x32xbf16>
    %cst_200 = arith.constant dense<0.000000e+00> : vector<8x32xf32>
    %525 = tpu.matmul %524, %523, %cst_200 {dimension_numbers = #tpu.dot_dimension_numbers<[1], [0], [0], [1], [0, 0, 1, 1], [], []>} : vector<8x32xbf16>, vector<32x32xbf16>, vector<8x32xf32> -> vector<8x32xf32>
    %c1_201 = arith.constant 1 : index
    %c0_202 = arith.constant 0 : index
    %c0_203 = arith.constant 0 : index
    %526 = vector.load %arg14[%c1_201, %c0_202, %c0_203] : memref<2x1x32xf32, #tpu.memory_space<vmem>>, vector<1x1x32xf32>
    %527 = vector.shape_cast %526 : vector<1x1x32xf32> to vector<1x32xf32>
    %528 = vector.broadcast %527 : vector<1x32xf32> to vector<8x32xf32>
    %529 = arith.addf %525, %528 : vector<8x32xf32>
    %c1_204 = arith.constant 1 : index
    %c0_205 = arith.constant 0 : index
    %c0_206 = arith.constant 0 : index
    %530 = vector.load %arg15[%c1_204, %c0_205, %c0_206] : memref<2x32x64xbf16, #tpu.memory_space<vmem>>, vector<1x32x64xbf16>
    %531 = vector.shape_cast %530 : vector<1x32x64xbf16> to vector<32x64xbf16>
    %532 = arith.truncf %3 : vector<8x32xf32> to vector<8x32xbf16>
    %cst_207 = arith.constant dense<0.000000e+00> : vector<8x64xf32>
    %533 = tpu.matmul %532, %531, %cst_207 {dimension_numbers = #tpu.dot_dimension_numbers<[1], [0], [0], [1], [0, 0, 1, 1], [], []>} : vector<8x32xbf16>, vector<32x64xbf16>, vector<8x64xf32> -> vector<8x64xf32>
    %c1_208 = arith.constant 1 : index
    %c0_209 = arith.constant 0 : index
    %c0_210 = arith.constant 0 : index
    %534 = vector.load %arg16[%c1_208, %c0_209, %c0_210] : memref<2x1x64xf32, #tpu.memory_space<vmem>>, vector<1x1x64xf32>
    %535 = vector.shape_cast %534 : vector<1x1x64xf32> to vector<1x64xf32>
    %536 = vector.broadcast %535 : vector<1x64xf32> to vector<8x64xf32>
    %537 = arith.addf %533, %536 : vector<8x64xf32>
    %538 = vector.extract_strided_slice %537 {offsets = [0, 0], sizes = [8, 32], strides = [1, 1]} : vector<8x64xf32> to vector<8x32xf32>
    %539 = vector.extract_strided_slice %537 {offsets = [0, 32], sizes = [8, 32], strides = [1, 1]} : vector<8x64xf32> to vector<8x32xf32>
    %c1_211 = arith.constant 1 : index
    %c0_212 = arith.constant 0 : index
    %c0_213 = arith.constant 0 : index
    %540 = vector.load %arg17[%c1_211, %c0_212, %c0_213] : memref<2x32x32xbf16, #tpu.memory_space<vmem>>, vector<1x32x32xbf16>
    %541 = vector.shape_cast %540 : vector<1x32x32xbf16> to vector<32x32xbf16>
    %c1_214 = arith.constant 1 : index
    %c0_215 = arith.constant 0 : index
    %c0_216 = arith.constant 0 : index
    %542 = vector.load %arg18[%c1_214, %c0_215, %c0_216] : memref<2x1x32xf32, #tpu.memory_space<vmem>>, vector<1x1x32xf32>
    %543 = vector.shape_cast %542 : vector<1x1x32xf32> to vector<1x32xf32>
    %544 = vector.extract_strided_slice %529 {offsets = [0, 0], sizes = [8, 8], strides = [1, 1]} : vector<8x32xf32> to vector<8x8xf32>
    %545 = arith.truncf %544 : vector<8x8xf32> to vector<8x8xbf16>
    %546 = vector.extract_strided_slice %538 {offsets = [0, 0], sizes = [8, 8], strides = [1, 1]} : vector<8x32xf32> to vector<8x8xf32>
    %547 = arith.truncf %546 : vector<8x8xf32> to vector<8x8xbf16>
    %548 = vector.extract_strided_slice %539 {offsets = [0, 0], sizes = [8, 8], strides = [1, 1]} : vector<8x32xf32> to vector<8x8xf32>
    %549 = arith.truncf %548 : vector<8x8xf32> to vector<8x8xbf16>
    "tpu.trace_start"() <{level = 10 : i32, message = "qd,kd->qk"}> : () -> ()
    %cst_217 = arith.constant dense<0.000000e+00> : vector<8x8xf32>
    %550 = tpu.matmul %545, %547, %cst_217 {dimension_numbers = #tpu.dot_dimension_numbers<[1], [1], [0], [0], [0, 0, 1, 0], [], []>} : vector<8x8xbf16>, vector<8x8xbf16>, vector<8x8xf32> -> vector<8x8xf32>
    "tpu.trace_stop"() : () -> ()
    %cst_218 = arith.constant 0.353553385 : f32
    %551 = vector.broadcast %cst_218 : f32 to vector<8x8xf32>
    %552 = arith.mulf %550, %551 : vector<8x8xf32>
    %553 = arith.addf %552, %7 : vector<8x8xf32>
    %cst_219 = arith.constant dense<0xFF800000> : vector<8xf32>
    %554 = vector.multi_reduction <maximumf>, %553, %cst_219 [1] : vector<8x8xf32> to vector<8xf32>
    %555 = vector.shape_cast %554 : vector<8xf32> to vector<8x1xf32>
    %556 = vector.broadcast %555 : vector<8x1xf32> to vector<8x8xf32>
    %557 = arith.subf %553, %556 : vector<8x8xf32>
    %558 = math.exp %557 : vector<8x8xf32>
    %cst_220 = arith.constant dense<0.000000e+00> : vector<8xf32>
    %559 = vector.multi_reduction <add>, %558, %cst_220 [1] : vector<8x8xf32> to vector<8xf32>
    %560 = vector.shape_cast %559 : vector<8xf32> to vector<8x1xf32>
    %561 = tpu.reciprocal %560 {approx = true} : vector<8x1xf32> -> vector<8x1xf32>
    %562 = vector.broadcast %561 : vector<8x1xf32> to vector<8x8xf32>
    %563 = arith.mulf %558, %562 : vector<8x8xf32>
    %564 = arith.truncf %563 : vector<8x8xf32> to vector<8x8xbf16>
    %cst_221 = arith.constant dense<0.000000e+00> : vector<8x8xf32>
    %565 = tpu.matmul %564, %549, %cst_221 {dimension_numbers = #tpu.dot_dimension_numbers<[1], [0], [0], [1], [0, 0, 1, 1], [], []>} : vector<8x8xbf16>, vector<8x8xbf16>, vector<8x8xf32> -> vector<8x8xf32>
    %566 = arith.truncf %565 : vector<8x8xf32> to vector<8x8xbf16>
    %567 = vector.extract_strided_slice %541 {offsets = [0, 0], sizes = [8, 32], strides = [1, 1]} : vector<32x32xbf16> to vector<8x32xbf16>
    %cst_222 = arith.constant dense<0.000000e+00> : vector<8x32xf32>
    %568 = tpu.matmul %566, %567, %cst_222 {dimension_numbers = #tpu.dot_dimension_numbers<[1], [0], [0], [1], [0, 0, 1, 1], [], []>} : vector<8x8xbf16>, vector<8x32xbf16>, vector<8x32xf32> -> vector<8x32xf32>
    %569 = vector.extract_strided_slice %529 {offsets = [0, 8], sizes = [8, 8], strides = [1, 1]} : vector<8x32xf32> to vector<8x8xf32>
    %570 = arith.truncf %569 : vector<8x8xf32> to vector<8x8xbf16>
    %571 = vector.extract_strided_slice %538 {offsets = [0, 8], sizes = [8, 8], strides = [1, 1]} : vector<8x32xf32> to vector<8x8xf32>
    %572 = arith.truncf %571 : vector<8x8xf32> to vector<8x8xbf16>
    %573 = vector.extract_strided_slice %539 {offsets = [0, 8], sizes = [8, 8], strides = [1, 1]} : vector<8x32xf32> to vector<8x8xf32>
    %574 = arith.truncf %573 : vector<8x8xf32> to vector<8x8xbf16>
    "tpu.trace_start"() <{level = 10 : i32, message = "qd,kd->qk"}> : () -> ()
    %cst_223 = arith.constant dense<0.000000e+00> : vector<8x8xf32>
    %575 = tpu.matmul %570, %572, %cst_223 {dimension_numbers = #tpu.dot_dimension_numbers<[1], [1], [0], [0], [0, 0, 1, 0], [], []>} : vector<8x8xbf16>, vector<8x8xbf16>, vector<8x8xf32> -> vector<8x8xf32>
    "tpu.trace_stop"() : () -> ()
    %cst_224 = arith.constant 0.353553385 : f32
    %576 = vector.broadcast %cst_224 : f32 to vector<8x8xf32>
    %577 = arith.mulf %575, %576 : vector<8x8xf32>
    %578 = arith.addf %577, %7 : vector<8x8xf32>
    %cst_225 = arith.constant dense<0xFF800000> : vector<8xf32>
    %579 = vector.multi_reduction <maximumf>, %578, %cst_225 [1] : vector<8x8xf32> to vector<8xf32>
    %580 = vector.shape_cast %579 : vector<8xf32> to vector<8x1xf32>
    %581 = vector.broadcast %580 : vector<8x1xf32> to vector<8x8xf32>
    %582 = arith.subf %578, %581 : vector<8x8xf32>
    %583 = math.exp %582 : vector<8x8xf32>
    %cst_226 = arith.constant dense<0.000000e+00> : vector<8xf32>
    %584 = vector.multi_reduction <add>, %583, %cst_226 [1] : vector<8x8xf32> to vector<8xf32>
    %585 = vector.shape_cast %584 : vector<8xf32> to vector<8x1xf32>
    %586 = tpu.reciprocal %585 {approx = true} : vector<8x1xf32> -> vector<8x1xf32>
    %587 = vector.broadcast %586 : vector<8x1xf32> to vector<8x8xf32>
    %588 = arith.mulf %583, %587 : vector<8x8xf32>
    %589 = arith.truncf %588 : vector<8x8xf32> to vector<8x8xbf16>
    %cst_227 = arith.constant dense<0.000000e+00> : vector<8x8xf32>
    %590 = tpu.matmul %589, %574, %cst_227 {dimension_numbers = #tpu.dot_dimension_numbers<[1], [0], [0], [1], [0, 0, 1, 1], [], []>} : vector<8x8xbf16>, vector<8x8xbf16>, vector<8x8xf32> -> vector<8x8xf32>
    %591 = arith.truncf %590 : vector<8x8xf32> to vector<8x8xbf16>
    %592 = vector.extract_strided_slice %541 {offsets = [8, 0], sizes = [8, 32], strides = [1, 1]} : vector<32x32xbf16> to vector<8x32xbf16>
    %cst_228 = arith.constant dense<0.000000e+00> : vector<8x32xf32>
    %593 = tpu.matmul %591, %592, %cst_228 {dimension_numbers = #tpu.dot_dimension_numbers<[1], [0], [0], [1], [0, 0, 1, 1], [], []>} : vector<8x8xbf16>, vector<8x32xbf16>, vector<8x32xf32> -> vector<8x32xf32>
    %594 = arith.addf %568, %593 : vector<8x32xf32>
    %595 = vector.extract_strided_slice %529 {offsets = [0, 16], sizes = [8, 8], strides = [1, 1]} : vector<8x32xf32> to vector<8x8xf32>
    %596 = arith.truncf %595 : vector<8x8xf32> to vector<8x8xbf16>
    %597 = vector.extract_strided_slice %538 {offsets = [0, 16], sizes = [8, 8], strides = [1, 1]} : vector<8x32xf32> to vector<8x8xf32>
    %598 = arith.truncf %597 : vector<8x8xf32> to vector<8x8xbf16>
    %599 = vector.extract_strided_slice %539 {offsets = [0, 16], sizes = [8, 8], strides = [1, 1]} : vector<8x32xf32> to vector<8x8xf32>
    %600 = arith.truncf %599 : vector<8x8xf32> to vector<8x8xbf16>
    "tpu.trace_start"() <{level = 10 : i32, message = "qd,kd->qk"}> : () -> ()
    %cst_229 = arith.constant dense<0.000000e+00> : vector<8x8xf32>
    %601 = tpu.matmul %596, %598, %cst_229 {dimension_numbers = #tpu.dot_dimension_numbers<[1], [1], [0], [0], [0, 0, 1, 0], [], []>} : vector<8x8xbf16>, vector<8x8xbf16>, vector<8x8xf32> -> vector<8x8xf32>
    "tpu.trace_stop"() : () -> ()
    %cst_230 = arith.constant 0.353553385 : f32
    %602 = vector.broadcast %cst_230 : f32 to vector<8x8xf32>
    %603 = arith.mulf %601, %602 : vector<8x8xf32>
    %604 = arith.addf %603, %7 : vector<8x8xf32>
    %cst_231 = arith.constant dense<0xFF800000> : vector<8xf32>
    %605 = vector.multi_reduction <maximumf>, %604, %cst_231 [1] : vector<8x8xf32> to vector<8xf32>
    %606 = vector.shape_cast %605 : vector<8xf32> to vector<8x1xf32>
    %607 = vector.broadcast %606 : vector<8x1xf32> to vector<8x8xf32>
    %608 = arith.subf %604, %607 : vector<8x8xf32>
    %609 = math.exp %608 : vector<8x8xf32>
    %cst_232 = arith.constant dense<0.000000e+00> : vector<8xf32>
    %610 = vector.multi_reduction <add>, %609, %cst_232 [1] : vector<8x8xf32> to vector<8xf32>
    %611 = vector.shape_cast %610 : vector<8xf32> to vector<8x1xf32>
    %612 = tpu.reciprocal %611 {approx = true} : vector<8x1xf32> -> vector<8x1xf32>
    %613 = vector.broadcast %612 : vector<8x1xf32> to vector<8x8xf32>
    %614 = arith.mulf %609, %613 : vector<8x8xf32>
    %615 = arith.truncf %614 : vector<8x8xf32> to vector<8x8xbf16>
    %cst_233 = arith.constant dense<0.000000e+00> : vector<8x8xf32>
    %616 = tpu.matmul %615, %600, %cst_233 {dimension_numbers = #tpu.dot_dimension_numbers<[1], [0], [0], [1], [0, 0, 1, 1], [], []>} : vector<8x8xbf16>, vector<8x8xbf16>, vector<8x8xf32> -> vector<8x8xf32>
    %617 = arith.truncf %616 : vector<8x8xf32> to vector<8x8xbf16>
    %618 = vector.extract_strided_slice %541 {offsets = [16, 0], sizes = [8, 32], strides = [1, 1]} : vector<32x32xbf16> to vector<8x32xbf16>
    %cst_234 = arith.constant dense<0.000000e+00> : vector<8x32xf32>
    %619 = tpu.matmul %617, %618, %cst_234 {dimension_numbers = #tpu.dot_dimension_numbers<[1], [0], [0], [1], [0, 0, 1, 1], [], []>} : vector<8x8xbf16>, vector<8x32xbf16>, vector<8x32xf32> -> vector<8x32xf32>
    %620 = arith.addf %594, %619 : vector<8x32xf32>
    %621 = vector.extract_strided_slice %529 {offsets = [0, 24], sizes = [8, 8], strides = [1, 1]} : vector<8x32xf32> to vector<8x8xf32>
    %622 = arith.truncf %621 : vector<8x8xf32> to vector<8x8xbf16>
    %623 = vector.extract_strided_slice %538 {offsets = [0, 24], sizes = [8, 8], strides = [1, 1]} : vector<8x32xf32> to vector<8x8xf32>
    %624 = arith.truncf %623 : vector<8x8xf32> to vector<8x8xbf16>
    %625 = vector.extract_strided_slice %539 {offsets = [0, 24], sizes = [8, 8], strides = [1, 1]} : vector<8x32xf32> to vector<8x8xf32>
    %626 = arith.truncf %625 : vector<8x8xf32> to vector<8x8xbf16>
    "tpu.trace_start"() <{level = 10 : i32, message = "qd,kd->qk"}> : () -> ()
    %cst_235 = arith.constant dense<0.000000e+00> : vector<8x8xf32>
    %627 = tpu.matmul %622, %624, %cst_235 {dimension_numbers = #tpu.dot_dimension_numbers<[1], [1], [0], [0], [0, 0, 1, 0], [], []>} : vector<8x8xbf16>, vector<8x8xbf16>, vector<8x8xf32> -> vector<8x8xf32>
    "tpu.trace_stop"() : () -> ()
    %cst_236 = arith.constant 0.353553385 : f32
    %628 = vector.broadcast %cst_236 : f32 to vector<8x8xf32>
    %629 = arith.mulf %627, %628 : vector<8x8xf32>
    %630 = arith.addf %629, %7 : vector<8x8xf32>
    %cst_237 = arith.constant dense<0xFF800000> : vector<8xf32>
    %631 = vector.multi_reduction <maximumf>, %630, %cst_237 [1] : vector<8x8xf32> to vector<8xf32>
    %632 = vector.shape_cast %631 : vector<8xf32> to vector<8x1xf32>
    %633 = vector.broadcast %632 : vector<8x1xf32> to vector<8x8xf32>
    %634 = arith.subf %630, %633 : vector<8x8xf32>
    %635 = math.exp %634 : vector<8x8xf32>
    %cst_238 = arith.constant dense<0.000000e+00> : vector<8xf32>
    %636 = vector.multi_reduction <add>, %635, %cst_238 [1] : vector<8x8xf32> to vector<8xf32>
    %637 = vector.shape_cast %636 : vector<8xf32> to vector<8x1xf32>
    %638 = tpu.reciprocal %637 {approx = true} : vector<8x1xf32> -> vector<8x1xf32>
    %639 = vector.broadcast %638 : vector<8x1xf32> to vector<8x8xf32>
    %640 = arith.mulf %635, %639 : vector<8x8xf32>
    %641 = arith.truncf %640 : vector<8x8xf32> to vector<8x8xbf16>
    %cst_239 = arith.constant dense<0.000000e+00> : vector<8x8xf32>
    %642 = tpu.matmul %641, %626, %cst_239 {dimension_numbers = #tpu.dot_dimension_numbers<[1], [0], [0], [1], [0, 0, 1, 1], [], []>} : vector<8x8xbf16>, vector<8x8xbf16>, vector<8x8xf32> -> vector<8x8xf32>
    %643 = arith.truncf %642 : vector<8x8xf32> to vector<8x8xbf16>
    %644 = vector.extract_strided_slice %541 {offsets = [24, 0], sizes = [8, 32], strides = [1, 1]} : vector<32x32xbf16> to vector<8x32xbf16>
    %cst_240 = arith.constant dense<0.000000e+00> : vector<8x32xf32>
    %645 = tpu.matmul %643, %644, %cst_240 {dimension_numbers = #tpu.dot_dimension_numbers<[1], [0], [0], [1], [0, 0, 1, 1], [], []>} : vector<8x8xbf16>, vector<8x32xbf16>, vector<8x32xf32> -> vector<8x32xf32>
    %646 = arith.addf %620, %645 : vector<8x32xf32>
    %647 = vector.broadcast %543 : vector<1x32xf32> to vector<8x32xf32>
    %648 = arith.addf %646, %647 : vector<8x32xf32>
    %649 = arith.addf %496, %648 : vector<8x32xf32>
    %c1_241 = arith.constant 1 : index
    %c0_242 = arith.constant 0 : index
    %c0_243 = arith.constant 0 : index
    %650 = vector.load %arg19[%c1_241, %c0_242, %c0_243] : memref<2x1x32xf32, #tpu.memory_space<vmem>>, vector<1x1x32xf32>
    %651 = vector.shape_cast %650 : vector<1x1x32xf32> to vector<1x32xf32>
    %c1_244 = arith.constant 1 : index
    %c0_245 = arith.constant 0 : index
    %c0_246 = arith.constant 0 : index
    %652 = vector.load %arg20[%c1_244, %c0_245, %c0_246] : memref<2x1x32xf32, #tpu.memory_space<vmem>>, vector<1x1x32xf32>
    %653 = vector.shape_cast %652 : vector<1x1x32xf32> to vector<1x32xf32>
    %cst_247 = arith.constant dense<0.000000e+00> : vector<8xf32>
    %654 = vector.multi_reduction <add>, %649, %cst_247 [1] : vector<8x32xf32> to vector<8xf32>
    %655 = vector.shape_cast %654 : vector<8xf32> to vector<8x1xf32>
    %cst_248 = arith.constant 3.200000e+01 : f32
    %656 = vector.broadcast %cst_248 : f32 to vector<8x1xf32>
    %657 = arith.divf %655, %656 : vector<8x1xf32>
    %658 = vector.broadcast %657 : vector<8x1xf32> to vector<8x32xf32>
    %659 = arith.subf %649, %658 : vector<8x32xf32>
    %660 = arith.mulf %659, %659 : vector<8x32xf32>
    %cst_249 = arith.constant dense<0.000000e+00> : vector<8xf32>
    %661 = vector.multi_reduction <add>, %660, %cst_249 [1] : vector<8x32xf32> to vector<8xf32>
    %662 = vector.shape_cast %661 : vector<8xf32> to vector<8x1xf32>
    %cst_250 = arith.constant 0.0322580636 : f32
    %663 = vector.broadcast %cst_250 : f32 to vector<8x1xf32>
    %664 = arith.mulf %662, %663 : vector<8x1xf32>
    %665 = math.sqrt %664 : vector<8x1xf32>
    %cst_251 = arith.constant 9.99999997E-7 : f32
    %666 = vector.broadcast %cst_251 : f32 to vector<8x1xf32>
    %667 = arith.addf %665, %666 : vector<8x1xf32>
    %668 = tpu.reciprocal %667 {approx = true} : vector<8x1xf32> -> vector<8x1xf32>
    %669 = vector.broadcast %651 : vector<1x32xf32> to vector<8x32xf32>
    %670 = arith.mulf %669, %659 : vector<8x32xf32>
    %671 = vector.broadcast %668 : vector<8x1xf32> to vector<8x32xf32>
    %672 = arith.mulf %670, %671 : vector<8x32xf32>
    %673 = vector.broadcast %653 : vector<1x32xf32> to vector<8x32xf32>
    %674 = arith.addf %672, %673 : vector<8x32xf32>
    %c1_252 = arith.constant 1 : index
    %c0_253 = arith.constant 0 : index
    %c0_254 = arith.constant 0 : index
    %675 = vector.load %arg21[%c1_252, %c0_253, %c0_254] : memref<2x32x64xbf16, #tpu.memory_space<vmem>>, vector<1x32x64xbf16>
    %676 = vector.shape_cast %675 : vector<1x32x64xbf16> to vector<32x64xbf16>
    %677 = arith.truncf %674 : vector<8x32xf32> to vector<8x32xbf16>
    %cst_255 = arith.constant dense<0.000000e+00> : vector<8x64xf32>
    %678 = tpu.matmul %677, %676, %cst_255 {dimension_numbers = #tpu.dot_dimension_numbers<[1], [0], [0], [1], [0, 0, 1, 1], [], []>} : vector<8x32xbf16>, vector<32x64xbf16>, vector<8x64xf32> -> vector<8x64xf32>
    %c1_256 = arith.constant 1 : index
    %c0_257 = arith.constant 0 : index
    %c0_258 = arith.constant 0 : index
    %679 = vector.load %arg22[%c1_256, %c0_257, %c0_258] : memref<2x1x64xf32, #tpu.memory_space<vmem>>, vector<1x1x64xf32>
    %680 = vector.shape_cast %679 : vector<1x1x64xf32> to vector<1x64xf32>
    %681 = vector.broadcast %680 : vector<1x64xf32> to vector<8x64xf32>
    %682 = arith.addf %678, %681 : vector<8x64xf32>
    %cst_259 = arith.constant 0.000000e+00 : f32
    %683 = vector.broadcast %cst_259 : f32 to vector<8x64xf32>
    %684 = arith.maximumf %682, %683 : vector<8x64xf32>
    %c1_260 = arith.constant 1 : index
    %c0_261 = arith.constant 0 : index
    %c0_262 = arith.constant 0 : index
    %685 = vector.load %arg23[%c1_260, %c0_261, %c0_262] : memref<2x64x32xbf16, #tpu.memory_space<vmem>>, vector<1x64x32xbf16>
    %686 = vector.shape_cast %685 : vector<1x64x32xbf16> to vector<64x32xbf16>
    %687 = arith.truncf %684 : vector<8x64xf32> to vector<8x64xbf16>
    %cst_263 = arith.constant dense<0.000000e+00> : vector<8x32xf32>
    %688 = tpu.matmul %687, %686, %cst_263 {dimension_numbers = #tpu.dot_dimension_numbers<[1], [0], [0], [1], [0, 0, 1, 1], [], []>} : vector<8x64xbf16>, vector<64x32xbf16>, vector<8x32xf32> -> vector<8x32xf32>
    %689 = arith.addf %649, %688 : vector<8x32xf32>
    %c1_264 = arith.constant 1 : index
    %c0_265 = arith.constant 0 : index
    %c0_266 = arith.constant 0 : index
    %690 = vector.load %arg24[%c1_264, %c0_265, %c0_266] : memref<2x1x32xf32, #tpu.memory_space<vmem>>, vector<1x1x32xf32>
    %691 = vector.shape_cast %690 : vector<1x1x32xf32> to vector<1x32xf32>
    %692 = vector.broadcast %691 : vector<1x32xf32> to vector<8x32xf32>
    %693 = arith.addf %689, %692 : vector<8x32xf32>
    %c0_267 = arith.constant 0 : index
    %c0_268 = arith.constant 0 : index
    %694 = vector.load %arg25[%c0_267, %c0_268] : memref<1x32xf32, #tpu.memory_space<vmem>>, vector<1x32xf32>
    %c0_269 = arith.constant 0 : index
    %c0_270 = arith.constant 0 : index
    %695 = vector.load %arg26[%c0_269, %c0_270] : memref<1x32xf32, #tpu.memory_space<vmem>>, vector<1x32xf32>
    %cst_271 = arith.constant dense<0.000000e+00> : vector<8xf32>
    %696 = vector.multi_reduction <add>, %693, %cst_271 [1] : vector<8x32xf32> to vector<8xf32>
    %697 = vector.shape_cast %696 : vector<8xf32> to vector<8x1xf32>
    %cst_272 = arith.constant 3.200000e+01 : f32
    %698 = vector.broadcast %cst_272 : f32 to vector<8x1xf32>
    %699 = arith.divf %697, %698 : vector<8x1xf32>
    %700 = vector.broadcast %699 : vector<8x1xf32> to vector<8x32xf32>
    %701 = arith.subf %693, %700 : vector<8x32xf32>
    %702 = arith.mulf %701, %701 : vector<8x32xf32>
    %cst_273 = arith.constant dense<0.000000e+00> : vector<8xf32>
    %703 = vector.multi_reduction <add>, %702, %cst_273 [1] : vector<8x32xf32> to vector<8xf32>
    %704 = vector.shape_cast %703 : vector<8xf32> to vector<8x1xf32>
    %cst_274 = arith.constant 0.0322580636 : f32
    %705 = vector.broadcast %cst_274 : f32 to vector<8x1xf32>
    %706 = arith.mulf %704, %705 : vector<8x1xf32>
    %707 = math.sqrt %706 : vector<8x1xf32>
    %cst_275 = arith.constant 9.99999997E-7 : f32
    %708 = vector.broadcast %cst_275 : f32 to vector<8x1xf32>
    %709 = arith.addf %707, %708 : vector<8x1xf32>
    %710 = tpu.reciprocal %709 {approx = true} : vector<8x1xf32> -> vector<8x1xf32>
    %711 = vector.broadcast %694 : vector<1x32xf32> to vector<8x32xf32>
    %712 = arith.mulf %711, %701 : vector<8x32xf32>
    %713 = vector.broadcast %710 : vector<8x1xf32> to vector<8x32xf32>
    %714 = arith.mulf %712, %713 : vector<8x32xf32>
    %715 = vector.broadcast %695 : vector<1x32xf32> to vector<8x32xf32>
    %716 = arith.addf %714, %715 : vector<8x32xf32>
    %c0_276 = arith.constant 0 : index
    %c0_277 = arith.constant 0 : index
    %717 = vector.load %arg27[%c0_276, %c0_277] : memref<32x16xbf16, #tpu.memory_space<vmem>>, vector<32x16xbf16>
    %718 = arith.truncf %716 : vector<8x32xf32> to vector<8x32xbf16>
    %cst_278 = arith.constant dense<0.000000e+00> : vector<8x16xf32>
    %719 = tpu.matmul %718, %717, %cst_278 {dimension_numbers = #tpu.dot_dimension_numbers<[1], [0], [0], [1], [0, 0, 1, 1], [], []>} : vector<8x32xbf16>, vector<32x16xbf16>, vector<8x16xf32> -> vector<8x16xf32>
    %c0_279 = arith.constant 0 : index
    %c0_280 = arith.constant 0 : index
    %720 = vector.load %arg28[%c0_279, %c0_280] : memref<1x16xf32, #tpu.memory_space<vmem>>, vector<1x16xf32>
    %721 = vector.broadcast %720 : vector<1x16xf32> to vector<8x16xf32>
    %722 = arith.addf %719, %721 : vector<8x16xf32>
    %cst_281 = arith.constant dense<0xFF800000> : vector<8xf32>
    %723 = vector.multi_reduction <maximumf>, %722, %cst_281 [1] : vector<8x16xf32> to vector<8xf32>
    %724 = vector.shape_cast %723 : vector<8xf32> to vector<8x1xf32>
    %725 = vector.broadcast %724 : vector<8x1xf32> to vector<8x16xf32>
    %726 = arith.subf %722, %725 : vector<8x16xf32>
    %727 = math.exp %726 : vector<8x16xf32>
    %cst_282 = arith.constant dense<0.000000e+00> : vector<8xf32>
    %728 = vector.multi_reduction <add>, %727, %cst_282 [1] : vector<8x16xf32> to vector<8xf32>
    %729 = vector.shape_cast %728 : vector<8xf32> to vector<8x1xf32>
    %730 = math.log %729 : vector<8x1xf32>
    %731 = vector.broadcast %730 : vector<8x1xf32> to vector<8x16xf32>
    %732 = arith.subf %726, %731 : vector<8x16xf32>
    %c0_283 = arith.constant 0 : index
    %c0_284 = arith.constant 0 : index
    %c0_285 = arith.constant 0 : index
    %733 = vector.load %arg29[%c0_283, %c0_284, %c0_285] : memref<1x8x16xf32, #tpu.memory_space<vmem>>, vector<1x8x16xf32>
    %734 = vector.shape_cast %733 : vector<1x8x16xf32> to vector<8x16xf32>
    %735 = vector.shape_cast %732 : vector<8x16xf32> to vector<1x8x16xf32>
    tpu.vector_store %arg29[%c0_283, %c0_284, %c0_285], %735 {strides = array<i32>} : memref<1x8x16xf32, #tpu.memory_space<vmem>>, vector<1x8x16xf32>,
    return
  }
  func.func @transform_0(%arg0: i32) -> (i32, i32, i32) {
    %c0_i32 = arith.constant 0 : i32
    %c0_i32_0 = arith.constant 0 : i32
    %c0_i32_1 = arith.constant 0 : i32
    return %arg0, %c0_i32, %c0_i32_0 : i32, i32, i32
  }
  func.func @transform_1(%arg0: i32) -> (i32, i32, i32) {
    %c0_i32 = arith.constant 0 : i32
    %c0_i32_0 = arith.constant 0 : i32
    %c0_i32_1 = arith.constant 0 : i32
    return %arg0, %c0_i32, %c0_i32_0 : i32, i32, i32
  }
  func.func @transform_2(%arg0: i32) -> (i32, i32, i32) {
    %c0_i32 = arith.constant 0 : i32
    %c0_i32_0 = arith.constant 0 : i32
    %c0_i32_1 = arith.constant 0 : i32
    return %arg0, %c0_i32, %c0_i32_0 : i32, i32, i32
  }
  func.func @transform_3(%arg0: i32) -> (i32, i32, i32) {
    %c0_i32 = arith.constant 0 : i32
    %c0_i32_0 = arith.constant 0 : i32
    %c0_i32_1 = arith.constant 0 : i32
    return %arg0, %c0_i32, %c0_i32_0 : i32, i32, i32
  }
  func.func @transform_4(%arg0: i32) -> (i32, i32, i32) {
    %c0_i32 = arith.constant 0 : i32
    %c0_i32_0 = arith.constant 0 : i32
    %c0_i32_1 = arith.constant 0 : i32
    %c0_i32_2 = arith.constant 0 : i32
    return %c0_i32, %c0_i32_0, %c0_i32_1 : i32, i32, i32
  }
  func.func @transform_5(%arg0: i32) -> (i32, i32, i32) {
    %c0_i32 = arith.constant 0 : i32
    %c0_i32_0 = arith.constant 0 : i32
    %c0_i32_1 = arith.constant 0 : i32
    %c0_i32_2 = arith.constant 0 : i32
    return %c0_i32, %c0_i32_0, %c0_i32_1 : i32, i32, i32
  }
  func.func @transform_6(%arg0: i32) -> (i32, i32, i32) {
    %c0_i32 = arith.constant 0 : i32
    %c0_i32_0 = arith.constant 0 : i32
    %c0_i32_1 = arith.constant 0 : i32
    %c0_i32_2 = arith.constant 0 : i32
    return %c0_i32, %c0_i32_0, %c0_i32_1 : i32, i32, i32
  }
  func.func @transform_7(%arg0: i32) -> (i32, i32, i32) {
    %c0_i32 = arith.constant 0 : i32
    %c0_i32_0 = arith.constant 0 : i32
    %c0_i32_1 = arith.constant 0 : i32
    %c0_i32_2 = arith.constant 0 : i32
    return %c0_i32, %c0_i32_0, %c0_i32_1 : i32, i32, i32
  }
  func.func @transform_8(%arg0: i32) -> (i32, i32, i32) {
    %c0_i32 = arith.constant 0 : i32
    %c0_i32_0 = arith.constant 0 : i32
    %c0_i32_1 = arith.constant 0 : i32
    %c0_i32_2 = arith.constant 0 : i32
    return %c0_i32, %c0_i32_0, %c0_i32_1 : i32, i32, i32
  }
  func.func @transform_9(%arg0: i32) -> (i32, i32, i32) {
    %c0_i32 = arith.constant 0 : i32
    %c0_i32_0 = arith.constant 0 : i32
    %c0_i32_1 = arith.constant 0 : i32
    %c0_i32_2 = arith.constant 0 : i32
    return %c0_i32, %c0_i32_0, %c0_i32_1 : i32, i32, i32
  }
  func.func @transform_10(%arg0: i32) -> (i32, i32, i32) {
    %c0_i32 = arith.constant 0 : i32
    %c0_i32_0 = arith.constant 0 : i32
    %c0_i32_1 = arith.constant 0 : i32
    %c0_i32_2 = arith.constant 0 : i32
    return %c0_i32, %c0_i32_0, %c0_i32_1 : i32, i32, i32
  }
  func.func @transform_11(%arg0: i32) -> (i32, i32, i32) {
    %c0_i32 = arith.constant 0 : i32
    %c0_i32_0 = arith.constant 0 : i32
    %c0_i32_1 = arith.constant 0 : i32
    %c0_i32_2 = arith.constant 0 : i32
    return %c0_i32, %c0_i32_0, %c0_i32_1 : i32, i32, i32
  }
  func.func @transform_12(%arg0: i32) -> (i32, i32, i32) {
    %c0_i32 = arith.constant 0 : i32
    %c0_i32_0 = arith.constant 0 : i32
    %c0_i32_1 = arith.constant 0 : i32
    %c0_i32_2 = arith.constant 0 : i32
    return %c0_i32, %c0_i32_0, %c0_i32_1 : i32, i32, i32
  }
  func.func @transform_13(%arg0: i32) -> (i32, i32, i32) {
    %c0_i32 = arith.constant 0 : i32
    %c0_i32_0 = arith.constant 0 : i32
    %c0_i32_1 = arith.constant 0 : i32
    %c0_i32_2 = arith.constant 0 : i32
    return %c0_i32, %c0_i32_0, %c0_i32_1 : i32, i32, i32
  }
  func.func @transform_14(%arg0: i32) -> (i32, i32, i32) {
    %c0_i32 = arith.constant 0 : i32
    %c0_i32_0 = arith.constant 0 : i32
    %c0_i32_1 = arith.constant 0 : i32
    %c0_i32_2 = arith.constant 0 : i32
    return %c0_i32, %c0_i32_0, %c0_i32_1 : i32, i32, i32
  }
  func.func @transform_15(%arg0: i32) -> (i32, i32, i32) {
    %c0_i32 = arith.constant 0 : i32
    %c0_i32_0 = arith.constant 0 : i32
    %c0_i32_1 = arith.constant 0 : i32
    %c0_i32_2 = arith.constant 0 : i32
    return %c0_i32, %c0_i32_0, %c0_i32_1 : i32, i32, i32
  }
  func.func @transform_16(%arg0: i32) -> (i32, i32, i32) {
    %c0_i32 = arith.constant 0 : i32
    %c0_i32_0 = arith.constant 0 : i32
    %c0_i32_1 = arith.constant 0 : i32
    %c0_i32_2 = arith.constant 0 : i32
    return %c0_i32, %c0_i32_0, %c0_i32_1 : i32, i32, i32
  }
  func.func @transform_17(%arg0: i32) -> (i32, i32, i32) {
    %c0_i32 = arith.constant 0 : i32
    %c0_i32_0 = arith.constant 0 : i32
    %c0_i32_1 = arith.constant 0 : i32
    %c0_i32_2 = arith.constant 0 : i32
    return %c0_i32, %c0_i32_0, %c0_i32_1 : i32, i32, i32
  }
  func.func @transform_18(%arg0: i32) -> (i32, i32, i32) {
    %c0_i32 = arith.constant 0 : i32
    %c0_i32_0 = arith.constant 0 : i32
    %c0_i32_1 = arith.constant 0 : i32
    %c0_i32_2 = arith.constant 0 : i32
    return %c0_i32, %c0_i32_0, %c0_i32_1 : i32, i32, i32
  }
  func.func @transform_19(%arg0: i32) -> (i32, i32, i32) {
    %c0_i32 = arith.constant 0 : i32
    %c0_i32_0 = arith.constant 0 : i32
    %c0_i32_1 = arith.constant 0 : i32
    %c0_i32_2 = arith.constant 0 : i32
    return %c0_i32, %c0_i32_0, %c0_i32_1 : i32, i32, i32
  }
  func.func @transform_20(%arg0: i32) -> (i32, i32, i32) {
    %c0_i32 = arith.constant 0 : i32
    %c0_i32_0 = arith.constant 0 : i32
    %c0_i32_1 = arith.constant 0 : i32
    %c0_i32_2 = arith.constant 0 : i32
    return %c0_i32, %c0_i32_0, %c0_i32_1 : i32, i32, i32
  }
  func.func @transform_21(%arg0: i32) -> (i32, i32, i32) {
    %c0_i32 = arith.constant 0 : i32
    %c0_i32_0 = arith.constant 0 : i32
    %c0_i32_1 = arith.constant 0 : i32
    %c0_i32_2 = arith.constant 0 : i32
    return %c0_i32, %c0_i32_0, %c0_i32_1 : i32, i32, i32
  }
  func.func @transform_22(%arg0: i32) -> (i32, i32, i32) {
    %c0_i32 = arith.constant 0 : i32
    %c0_i32_0 = arith.constant 0 : i32
    %c0_i32_1 = arith.constant 0 : i32
    %c0_i32_2 = arith.constant 0 : i32
    return %c0_i32, %c0_i32_0, %c0_i32_1 : i32, i32, i32
  }
  func.func @transform_23(%arg0: i32) -> (i32, i32, i32) {
    %c0_i32 = arith.constant 0 : i32
    %c0_i32_0 = arith.constant 0 : i32
    %c0_i32_1 = arith.constant 0 : i32
    %c0_i32_2 = arith.constant 0 : i32
    return %c0_i32, %c0_i32_0, %c0_i32_1 : i32, i32, i32
  }
  func.func @transform_24(%arg0: i32) -> (i32, i32) {
    %c0_i32 = arith.constant 0 : i32
    %c0_i32_0 = arith.constant 0 : i32
    %c0_i32_1 = arith.constant 0 : i32
    return %c0_i32, %c0_i32_0 : i32, i32
  }
  func.func @transform_25(%arg0: i32) -> (i32, i32) {
    %c0_i32 = arith.constant 0 : i32
    %c0_i32_0 = arith.constant 0 : i32
    %c0_i32_1 = arith.constant 0 : i32
    return %c0_i32, %c0_i32_0 : i32, i32
  }
  func.func @transform_26(%arg0: i32) -> (i32, i32) {
    %c0_i32 = arith.constant 0 : i32
    %c0_i32_0 = arith.constant 0 : i32
    %c0_i32_1 = arith.constant 0 : i32
    return %c0_i32, %c0_i32_0 : i32, i32
  }
  func.func @transform_27(%arg0: i32) -> (i32, i32) {
    %c0_i32 = arith.constant 0 : i32
    %c0_i32_0 = arith.constant 0 : i32
    %c0_i32_1 = arith.constant 0 : i32
    return %c0_i32, %c0_i32_0 : i32, i32
  }
  func.func @transform_28(%arg0: i32) -> (i32, i32, i32) {
    %c0_i32 = arith.constant 0 : i32
    %c0_i32_0 = arith.constant 0 : i32
    %c0_i32_1 = arith.constant 0 : i32
    return %arg0, %c0_i32, %c0_i32_0 : i32, i32, i32
  }
}

</mosaic_0001>

<bundles_post_ra>
// kernel: fwd.2
= control target key start
LH: loop header
LB: loop body
LE: loop exit
PB: predicated region body
PF: predicated region fallthrough
CT: control target
= control target key end

     0   :  { %s2054_s21 = smov 0   ;;  %s2369_s0 = inlined_call_operand.vmem [shape: f32[2,8,32], index: 0, kind: input, shape index: {}]   ;;  %s2370_s1 = inlined_call_operand.vmem [shape: f32[2,8,8], index: 1, kind: input, shape index: {}]   ;;  %s2371_s2 = inlined_call_operand.vmem [shape: f32[2,1,32], index: 2, kind: input, shape index: {}]   ;;  %s2372_s3 = inlined_call_operand.vmem [shape: f32[2,1,32], index: 3, kind: input, shape index: {}]   ;;  %s2373_s4 = inlined_call_operand.vmem [shape: bf16[2,32,96], index: 4, kind: input, shape index: {}]   ;;  %s2374_s5 = inlined_call_operand.vmem [shape: f32[2,1,96], index: 5, kind: input, shape index: {}]   ;;  %s2375_s6 = inlined_call_operand.vmem [shape: bf16[2,32,32], index: 6, kind: input, shape index: {}]   ;;  %s2376_s7 = inlined_call_operand.vmem [shape: f32[2,1,32], index: 7, kind: input, shape index: {}]   ;;  %s2377_s8 = inlined_call_operand.vmem [shape: f32[2,1,32], index: 8, kind: input, shape index: {}]   ;;  %s2378_s9 = inlined_call_operand.vmem [shape: f32[2,1,32], index: 9, kind: input, shape index: {}]   ;;  %s2379_s10 = inlined_call_operand.vmem [shape: bf16[2,32,64], index: 10, kind: input, shape index: {}]   ;;  %s2380_s11 = inlined_call_operand.vmem [shape: f32[2,1,64], index: 11, kind: input, shape index: {}]   ;;  %s2381_s12 = inlined_call_operand.vmem [shape: bf16[2,64,32], index: 12, kind: input, shape index: {}]   ;;  %s2382_s13 = inlined_call_operand.vmem [shape: f32[2,1,32], index: 13, kind: input, shape index: {}]   ;;  %s2383_s14 = inlined_call_operand.vmem [shape: f32[1,32], index: 14, kind: input, shape index: {}]   ;;  %s2384_s15 = inlined_call_operand.vmem [shape: f32[1,32], index: 15, kind: input, shape index: {}]   ;;  %s2385_s16 = inlined_call_operand.vmem [shape: f32[2,8,32], index: 16, kind: output, shape index: {}]  }
   0x1   :  { %2392 = sst [smem:[#allocation2_spill]] %s2369_s0 }
   0x2 LB: > { %s1709_s22 = sadd.s32 4294967295, %s1955_s21   ;;  %p1713_p0 = scmp.ge.s32.totalorder %s1955_s21, 1  ;;  %s1955_s21 = sphi %s2054_s21, %s26_s21  }
   0x3   : > { %p470_p1 = scmp.lt.s32.totalorder %s1955_s21, 3 }
   0x5   : > { %p471_p2 = pnand %p1713_p0, %p470_p1 }
   0x6   : > { %p522_p3 = scmp.lt.s32.totalorder (!%p471_p2), %s1709_s22, 1  ;;  %s2393_s26 = sld [smem:[#allocation2_spill]] (!%p471_p2) }
   0x7   : > { %474 = sbr.rel (%p471_p2) target bundleno = 4831 (0x12df), region = 84  ;;  %s2390_s25 = smov (!%p471_p2), 88  }
   0x8   : > { %s1961_s28 = smov (!%p471_p2), 112   ;;  %s1962_s17 = smov (!%p471_p2), 64  }
   0x9   : > { %s1963_s18 = smov (!%p471_p2), 120   ;;  %s2389_s19 = smov (!%p471_p2), 72  }
   0xa   : > { %s2391_s20 = smov (!%p471_p2), 104   ;;  %s2386_s29 = smov (!%p471_p2), 40  }
   0xb   : > { %s2388_s30 = smov (!%p471_p2), 56   ;;  %s2398_s24 = smov (!%p471_p2), 48  }
   0xc   : > { %s2401_s22 = smov (!%p522_p3, %s1709_s22), 1  ;;  %vm539_vm0 = vcmask 261120   ;;  %v1957_v2 = vmov 32.0   ;;  %v1842_v14 = vld [vmem:[%s2373_s4 + $0x8] sm:$0xff]  ;;  %v1841_v15 = vld [vmem:[%s2373_s4] sm:$0xff]  ;;  %vm626_vm4 = vcmask 64512  }
   0xd   : > { %s2062_s23 = sshll.u32 %s2401_s22, 3  ;;  %1895 = vrcp.f32 %v1957_v2  ;;  %610 = vmatpush.bf16.msra.mxu0 %v1842_v14  ;;  %v1877_v29 = vld [vmem:[%s2371_s2] ss:$0 sm:$0xff]  ;;  %vm665_vm5 = vcmask 1043456   ;;  %vm1049_vm8 = vcmask 523264   ;;  %s2397_s22 = smov 56  }
   0xe   : > { %s525_s27 = scalar_lea.vmem %s2393_s26, %s2062_s23  ;;  %v1878_v31 = vld [vmem:[%s2372_s3] ss:$0 sm:$0xff]  ;;  %s1959_s26 = smov 96  }
   0xf   : > { %v2068_v0 = vld [vmem:[%s525_s27] sm:$0xff]  ;;  %s1960_s27 = smov 80   ;;  %s529_s0 = scalar_lea.vmem %s2370_s1, %s2062_s23 }
  0x10   : > { %v540_v1 = vsel %vm539_vm0, %v2068_v0, 0.0  ;;  %v1879_v36 = vld [vmem:[%s2374_s5] ss:$0 sm:$0xff] }
  0x11   : > { %541 = vadd.xlane.f32.xlu0 %v540_v1  ;;  %611 = vmatpush.bf16.msra.mxu0 %v1841_v15  ;;  %v2112_v47 = vld [vmem:[%s529_s0] sm:$0xff]  ;;  %s2387_s0 = smov 48  }
  0x12   : > { %v617_v58 = vld [vmem:[%s2375_s6] sm:$0xf] }
  0x13   : > { %v1896_v3 = vpop.eup %1895  ;;  %v765_v59 = vsel %vm665_vm5, %v617_v58, 0 }
  0x14   : > { %v544_v4 = vmul.f32 32.0, %v1896_v3  ;;  %vm548_vm1 = vweird.f32 %v1896_v3 }
  0x16   : > { %v545_v5 = vsub.f32 1.0, %v544_v4 }
  0x18   : > { %v546_v6 = vmul.f32 %v1896_v3, %v545_v5 }
  0x1a   : > { %v547_v7 = vadd.f32 %v1896_v3, %v546_v6 }
  0x1c   : > { %v2072_v8 = vsel %vm548_vm1, %v1896_v3, %v547_v7 }
  0x84   : > { %v542_v9 = vpop.xlane.xlu0 %541 }
  0x85   : > { %v550_v10 = vmul.f32 %v2072_v8, %v542_v9 }
  0x87   : > { %v551_v11 = vsub.f32 %v2068_v0, %v550_v10 }
  0x89   : > { %v552_v12 = vmul.f32 %v551_v11, %v551_v11  ;;  %v574_v30 = vmul.f32 %v1877_v29, %v551_v11 }
  0x8b   : > { %v553_v13 = vsel %vm539_vm0, %v552_v12, 0.0 }
  0x8c   : > { %554 = vadd.xlane.f32.xlu0 %v553_v13 }
  0xff   : > { %v555_v16 = vpop.xlane.xlu0 %554 }
 0x100   : > { %v556_v17 = vmul.f32 0.032258064, %v555_v16 }
 0x102   : > { %1897 = vrsqrt.f32 %v556_v17  ;;  %vm564_vm2 = vcmp.eq.f32.partialorder %v556_v17, inf  ;;  %v567_v25 = vand.u32 2147483648, %v556_v17  ;;  %vm566_vm3 = vcmp.eq.f32.partialorder %v556_v17, 0.0 }
 0x108   : > { %v1898_v18 = vpop.eup %1897 }
 0x109   : > { %v558_v19 = vmul.f32 %v1898_v18, %v556_v17 }
 0x10b   : > { %v559_v20 = vmul.f32 %v1898_v18, %v558_v19 }
 0x10d   : > { %v560_v21 = vmul.f32 0.5, %v559_v20 }
 0x10f   : > { %v561_v22 = vsub.f32 1.5, %v560_v21 }
 0x111   : > { %v562_v23 = vmul.f32 %v1898_v18, %v561_v22 }
 0x113   : > { %v563_v24 = vmul.f32 %v562_v23, %v556_v17 }
 0x115   : > { %v565_v26 = vsel %vm564_vm2, %v556_v17, %v563_v24 }
 0x116   : > { %v568_v27 = vsel %vm566_vm3, %v567_v25, %v565_v26 }
 0x117   : > { %v569_v28 = vadd.f32 1e-06, %v568_v27 }
 0x119   : > { %1899 = vrcp.f32 %v569_v28 }
 0x11f   : > { %v1900_v32 = vpop.eup %1899 }
 0x120   : > { %v575_v33 = vmul.f32 %v1900_v32, %v574_v30 }
 0x122   : > { %v579_v34 = vadd.f32 %v1878_v31, %v575_v33 }
 0x124   : > { %v584_v35 = vpack.c.bf16 %v579_v34, %v579_v34 }
 0x126   : > { %1725 = vmatmul.msk.bf16.vlgmr.msra.gmra.mxu0 %vm539_vm0, %v584_v35 }
 0x1a3   : > { %v613_v37 = vpop.f32.mrf.mxu0 }
 0x1a4   : > { %v614_v38 = vadd.f32 %v1879_v36, %v613_v37 }
 0x1a6   : > { %v2093_v39 = vpack.c.bf16 %v614_v38, %v614_v38 }
 0x1a8   : > { %685 = vrot.lane.b32.xlu0 %v2093_v39, %s2390_s25  ;;  %624 = vrot.lane.b32.xlu1 %v2093_v39, %s1959_s26 }
 0x1ab   : > { %v615_v40 = vpop.f32.mrf.mxu0 }
 0x1b0   : > { %782 = vrot.lane.b32.xlu0 %v2093_v39, %s1960_s27 }
 0x1b8   : > { %780 = vrot.lane.b32.xlu0 %v2093_v39, %s1961_s28 }
 0x21a   : > { %v686_v41 = vpop.permute.xlu0 %685  ;;  %v625_v42 = vpop.permute.xlu1 %624 }
 0x21b   : > { %v631_v43 = vsel %vm626_vm4, %v625_v42, 0  ;;  %v691_v44 = vsel %vm626_vm4, %v686_v41, 0 }
 0x21c   : > { %640 = vmatpush.bf16.xpose.msra.mxu1 %v631_v43  ;;  %700 = vmatpush.bf16.xpose.msra.mxu3 %v691_v44 }
 0x222   : > { %v783_v45 = vpop.permute.xlu0 %782 }
 0x223   : > { %1726 = vmatmul.msk.bf16.vlgmr.msra.gmra.mxu1 %vm626_vm4, %v2093_v39  ;;  %v788_v46 = vsel %vm626_vm4, %v783_v45, 0 }
 0x224   : > { %797 = vmatpush.bf16.xpose.msrb.mxu3 %v788_v46  ;;  %774 = vmatpush.bf16.msrb.mxu1 %v765_v59  ;;  %v618_v59 = vld [vmem:[%s2375_s6 + $0x4] sm:$0xf] }
 0x22a   : > { %v781_v6 = vpop.permute.xlu0 %780 }
 0x2a0   : > { %v642_v48 = vpop.f32.mrf.mxu1 }
 0x2a1   : > { %v646_v49 = vmul.f32 0.35355338, %v642_v48 }
 0x2a3   : > { %v647_v50 = vadd.f32 %v646_v49, %v2112_v47 }
 0x2a5   : > { %v648_v51 = vsel %vm626_vm4, %v647_v50, -inf }
 0x2a6   : > { %649 = vmax.xlane.f32.xlu1 %v648_v51 }
 0x2a8   : > { %v644_v52 = vpop.f32.mrf.mxu1 }
 0x319   : > { %v650_v53 = vpop.xlane.xlu1 %649 }
 0x31a   : > { %v651_v54 = vsub.f32 %v647_v50, %v650_v53 }
 0x31c   : > { %v652_v55 = vmul.f32 1.442695, %v651_v54 }
 0x31e   : > { %1901 = vpow2.f32 %v652_v55 }
 0x324   : > { %v1902_v56 = vpop.eup %1901 }
 0x325   : > { %v654_v57 = vsel %vm626_vm4, %v1902_v56, 0.0 }
 0x326   : > { %655 = vadd.xlane.f32.xlu2 %v654_v57 }
 0x33e   : > { %660 = vrot.lane.b32.xlu2 %v2093_v39, %s1962_s17 }
 0x346   : > { %683 = vrot.lane.b32.xlu2 %v2093_v39, %s1963_s18 }
 0x34e   : > { %861 = vrot.lane.b32.xlu2 %v2093_v39, %s2389_s19  ;;  %s2399_s19 = smov 40  }
 0x356   : > { %859 = vrot.lane.b32.xlu2 %v2093_v39, %s2391_s20 }
 0x399   : > { %v656_v60 = vpop.xlane.xlu2 %655 }
 0x39a   : > { %1903 = vrcp.f32 %v656_v60  ;;  %v746_v60 = vsel %vm665_vm5, %v618_v59, 0  ;;  %v1845_v59 = vld [vmem:[%s2381_s12] sm:$0xff] }
 0x39b   : > { %755 = vmatpush.bf16.msrb.mxu0 %v746_v60  ;;  %v1883_v60 = vld [vmem:[%s2380_s11] ss:$0 sm:$0xff] }
 0x3a0   : > { %v1904_v61 = vpop.eup %1903 }
 0x3a1   : > { %v661_v62 = vpop.permute.xlu2 %660  ;;  %v658_v63 = vmul.f32 %v1904_v61, %v1902_v56 }
 0x3a2   : > { %v667_v1 = vsel %vm665_vm5, %v661_v62, 0  ;;  %v619_v62 = vld [vmem:[%s2375_s6 + $0x8] sm:$0xf] }
 0x3a3   : > { %676 = vmatpush.bf16.msra.mxu2 %v667_v1  ;;  %v659_v2 = vpack.c.bf16 %v658_v63, %v658_v63  ;;  %v843_v63 = vsel %vm665_vm5, %v619_v62, 0 }
 0x3a4   : > { %852 = vmatpush.bf16.msra.mxu0 %v843_v63 }
 0x3a6   : > { %1727 = vmatmul.msk.bf16.vlgmr.msra.gmra.mxu2 %vm626_vm4, %v659_v2 }
 0x3a9   : > { %v684_v3 = vpop.permute.xlu2 %683 }
 0x3aa   : > { %1728 = vmatmul.msk.bf16.vlgmr.msra.gmra.mxu3 %vm626_vm4, %v684_v3 }
 0x3b1   : > { %v862_v4 = vpop.permute.xlu2 %861 }
 0x3b2   : > { %v867_v5 = vsel %vm626_vm4, %v862_v4, 0 }
 0x3b3   : > { %876 = vmatpush.bf16.xpose.msra.mxu1 %v867_v5 }
 0x3b9   : > { %v860_v16 = vpop.permute.xlu2 %859 }
 0x3ba   : > { %1732 = vmatmul.msk.bf16.vlgmr.msrb.gmra.mxu3 %vm626_vm4, %v781_v6 }
 0x429   : > { %v678_v7 = vpop.f32.mrf.mxu2 }
 0x42a   : > { %v682_v9 = vpack.c.bf16 %v678_v7, %v678_v7 }
 0x42c   : > { %1731 = vmatmul.msk.bf16.vlgmr.msrb.gmra.mxu1 %vm626_vm4, %v682_v9 }
 0x42d   : > { %v702_v10 = vpop.f32.mrf.mxu3 }
 0x42e   : > { %v706_v11 = vmul.f32 0.35355338, %v702_v10 }
 0x430   : > { %v707_v12 = vadd.f32 %v706_v11, %v2112_v47  ;;  %v620_v11 = vld [vmem:[%s2375_s6 + $0xc] sm:$0xf] }
 0x431   : > { %v680_v13 = vpop.f32.mrf.mxu2 }
 0x432   : > { %v708_v14 = vsel %vm626_vm4, %v707_v12, -inf }
 0x433   : > { %709 = vmax.xlane.f32.xlu1 %v708_v14 }
 0x435   : > { %v704_v15 = vpop.f32.mrf.mxu3 }
 0x43c   : > { %1735 = vmatmul.msk.bf16.vlgmr.msra.gmra.mxu1 %vm626_vm4, %v860_v16 }
 0x43d   : > { %v799_v17 = vpop.f32.mrf.mxu3 }
 0x43e   : > { %v803_v18 = vmul.f32 0.35355338, %v799_v17 }
 0x440   : > { %v804_v19 = vadd.f32 %v803_v18, %v2112_v47 }
 0x442   : > { %v805_v20 = vsel %vm626_vm4, %v804_v19, -inf }
 0x443   : > { %806 = vmax.xlane.f32.xlu2 %v805_v20 }
 0x445   : > { %v801_v21 = vpop.f32.mrf.mxu3 }
 0x45b   : > { %896 = vrot.lane.b32.xlu2 %v2093_v39, %s2386_s29 }
 0x4a6   : > { %v710_v22 = vpop.xlane.xlu1 %709 }
 0x4a7   : > { %v711_v23 = vsub.f32 %v707_v12, %v710_v22  ;;  %v922_v12 = vsel %vm665_vm5, %v620_v11, 0  ;;  %v1880_v22 = vld [vmem:[%s2376_s7] ss:$0 sm:$0xff] }
 0x4a9   : > { %v712_v24 = vmul.f32 1.442695, %v711_v23  ;;  %v2142_v25 = vpop.f32.mrf.mxu1 }
 0x4ab   : > { %1905 = vpow2.f32 %v712_v24 }
 0x4b1   : > { %v1906_v26 = vpop.eup %1905  ;;  %v778_v27 = vpop.f32.mrf.mxu1 }
 0x4b2   : > { %v714_v28 = vsel %vm626_vm4, %v1906_v26, 0.0 }
 0x4b3   : > { %715 = vadd.xlane.f32.xlu1 %v714_v28 }
 0x4b6   : > { %v807_v29 = vpop.xlane.xlu2 %806 }
 0x4b7   : > { %v808_v30 = vsub.f32 %v804_v19, %v807_v29 }
 0x4b9   : > { %v809_v31 = vmul.f32 1.442695, %v808_v30  ;;  %v878_v32 = vpop.f32.mrf.mxu1 }
 0x4ba   : > { %v882_v33 = vmul.f32 0.35355338, %v878_v32 }
 0x4bb   : > { %1907 = vpow2.f32 %v809_v31 }
 0x4bc   : > { %v883_v34 = vadd.f32 %v882_v33, %v2112_v47 }
 0x4be   : > { %v897_v35 = vpop.permute.xlu2 %896  ;;  %v884_v36 = vsel %vm626_vm4, %v883_v34, -inf }
 0x4bf   : > { %v902_v37 = vsel %vm665_vm5, %v897_v35, 0  ;;  %885 = vmax.xlane.f32.xlu0 %v884_v36 }
 0x4c0   : > { %911 = vmatpush.bf16.msra.mxu3 %v902_v37  ;;  %v1848_v37 = vld [vmem:[%s2381_s12 + $0x18] sm:$0xff] }
 0x4c1   : > { %v880_v38 = vpop.f32.mrf.mxu1  ;;  %v1908_v40 = vpop.eup %1907  ;;  %1057 = vmatpush.bf16.msrb.mxu1 %v1848_v37 }
 0x4c2   : > { %v811_v41 = vsel %vm626_vm4, %v1908_v40, 0.0 }
 0x4c7   : > { %812 = vadd.xlane.f32.xlu0 %v811_v41 }
 0x4cc   : > { %720 = vrot.lane.b32.xlu1 %v2093_v39, %s2388_s30 }
 0x4db   : > { %817 = vrot.lane.b32.xlu0 %v2093_v39, %s2387_s0 }
 0x526   : > { %v716_v42 = vpop.xlane.xlu1 %715 }
 0x527   : > { %1909 = vrcp.f32 %v716_v42 }
 0x52d   : > { %v1910_v46 = vpop.eup %1909 }
 0x52e   : > { %v718_v49 = vmul.f32 %v1910_v46, %v1906_v26 }
 0x530   : > { %v719_v54 = vpack.c.bf16 %v718_v49, %v718_v49 }
 0x532   : > { %v886_v43 = vpop.xlane.xlu0 %885 }
 0x533   : > { %v887_v44 = vsub.f32 %v883_v34, %v886_v43  ;;  %v1844_v34 = vld [vmem:[%s2379_s10 + $0x8] sm:$0xff] }
 0x535   : > { %v888_v45 = vmul.f32 1.442695, %v887_v44 }
 0x537   : > { %1911 = vpow2.f32 %v888_v45 }
 0x53a   : > { %v813_v53 = vpop.xlane.xlu0 %812 }
 0x53b   : > { %1913 = vrcp.f32 %v813_v53 }
 0x53d   : > { %v1912_v48 = vpop.eup %1911 }
 0x53e   : > { %v721_v50 = vpop.permute.xlu1 %720  ;;  %v890_v51 = vsel %vm626_vm4, %v1912_v48, 0.0 }
 0x53f   : > { %891 = vadd.xlane.f32.xlu1 %v890_v51  ;;  %v726_v52 = vsel %vm665_vm5, %v721_v50, 0 }
 0x540   : > { %735 = vmatpush.bf16.msrb.mxu2 %v726_v52  ;;  %v1881_v52 = vld [vmem:[%s2377_s8] ss:$0 sm:$0xff] }
 0x541   : > { %v1914_v39 = vpop.eup %1913 }
 0x542   : > { %v815_v55 = vmul.f32 %v1914_v39, %v1908_v40  ;;  %v1847_v40 = vld [vmem:[%s2381_s12 + $0x10] sm:$0xff] }
 0x543   : > { %1729 = vmatmul.msk.bf16.vlgmr.msrb.gmra.mxu2 %vm626_vm4, %v719_v54  ;;  %1058 = vmatpush.bf16.msrb.mxu1 %v1847_v40  ;;  %v1882_v54 = vld [vmem:[%s2378_s9] ss:$0 sm:$0xff] }
 0x544   : > { %v816_v58 = vpack.c.bf16 %v815_v55, %v815_v55 }
 0x54d   : > { %v818_v56 = vpop.permute.xlu0 %817 }
 0x54e   : > { %v823_v57 = vsel %vm665_vm5, %v818_v56, 0 }
 0x54f   : > { %832 = vmatpush.bf16.msra.mxu2 %v823_v57 }
 0x553   : > { %1733 = vmatmul.msk.bf16.vlgmr.msra.gmra.mxu2 %vm626_vm4, %v816_v58  ;;  %v1846_v58 = vld [vmem:[%s2381_s12 + $0x8] sm:$0xff] }
 0x554   : > { %931 = vmatpush.bf16.msrb.mxu2 %v922_v12  ;;  %1059 = vmatpush.bf16.msrb.mxu1 %v1846_v58 }
 0x558   : > { %1060 = vmatpush.bf16.msrb.mxu1 %v1845_v59 }
 0x5b2   : > { %v892_v61 = vpop.xlane.xlu1 %891 }
 0x5b3   : > { %1915 = vrcp.f32 %v892_v61 }
 0x5b9   : > { %v1916_v1 = vpop.eup %1915 }
 0x5ba   : > { %v894_v2 = vmul.f32 %v1916_v1, %v1912_v48 }
 0x5bc   : > { %v895_v3 = vpack.c.bf16 %v894_v2, %v894_v2 }
 0x5be   : > { %1736 = vmatmul.msk.bf16.vlgmr.msra.gmra.mxu3 %vm626_vm4, %v895_v3  ;;  %v1884_v3 = vld [vmem:[%s2382_s13] ss:$0 sm:$0xff] }
 0x5c6   : > { %v737_v4 = vpop.f32.mrf.mxu2 }
 0x5c7   : > { %v741_v5 = vpack.c.bf16 %v737_v4, %v737_v4 }
 0x5c9   : > { %1730 = vmatmul.msk.bf16.vlgmr.msrb.gmra.mxu0 %vm626_vm4, %v741_v5 }
 0x5ca   : > { %1008 = vmatpush.bf16.msrb.mxu0 %v1844_v34 }
 0x5ce   : > { %v739_v6 = vpop.f32.mrf.mxu2 }
 0x5d6   : > { %v834_v7 = vpop.f32.mrf.mxu2 }
 0x5d7   : > { %v838_v9 = vpack.c.bf16 %v834_v7, %v834_v7 }
 0x5d9   : > { %1734 = vmatmul.msk.bf16.vlgmr.msra.gmra.mxu0 %vm626_vm4, %v838_v9 }
 0x5de   : > { %v836_v10 = vpop.f32.mrf.mxu2 }
 0x641   : > { %v913_v13 = vpop.f32.mrf.mxu3 }
 0x642   : > { %v917_v14 = vpack.c.bf16 %v913_v13, %v913_v13 }
 0x644   : > { %1737 = vmatmul.msk.bf16.vlgmr.msrb.gmra.mxu2 %vm626_vm4, %v917_v14 }
 0x646   : > { %v757_v15 = vpop.f32.mrf.mxu0 }
 0x647   : > { %v777_v18 = vadd.f32 %v2142_v25, %v757_v15  ;;  %v1850_v15 = vld [vmem:[%s2373_s4 + $0x18] sm:$0xff] }
 0x648   : > { %1141 = vmatpush.bf16.msrb.mxu3 %v1850_v15 }
 0x649   : > { %v915_v16 = vpop.f32.mrf.mxu3 }
 0x64a   : > { %v1849_v16 = vld [vmem:[%s2373_s4 + $0x10] sm:$0xff] }
 0x64c   : > { %1142 = vmatpush.bf16.msrb.mxu3 %v1849_v16 }
 0x64e   : > { %v759_v17 = vpop.f32.mrf.mxu0 }
 0x656   : > { %v854_v19 = vpop.f32.mrf.mxu0 }
 0x657   : > { %v858_v20 = vadd.f32 %v854_v19, %v777_v18 }
 0x65e   : > { %v856_v21 = vpop.f32.mrf.mxu0 }
 0x6c7   : > { %v933_v23 = vpop.f32.mrf.mxu2 }
 0x6c8   : > { %v937_v24 = vadd.f32 %v933_v23, %v858_v20 }
 0x6ca   : > { %v941_v26 = vadd.f32 %v1880_v22, %v937_v24 }
 0x6cc   : > { %v942_v27 = vadd.f32 %v941_v26, %v2068_v0  ;;  %v1843_v0 = vld [vmem:[%s2379_s10] sm:$0xff] }
 0x6cd   : > { %1009 = vmatpush.bf16.msrb.mxu0 %v1843_v0 }
 0x6ce   : > { %v945_v28 = vsel %vm539_vm0, %v942_v27, 0.0 }
 0x6cf   : > { %v935_v29 = vpop.f32.mrf.mxu2  ;;  %946 = vadd.xlane.f32.xlu2 %v945_v28 }
 0x742   : > { %v947_v30 = vpop.xlane.xlu2 %946 }
 0x743   : > { %v948_v31 = vmul.f32 %v947_v30, %v2072_v8 }
 0x745   : > { %v949_v25 = vsub.f32 %v942_v27, %v948_v31  ;;  %v1885_v31 = vld [vmem:[%s2371_s2 + $0x1] ss:$0 sm:$0xff] }
 0x747   : > { %v950_v32 = vmul.f32 %v949_v25, %v949_v25  ;;  %v972_v53 = vmul.f32 %v1881_v52, %v949_v25 }
 0x749   : > { %v951_v33 = vsel %vm539_vm0, %v950_v32, 0.0  ;;  %v1886_v32 = vld [vmem:[%s2372_s3 + $0x1] ss:$0 sm:$0xff] }
 0x74a   : > { %952 = vadd.xlane.f32.xlu0 %v951_v33 }
 0x7bd   : > { %v953_v35 = vpop.xlane.xlu0 %952 }
 0x7be   : > { %v954_v36 = vmul.f32 0.032258064, %v953_v35 }
 0x7c0   : > { %1917 = vrsqrt.f32 %v954_v36  ;;  %vm962_vm6 = vcmp.eq.f32.partialorder %v954_v36, inf  ;;  %v965_v48 = vand.u32 2147483648, %v954_v36  ;;  %vm964_vm7 = vcmp.eq.f32.partialorder %v954_v36, 0.0 }
 0x7c6   : > { %v1918_v38 = vpop.eup %1917 }
 0x7c7   : > { %v956_v41 = vmul.f32 %v1918_v38, %v954_v36 }
 0x7c9   : > { %v957_v42 = vmul.f32 %v1918_v38, %v956_v41 }
 0x7cb   : > { %v958_v43 = vmul.f32 0.5, %v957_v42 }
 0x7cd   : > { %v959_v44 = vsub.f32 1.5, %v958_v43 }
 0x7cf   : > { %v960_v45 = vmul.f32 %v1918_v38, %v959_v44 }
 0x7d1   : > { %v961_v46 = vmul.f32 %v960_v45, %v954_v36 }
 0x7d3   : > { %v963_v49 = vsel %vm962_vm6, %v954_v36, %v961_v46  ;;  %v1887_v36 = vld [vmem:[%s2374_s5 + $0x1] ss:$0 sm:$0xff] }
 0x7d4   : > { %v966_v50 = vsel %vm964_vm7, %v965_v48, %v963_v49 }
 0x7d5   : > { %v967_v51 = vadd.f32 1e-06, %v966_v50 }
 0x7d7   : > { %1919 = vrcp.f32 %v967_v51 }
 0x7dd   : > { %v1920_v39 = vpop.eup %1919 }
 0x7de   : > { %v973_v55 = vmul.f32 %v1920_v39, %v972_v53 }
 0x7e0   : > { %v977_v56 = vadd.f32 %v1882_v54, %v973_v55 }
 0x7e2   : > { %v982_v57 = vpack.c.bf16 %v977_v56, %v977_v56  ;;  %v1780_v56 = vld [vmem:[%s2375_s6 + $0x10] sm:$0xf] }
 0x7e4   : > { %1746 = vmatmul.msk.bf16.vlgmr.msrb.gmra.mxu0 %vm539_vm0, %v982_v57  ;;  %v1296_v57 = vsel %vm665_vm5, %v1780_v56, 0 }
 0x861   : > { %v1011_v61 = vpop.f32.mrf.mxu0 }
 0x862   : > { %v1012_v62 = vadd.f32 %v1883_v60, %v1011_v61 }
 0x864   : > { %v1015_v63 = vmax.f32 %v1012_v62, 0.0 }
 0x866   : > { %v1024_v1 = vpack.c.bf16 %v1015_v63, %v1015_v63 }
 0x868   : > { %1763 = vmatmul.msk.bf16.vlgmr.msrb.gmra.mxu1 %vm1049_vm8, %v1024_v1 }
 0x869   : > { %v1013_v2 = vpop.f32.mrf.mxu0 }
 0x8e5   : > { %v1062_v4 = vpop.f32.mrf.mxu1 }
 0x8e6   : > { %v1066_v5 = vadd.f32 %v1062_v4, %v942_v27 }
 0x8e8   : > { %v2214_v6 = vadd.f32 %v1884_v3, %v1066_v5 }
 0x8ea   : > { %v1076_v7 = vsel %vm539_vm0, %v2214_v6, 0.0 }
 0x8eb   : > { %1077 = vadd.xlane.f32.xlu1 %v1076_v7 }
 0x8ed   : > { %v1064_v9 = vpop.f32.mrf.mxu1 }
 0x95e   : > { %v1078_v10 = vpop.xlane.xlu1 %1077 }
 0x95f   : > { %v1079_v11 = vmul.f32 %v1078_v10, %v2072_v8 }
 0x961   : > { %v1080_v12 = vsub.f32 %v2214_v6, %v1079_v11 }
 0x963   : > { %v1081_v13 = vmul.f32 %v1080_v12, %v1080_v12  ;;  %v1103_v25 = vmul.f32 %v1885_v31, %v1080_v12 }
 0x965   : > { %v1082_v14 = vsel %vm539_vm0, %v1081_v13, 0.0 }
 0x966   : > { %1083 = vadd.xlane.f32.xlu1 %v1082_v14 }
 0x9d9   : > { %v1084_v17 = vpop.xlane.xlu1 %1083 }
 0x9da   : > { %v1085_v18 = vmul.f32 0.032258064, %v1084_v17 }
 0x9dc   : > { %1921 = vrsqrt.f32 %v1085_v18  ;;  %vm1093_vm9 = vcmp.eq.f32.partialorder %v1085_v18, inf  ;;  %v1096_v27 = vand.u32 2147483648, %v1085_v18  ;;  %vm1095_vm10 = vcmp.eq.f32.partialorder %v1085_v18, 0.0 }
 0x9e2   : > { %v1922_v19 = vpop.eup %1921 }
 0x9e3   : > { %v1087_v20 = vmul.f32 %v1922_v19, %v1085_v18 }
 0x9e5   : > { %v1088_v21 = vmul.f32 %v1922_v19, %v1087_v20 }
 0x9e7   : > { %v1089_v22 = vmul.f32 0.5, %v1088_v21 }
 0x9e9   : > { %v1090_v23 = vsub.f32 1.5, %v1089_v22 }
 0x9eb   : > { %v1091_v24 = vmul.f32 %v1922_v19, %v1090_v23 }
 0x9ed   : > { %v1092_v26 = vmul.f32 %v1091_v24, %v1085_v18 }
 0x9ef   : > { %v1094_v28 = vsel %vm1093_vm9, %v1085_v18, %v1092_v26 }
 0x9f0   : > { %v1097_v29 = vsel %vm1095_vm10, %v1096_v27, %v1094_v28 }
 0x9f1   : > { %v1098_v30 = vadd.f32 1e-06, %v1097_v29 }
 0x9f3   : > { %1923 = vrcp.f32 %v1098_v30 }
 0x9f9   : > { %v1924_v33 = vpop.eup %1923 }
 0x9fa   : > { %v1104_v34 = vmul.f32 %v1924_v33, %v1103_v25 }
 0x9fc   : > { %v1108_v0 = vadd.f32 %v1886_v32, %v1104_v34 }
 0x9fe   : > { %v1114_v35 = vpack.c.bf16 %v1108_v0, %v1108_v0 }
 0xa00   : > { %1779 = vmatmul.msk.bf16.vlgmr.msrb.gmra.mxu3 %vm539_vm0, %v1114_v35 }
 0xa83   : > { %v1144_v37 = vpop.f32.mrf.mxu3 }
 0xa84   : > { %v1145_v38 = vadd.f32 %v1887_v36, %v1144_v37 }
 0xa86   : > { %v2237_v40 = vpack.c.bf16 %v1145_v38, %v1145_v38 }
 0xa88   : > { %1157 = vrot.lane.b32.xlu1 %v2237_v40, %s1959_s26  ;;  %s2394_s26 = smov 104  }
 0xa8b   : > { %v1146_v41 = vpop.f32.mrf.mxu3 }
 0xa90   : > { %1214 = vrot.lane.b32.xlu1 %v2237_v40, %s1963_s18 }
 0xa98   : > { %1313 = vrot.lane.b32.xlu1 %v2237_v40, %s1960_s27  ;;  %s2395_s27 = smov 88  }
 0xaa0   : > { %1311 = vrot.lane.b32.xlu1 %v2237_v40, %s1961_s28  ;;  %s2396_s28 = smov 72  }
 0xafa   : > { %v1158_v42 = vpop.permute.xlu1 %1157 }
 0xafb   : > { %v1163_v43 = vsel %vm626_vm4, %v1158_v42, 0 }
 0xafc   : > { %1172 = vmatpush.bf16.xpose.msra.mxu2 %v1163_v43 }
 0xb02   : > { %v1215_v60 = vpop.permute.xlu1 %1214 }
 0xb03   : > { %1785 = vmatmul.msk.bf16.vlgmr.msra.gmra.mxu2 %vm626_vm4, %v2237_v40 }
 0xb0a   : > { %v1314_v63 = vpop.permute.xlu1 %1313 }
 0xb0b   : > { %v1319_v3 = vsel %vm626_vm4, %v1314_v63, 0 }
 0xb12   : > { %v1312_v7 = vpop.permute.xlu1 %1311 }
 0xb86   : > { %v1174_v44 = vpop.f32.mrf.mxu2 }
 0xb87   : > { %v1178_v45 = vmul.f32 0.35355338, %v1174_v44 }
 0xb89   : > { %v1179_v46 = vadd.f32 %v1178_v45, %v2112_v47 }
 0xb8b   : > { %v1180_v48 = vsel %vm626_vm4, %v1179_v46, -inf }
 0xb8c   : > { %1181 = vmax.xlane.f32.xlu2 %v1180_v48 }
 0xb8e   : > { %v1176_v49 = vpop.f32.mrf.mxu2 }
 0xba4   : > { %1192 = vrot.lane.b32.xlu2 %v2237_v40, %s1962_s17  ;;  %s533_s17 = scalar_lea.vmem %s2385_s16, %s2062_s23 }
 0xbac   : > { %1390 = vrot.lane.b32.xlu2 %v2237_v40, %s2394_s26 }
 0xbff   : > { %v1182_v50 = vpop.xlane.xlu2 %1181 }
 0xc00   : > { %v1183_v51 = vsub.f32 %v1179_v46, %v1182_v50 }
 0xc02   : > { %v1184_v52 = vmul.f32 1.442695, %v1183_v51 }
 0xc04   : > { %1925 = vpow2.f32 %v1184_v52 }
 0xc07   : > { %v1193_v53 = vpop.permute.xlu2 %1192 }
 0xc08   : > { %v1198_v54 = vsel %vm665_vm5, %v1193_v53, 0 }
 0xc09   : > { %1207 = vmatpush.bf16.msra.mxu0 %v1198_v54 }
 0xc0a   : > { %v1926_v39 = vpop.eup %1925 }
 0xc0b   : > { %v1186_v55 = vsel %vm626_vm4, %v1926_v39, 0.0 }
 0xc0c   : > { %1187 = vadd.xlane.f32.xlu0 %v1186_v55 }
 0xc0d   : > { %1305 = vmatpush.bf16.msrb.mxu0 %v1296_v57  ;;  %v1781_v57 = vld [vmem:[%s2375_s6 + $0x14] sm:$0xf] }
 0xc0f   : > { %v1391_v14 = vpop.permute.xlu2 %1390 }
 0xc20   : > { %1216 = vrot.lane.b32.xlu0 %v2237_v40, %s2395_s27 }
 0xc28   : > { %1392 = vrot.lane.b32.xlu0 %v2237_v40, %s2396_s28 }
 0xc7f   : > { %v1188_v58 = vpop.xlane.xlu0 %1187 }
 0xc80   : > { %1927 = vrcp.f32 %v1188_v58  ;;  %v1277_v58 = vsel %vm665_vm5, %v1781_v57, 0  ;;  %v1854_v57 = vld [vmem:[%s2381_s12 + $0x28] sm:$0xff] }
 0xc81   : > { %1286 = vmatpush.bf16.msrb.mxu2 %v1277_v58  ;;  %v1853_v58 = vld [vmem:[%s2381_s12 + $0x20] sm:$0xff] }
 0xc86   : > { %v1928_v59 = vpop.eup %1927 }
 0xc87   : > { %v1190_v61 = vmul.f32 %v1928_v59, %v1926_v39  ;;  %v1782_v59 = vld [vmem:[%s2375_s6 + $0x18] sm:$0xf] }
 0xc89   : > { %v1191_v62 = vpack.c.bf16 %v1190_v61, %v1190_v61 }
 0xc8b   : > { %1786 = vmatmul.msk.bf16.vlgmr.msra.gmra.mxu0 %vm626_vm4, %v1191_v62 }
 0xc92   : > { %v1217_v1 = vpop.permute.xlu0 %1216 }
 0xc93   : > { %v1222_v2 = vsel %vm626_vm4, %v1217_v1, 0 }
 0xc94   : > { %1231 = vmatpush.bf16.xpose.msra.mxu1 %v1222_v2 }
 0xc9a   : > { %v1393_v4 = vpop.permute.xlu0 %1392 }
 0xc9b   : > { %v1398_v5 = vsel %vm626_vm4, %v1393_v4, 0  ;;  %1787 = vmatmul.msk.bf16.vlgmr.msra.gmra.mxu1 %vm626_vm4, %v1215_v60  ;;  %v1374_v60 = vsel %vm665_vm5, %v1782_v59, 0  ;;  %v1891_v59 = vld [vmem:[%s2380_s11 + $0x1] ss:$0 sm:$0xff] }
 0xc9c   : > { %1328 = vmatpush.bf16.xpose.msrb.mxu1 %v1319_v3  ;;  %1407 = vmatpush.bf16.xpose.msra.mxu0 %v1398_v5 }
 0xc9d   : > { %1383 = vmatpush.bf16.msra.mxu2 %v1374_v60 }
 0xcab   : > { %1791 = vmatmul.msk.bf16.vlgmr.msrb.gmra.mxu1 %vm626_vm4, %v1312_v7 }
 0xd08   : > { %v1209_v9 = vpop.f32.mrf.mxu0 }
 0xd09   : > { %v1213_v10 = vpack.c.bf16 %v1209_v9, %v1209_v9 }
 0xd0b   : > { %1790 = vmatmul.msk.bf16.vlgmr.msrb.gmra.mxu0 %vm626_vm4, %v1213_v10 }
 0xd10   : > { %v1211_v11 = vpop.f32.mrf.mxu0 }
 0xd11   : > { %v1783_v11 = vld [vmem:[%s2375_s6 + $0x1c] sm:$0xf] }
 0xd18   : > { %v1233_v12 = vpop.f32.mrf.mxu1 }
 0xd19   : > { %v1237_v13 = vmul.f32 0.35355338, %v1233_v12  ;;  %v1453_v12 = vsel %vm665_vm5, %v1783_v11, 0 }
 0xd1b   : > { %1794 = vmatmul.msk.bf16.vlgmr.msra.gmra.mxu0 %vm626_vm4, %v1391_v14  ;;  %v1238_v15 = vadd.f32 %v1237_v13, %v2112_v47 }
 0xd1d   : > { %v1239_v16 = vsel %vm626_vm4, %v1238_v15, -inf }
 0xd1e   : > { %1240 = vmax.xlane.f32.xlu1 %v1239_v16 }
 0xd20   : > { %v1235_v17 = vpop.f32.mrf.mxu1 }
 0xd28   : > { %v1330_v18 = vpop.f32.mrf.mxu1 }
 0xd29   : > { %v1334_v19 = vmul.f32 0.35355338, %v1330_v18 }
 0xd2b   : > { %v1335_v20 = vadd.f32 %v1334_v19, %v2112_v47 }
 0xd2d   : > { %v1336_v21 = vsel %vm626_vm4, %v1335_v20, -inf }
 0xd2e   : > { %1337 = vmax.xlane.f32.xlu0 %v1336_v21 }
 0xd30   : > { %v1332_v22 = vpop.f32.mrf.mxu1 }
 0xd31   : > { %v1888_v22 = vld [vmem:[%s2376_s7 + $0x1] ss:$0 sm:$0xff] }
 0xd42   : > { %1251 = vrot.lane.b32.xlu0 %v2237_v40, %s2397_s22 }
 0xd88   : > { %v2280_v23 = vpop.f32.mrf.mxu0 }
 0xd90   : > { %v1309_v24 = vpop.f32.mrf.mxu0 }
 0xd91   : > { %v1241_v26 = vpop.xlane.xlu1 %1240 }
 0xd92   : > { %v1242_v27 = vsub.f32 %v1238_v15, %v1241_v26 }
 0xd94   : > { %v1243_v28 = vmul.f32 1.442695, %v1242_v27 }
 0xd96   : > { %1929 = vpow2.f32 %v1243_v28 }
 0xd98   : > { %v1409_v29 = vpop.f32.mrf.mxu0 }
 0xd99   : > { %v1413_v30 = vmul.f32 0.35355338, %v1409_v29 }
 0xd9b   : > { %v1414_v31 = vadd.f32 %v1413_v30, %v2112_v47 }
 0xd9c   : > { %v1930_v25 = vpop.eup %1929 }
 0xd9d   : > { %v1415_v32 = vsel %vm626_vm4, %v1414_v31, -inf  ;;  %v1245_v33 = vsel %vm626_vm4, %v1930_v25, 0.0 }
 0xd9e   : > { %1416 = vmax.xlane.f32.xlu2 %v1415_v32  ;;  %1246 = vadd.xlane.f32.xlu1 %v1245_v33 }
 0xda0   : > { %v1411_v34 = vpop.f32.mrf.mxu0 }
 0xda1   : > { %v1338_v0 = vpop.xlane.xlu0 %1337  ;;  %v1852_v34 = vld [vmem:[%s2379_s10 + $0x18] sm:$0xff] }
 0xda2   : > { %v1339_v35 = vsub.f32 %v1335_v20, %v1338_v0 }
 0xda4   : > { %v1340_v36 = vmul.f32 1.442695, %v1339_v35 }
 0xda6   : > { %1931 = vpow2.f32 %v1340_v36  ;;  %v1856_v36 = vld [vmem:[%s2381_s12 + $0x38] sm:$0xff] }
 0xda7   : > { %1592 = vmatpush.bf16.msrb.mxu0 %v1856_v36 }
 0xdac   : > { %v1932_v37 = vpop.eup %1931 }
 0xdad   : > { %v1342_v38 = vsel %vm626_vm4, %v1932_v37, 0.0 }
 0xdae   : > { %1343 = vadd.xlane.f32.xlu2 %v1342_v38  ;;  %v1855_v38 = vld [vmem:[%s2381_s12 + $0x30] sm:$0xff] }
 0xdaf   : > { %1593 = vmatpush.bf16.msrb.mxu0 %v1855_v38 }
 0xdb3   : > { %1594 = vmatpush.bf16.msrb.mxu0 %v1854_v57 }
 0xdb4   : > { %v1252_v41 = vpop.permute.xlu0 %1251 }
 0xdb5   : > { %v1257_v42 = vsel %vm665_vm5, %v1252_v41, 0 }
 0xdb6   : > { %1266 = vmatpush.bf16.msra.mxu3 %v1257_v42 }
 0xdb7   : > { %1348 = vrot.lane.b32.xlu1 %v2237_v40, %s2398_s24  ;;  %1595 = vmatpush.bf16.msrb.mxu0 %v1853_v58 }
 0xe11   : > { %v1417_v47 = vpop.xlane.xlu2 %1416  ;;  %v1247_v43 = vpop.xlane.xlu1 %1246 }
 0xe12   : > { %v1418_v44 = vsub.f32 %v1414_v31, %v1417_v47  ;;  %1933 = vrcp.f32 %v1247_v43 }
 0xe14   : > { %v1419_v45 = vmul.f32 1.442695, %v1418_v44 }
 0xe16   : > { %1935 = vpow2.f32 %v1419_v45 }
 0xe18   : > { %v1934_v46 = vpop.eup %1933 }
 0xe19   : > { %v1249_v48 = vmul.f32 %v1934_v46, %v1930_v25 }
 0xe1b   : > { %v1250_v49 = vpack.c.bf16 %v1249_v48, %v1249_v48 }
 0xe1c   : > { %v1936_v50 = vpop.eup %1935 }
 0xe1d   : > { %1788 = vmatmul.msk.bf16.vlgmr.msra.gmra.mxu3 %vm626_vm4, %v1250_v49  ;;  %v1421_v51 = vsel %vm626_vm4, %v1936_v50, 0.0 }
 0xe1e   : > { %1422 = vadd.xlane.f32.xlu2 %v1421_v51  ;;  %v1889_v51 = vld [vmem:[%s2377_s8 + $0x1] ss:$0 sm:$0xff] }
 0xe21   : > { %v1344_v52 = vpop.xlane.xlu2 %1343 }
 0xe22   : > { %1937 = vrcp.f32 %v1344_v52 }
 0xe28   : > { %v1938_v53 = vpop.eup %1937 }
 0xe29   : > { %v1346_v54 = vmul.f32 %v1938_v53, %v1932_v37  ;;  %v1349_v39 = vpop.permute.xlu1 %1348  ;;  %v1890_v53 = vld [vmem:[%s2378_s9 + $0x1] ss:$0 sm:$0xff] }
 0xe2a   : > { %v1354_v55 = vsel %vm665_vm5, %v1349_v39, 0 }
 0xe2b   : > { %v1347_v56 = vpack.c.bf16 %v1346_v54, %v1346_v54  ;;  %1363 = vmatpush.bf16.msrb.mxu3 %v1354_v55 }
 0xe2e   : > { %1792 = vmatmul.msk.bf16.vlgmr.msrb.gmra.mxu3 %vm626_vm4, %v1347_v56 }
 0xe2f   : > { %1462 = vmatpush.bf16.msra.mxu3 %v1453_v12 }
 0xe36   : > { %1427 = vrot.lane.b32.xlu2 %v2237_v40, %s2399_s19 }
 0xe91   : > { %v1423_v61 = vpop.xlane.xlu2 %1422 }
 0xe92   : > { %1939 = vrcp.f32 %v1423_v61 }
 0xe98   : > { %v1940_v62 = vpop.eup %1939 }
 0xe99   : > { %v1425_v63 = vmul.f32 %v1940_v62, %v1936_v50  ;;  %v1428_v1 = vpop.permute.xlu2 %1427 }
 0xe9a   : > { %v1433_v40 = vsel %vm665_vm5, %v1428_v1, 0 }
 0xe9b   : > { %v1426_v2 = vpack.c.bf16 %v1425_v63, %v1425_v63  ;;  %1442 = vmatpush.bf16.msra.mxu1 %v1433_v40  ;;  %v1892_v40 = vld [vmem:[%s2382_s13 + $0x1] ss:$0 sm:$0xff] }
 0xe9e   : > { %1795 = vmatmul.msk.bf16.vlgmr.msra.gmra.mxu1 %vm626_vm4, %v1426_v2 }
 0xea0   : > { %v1268_v3 = vpop.f32.mrf.mxu3 }
 0xea1   : > { %v1272_v4 = vpack.c.bf16 %v1268_v3, %v1268_v3 }
 0xea3   : > { %1789 = vmatmul.msk.bf16.vlgmr.msrb.gmra.mxu2 %vm626_vm4, %v1272_v4 }
 0xea4   : > { %1543 = vmatpush.bf16.msrb.mxu2 %v1852_v34 }
 0xea8   : > { %v1270_v5 = vpop.f32.mrf.mxu3 }
 0xeb1   : > { %v1365_v7 = vpop.f32.mrf.mxu3 }
 0xeb2   : > { %v1369_v9 = vpack.c.bf16 %v1365_v7, %v1365_v7 }
 0xeb4   : > { %1793 = vmatmul.msk.bf16.vlgmr.msra.gmra.mxu2 %vm626_vm4, %v1369_v9 }
 0xeb9   : > { %v1367_v10 = vpop.f32.mrf.mxu3 }
 0xf1b   : > { %v1444_v13 = vpop.f32.mrf.mxu1 }
 0xf1c   : > { %v1448_v14 = vpack.c.bf16 %v1444_v13, %v1444_v13 }
 0xf1e   : > { %1796 = vmatmul.msk.bf16.vlgmr.msra.gmra.mxu3 %vm626_vm4, %v1448_v14 }
 0xf23   : > { %v1446_v15 = vpop.f32.mrf.mxu1 }
 0xf26   : > { %v1288_v16 = vpop.f32.mrf.mxu2 }
 0xf27   : > { %v1308_v18 = vadd.f32 %v2280_v23, %v1288_v16 }
 0xf2e   : > { %v1290_v17 = vpop.f32.mrf.mxu2 }
 0xf37   : > { %v1385_v19 = vpop.f32.mrf.mxu2 }
 0xf38   : > { %v1389_v20 = vadd.f32 %v1385_v19, %v1308_v18 }
 0xf3f   : > { %v1387_v21 = vpop.f32.mrf.mxu2 }
 0xfa1   : > { %v1464_v24 = vpop.f32.mrf.mxu3 }
 0xfa2   : > { %v1468_v26 = vadd.f32 %v1464_v24, %v1389_v20 }
 0xfa4   : > { %v1472_v27 = vadd.f32 %v1888_v22, %v1468_v26 }
 0xfa6   : > { %v1473_v28 = vadd.f32 %v1472_v27, %v2214_v6  ;;  %v1851_v6 = vld [vmem:[%s2379_s10 + $0x10] sm:$0xff] }
 0xfa7   : > { %1544 = vmatpush.bf16.msrb.mxu2 %v1851_v6 }
 0xfa8   : > { %v1478_v29 = vsel %vm539_vm0, %v1473_v28, 0.0 }
 0xfa9   : > { %1479 = vadd.xlane.f32.xlu0 %v1478_v29  ;;  %v1466_v30 = vpop.f32.mrf.mxu3 }
 0xfaa   : > { %v1894_v30 = vld [vmem:[%s2384_s15] ss:$0 sm:$0xff] }
0x101c   : > { %v1480_v31 = vpop.xlane.xlu0 %1479 }
0x101d   : > { %v1481_v25 = vmul.f32 %v1480_v31, %v2072_v8 }
0x101f   : > { %v1482_v23 = vsub.f32 %v1473_v28, %v1481_v25 }
0x1021   : > { %v1483_v32 = vmul.f32 %v1482_v23, %v1482_v23  ;;  %v1505_v52 = vmul.f32 %v1889_v51, %v1482_v23 }
0x1023   : > { %v1484_v33 = vsel %vm539_vm0, %v1483_v32, 0.0 }
0x1024   : > { %1485 = vadd.xlane.f32.xlu1 %v1484_v33 }
0x1097   : > { %v1486_v0 = vpop.xlane.xlu1 %1485 }
0x1098   : > { %v1487_v35 = vmul.f32 0.032258064, %v1486_v0 }
0x109a   : > { %1941 = vrsqrt.f32 %v1487_v35  ;;  %vm1495_vm11 = vcmp.eq.f32.partialorder %v1487_v35, inf  ;;  %v1498_v46 = vand.u32 2147483648, %v1487_v35  ;;  %vm1497_vm12 = vcmp.eq.f32.partialorder %v1487_v35, 0.0 }
0x10a0   : > { %v1942_v37 = vpop.eup %1941 }
0x10a1   : > { %v1489_v41 = vmul.f32 %v1942_v37, %v1487_v35 }
0x10a3   : > { %v1490_v42 = vmul.f32 %v1942_v37, %v1489_v41 }
0x10a5   : > { %v1491_v47 = vmul.f32 0.5, %v1490_v42 }
0x10a7   : > { %v1492_v43 = vsub.f32 1.5, %v1491_v47 }
0x10a9   : > { %v1493_v44 = vmul.f32 %v1942_v37, %v1492_v43 }
0x10ab   : > { %v1494_v45 = vmul.f32 %v1493_v44, %v1487_v35 }
0x10ad   : > { %v1496_v48 = vsel %vm1495_vm11, %v1487_v35, %v1494_v45 }
0x10ae   : > { %v1499_v49 = vsel %vm1497_vm12, %v1498_v46, %v1496_v48 }
0x10af   : > { %v1500_v50 = vadd.f32 1e-06, %v1499_v49 }
0x10b1   : > { %1943 = vrcp.f32 %v1500_v50 }
0x10b7   : > { %v1944_v54 = vpop.eup %1943 }
0x10b8   : > { %v1506_v39 = vmul.f32 %v1944_v54, %v1505_v52 }
0x10ba   : > { %v1510_v55 = vadd.f32 %v1890_v53, %v1506_v39 }
0x10bc   : > { %v1516_v56 = vpack.c.bf16 %v1510_v55, %v1510_v55 }
0x10be   : > { %1812 = vmatmul.msk.bf16.vlgmr.msrb.gmra.mxu2 %vm539_vm0, %v1516_v56 }
0x1141   : > { %v1546_v60 = vpop.f32.mrf.mxu2 }
0x1142   : > { %v1547_v61 = vadd.f32 %v1891_v59, %v1546_v60 }
0x1144   : > { %v1550_v62 = vmax.f32 %v1547_v61, 0.0 }
0x1146   : > { %v1560_v63 = vpack.c.bf16 %v1550_v62, %v1550_v62 }
0x1148   : > { %1837 = vmatmul.msk.bf16.vlgmr.msrb.gmra.mxu0 %vm1049_vm8, %v1560_v63 }
0x1149   : > { %v1548_v1 = vpop.f32.mrf.mxu2 }
0x11c5   : > { %v1597_v2 = vpop.f32.mrf.mxu0 }
0x11c6   : > { %v1601_v3 = vadd.f32 %v1597_v2, %v1473_v28  ;;  %v1893_v28 = vld [vmem:[%s2383_s14] ss:$0 sm:$0xff] }
0x11c8   : > { %v1607_v4 = vadd.f32 %v1892_v40, %v1601_v3 }
0x11ca   : > { %v1610_v5 = vsel %vm539_vm0, %v1607_v4, 0.0 }
0x11cb   : > { %1611 = vadd.xlane.f32.xlu2 %v1610_v5 }
0x11cd   : > { %v1599_v7 = vpop.f32.mrf.mxu0 }
0x123e   : > { %v1612_v9 = vpop.xlane.xlu2 %1611 }
0x123f   : > { %v1613_v10 = vmul.f32 %v1612_v9, %v2072_v8 }
0x1241   : > { %v1614_v11 = vsub.f32 %v1607_v4, %v1613_v10 }
0x1243   : > { %v1615_v12 = vmul.f32 %v1614_v11, %v1614_v11  ;;  %v1637_v29 = vmul.f32 %v1893_v28, %v1614_v11 }
0x1245   : > { %v1616_v13 = vsel %vm539_vm0, %v1615_v12, 0.0 }
0x1246   : > { %1617 = vadd.xlane.f32.xlu0 %v1616_v13 }
0x12b9   : > { %v1618_v14 = vpop.xlane.xlu0 %1617 }
0x12ba   : > { %v1619_v15 = vmul.f32 0.032258064, %v1618_v14 }
0x12bc   : > { %1945 = vrsqrt.f32 %v1619_v15  ;;  %vm1627_vm13 = vcmp.eq.f32.partialorder %v1619_v15, inf  ;;  %v1630_v24 = vand.u32 2147483648, %v1619_v15  ;;  %vm1629_vm14 = vcmp.eq.f32.partialorder %v1619_v15, 0.0 }
0x12c2   : > { %v1946_v16 = vpop.eup %1945 }
0x12c3   : > { %v1621_v17 = vmul.f32 %v1946_v16, %v1619_v15 }
0x12c5   : > { %v1622_v18 = vmul.f32 %v1946_v16, %v1621_v17 }
0x12c7   : > { %v1623_v19 = vmul.f32 0.5, %v1622_v18 }
0x12c9   : > { %v1624_v20 = vsub.f32 1.5, %v1623_v19 }
0x12cb   : > { %v1625_v21 = vmul.f32 %v1946_v16, %v1624_v20 }
0x12cd   : > { %v1626_v22 = vmul.f32 %v1625_v21, %v1619_v15 }
0x12cf   : > { %v1628_v26 = vsel %vm1627_vm13, %v1619_v15, %v1626_v22 }
0x12d0   : > { %v1631_v8 = vsel %vm1629_vm14, %v1630_v24, %v1628_v26 }
0x12d1   : > { %v1632_v27 = vadd.f32 1e-06, %v1631_v8 }
0x12d3   : > { %1947 = vrcp.f32 %v1632_v27 }
0x12d9   : > { %v1948_v31 = vpop.eup %1947 }
0x12da   : > { %v1638_v25 = vmul.f32 %v1948_v31, %v1637_v29 }
0x12dc   : > { %v1642_v23 = vadd.f32 %v1894_v30, %v1638_v25 }
0x12de   : > { %1643 = vst.msk [vmem:[%s533_s17] sm:$0xff] %vm539_vm0, %v1642_v23 }
0x12df PF: > { %s26_s21 = sadd.s32 1, %s1955_s21  }
0x12e0   : > { %p23_p4 = scmp.ge.s32.totalorder %s26_s21, 4  }
0x12e2   :  { %25 = sbr.rel (!%p23_p4) target bundleno = 2 (0x2), region = 129 }

// kernel: fwd.3
= control target key start
LH: loop header
LB: loop body
LE: loop exit
PB: predicated region body
PF: predicated region fallthrough
CT: control target
= control target key end

     0   :  { %s4310_s0 = inlined_call_operand.vmem [shape: f32[2,8,32], index: 0, kind: input, shape index: {}]   ;;  %s4311_s1 = inlined_call_operand.vmem [shape: f32[2,8,32], index: 1, kind: input, shape index: {}]   ;;  %s4312_s2 = inlined_call_operand.vmem [shape: f32[2,8,8], index: 2, kind: input, shape index: {}]   ;;  %s4313_s3 = inlined_call_operand.vmem [shape: f32[2,8,8], index: 3, kind: input, shape index: {}]   ;;  %s4314_s4 = inlined_call_operand.vmem [shape: f32[2,1,32], index: 4, kind: input, shape index: {}]   ;;  %s4315_s5 = inlined_call_operand.vmem [shape: f32[2,1,32], index: 5, kind: input, shape index: {}]   ;;  %s4316_s6 = inlined_call_operand.vmem [shape: bf16[2,32,96], index: 6, kind: input, shape index: {}]   ;;  %s4317_s7 = inlined_call_operand.vmem [shape: f32[2,1,96], index: 7, kind: input, shape index: {}]   ;;  %s4318_s8 = inlined_call_operand.vmem [shape: bf16[2,32,32], index: 8, kind: input, shape index: {}]   ;;  %s4319_s9 = inlined_call_operand.vmem [shape: f32[2,1,32], index: 9, kind: input, shape index: {}]   ;;  %s4320_s10 = inlined_call_operand.vmem [shape: f32[2,1,32], index: 10, kind: input, shape index: {}]   ;;  %s4321_s11 = inlined_call_operand.vmem [shape: f32[2,1,32], index: 11, kind: input, shape index: {}]   ;;  %s4322_s12 = inlined_call_operand.vmem [shape: bf16[2,32,32], index: 12, kind: input, shape index: {}]   ;;  %s4323_s13 = inlined_call_operand.vmem [shape: f32[2,1,32], index: 13, kind: input, shape index: {}]   ;;  %s4324_s14 = inlined_call_operand.vmem [shape: bf16[2,32,64], index: 14, kind: input, shape index: {}]   ;;  %s4325_s15 = inlined_call_operand.vmem [shape: f32[2,1,64], index: 15, kind: input, shape index: {}]   ;;  %s4326_s16 = inlined_call_operand.vmem [shape: bf16[2,32,32], index: 16, kind: input, shape index: {}]   ;;  %s4327_s17 = inlined_call_operand.vmem [shape: f32[2,1,32], index: 17, kind: input, shape index: {}]   ;;  %s4328_s18 = inlined_call_operand.vmem [shape: f32[2,1,32], index: 18, kind: input, shape index: {}]   ;;  %s4329_s19 = inlined_call_operand.vmem [shape: f32[2,1,32], index: 19, kind: input, shape index: {}]   ;;  %s4330_s20 = inlined_call_operand.vmem [shape: bf16[2,32,64], index: 20, kind: input, shape index: {}]   ;;  %s4331_s21 = inlined_call_operand.vmem [shape: f32[2,1,64], index: 21, kind: input, shape index: {}]   ;;  %s4332_s22 = inlined_call_operand.vmem [shape: bf16[2,64,32], index: 22, kind: input, shape index: {}]   ;;  %s4333_s23 = inlined_call_operand.vmem [shape: f32[2,1,32], index: 23, kind: input, shape index: {}]   ;;  %s4334_s24 = inlined_call_operand.vmem [shape: f32[1,32], index: 24, kind: input, shape index: {}]   ;;  %s4335_s25 = inlined_call_operand.vmem [shape: f32[1,32], index: 25, kind: input, shape index: {}]   ;;  %s4336_s26 = inlined_call_operand.vmem [shape: bf16[32,16], index: 26, kind: input, shape index: {}]   ;;  %s4337_s27 = inlined_call_operand.vmem [shape: f32[1,16], index: 27, kind: input, shape index: {}]   ;;  %s4338_s28 = inlined_call_operand.hbm [shape: f32[2,8,16], index: 28, kind: output, shape index: {}]  }
   0x1   :  { %4381 = sst [smem:[#allocation15_spill]] %s4310_s0 }
   0x2   :  { %4382 = sst [smem:[#allocation16_spill]] %s4311_s1 }
   0x3   :  { %4383 = sst [smem:[#allocation17_spill]] %s4312_s2 }
   0x4   :  { %4384 = sst [smem:[#allocation18_spill]] %s4313_s3 }
   0x5   :  { %4385 = sst [smem:[#allocation19_spill]] %s4314_s4 }
   0x6   :  { %4386 = sst [smem:[#allocation20_spill]] %s4315_s5 }
   0x7   :  { %4387 = sst [smem:[#allocation21_spill]] %s4316_s6 }
   0x8   :  { %4388 = sst [smem:[#allocation22_spill]] %s4317_s7 }
   0x9   :  { %4389 = sst [smem:[#allocation23_spill]] %s4318_s8 }
   0xa   :  { %4390 = sst [smem:[#allocation24_spill]] %s4319_s9 }
   0xb   :  { %4391 = sst [smem:[#allocation25_spill]] %s4320_s10 }
   0xc   :  { %4392 = sst [smem:[#allocation26_spill]] %s4321_s11 }
   0xd   :  { %4393 = sst [smem:[#allocation27_spill]] %s4322_s12 }
   0xe   :  { %4394 = sst [smem:[#allocation28_spill]] %s4323_s13 }
   0xf   :  { %4395 = sst [smem:[#allocation29_spill]] %s4325_s15 }
  0x10   :  { %4396 = sst [smem:[#allocation30_spill]] %s4326_s16 }
  0x11   :  { %4397 = sst [smem:[#allocation31_spill]] %s4327_s17 }
  0x12   :  { %4398 = sst [smem:[#allocation32_spill]] %s4334_s24 }
  0x13   :  { %4399 = sst [smem:[#allocation33_spill]] %s4335_s25 }
  0x14   :  { %4400 = sst [smem:[#allocation34_spill]] %s4336_s26 }
  0x15   :  { %4401 = sst [smem:[#allocation35_spill]] %s4337_s27 }
  0x16   :  { %4402 = sst [smem:[#allocation36_spill]] %s4338_s28 }
  0x17   :  { %33 = vsyncpa [#allocation3], 0 }
  0x18   :  { %35 = vsyncpa [#allocation3 + $0x1], 0  ;;  %s3683_s8 = smov 0   ;;  %s3685_s5 = smov 0  }
  0x19   :  { %s3687_s9 = smov 0   ;;  %s3689_s30 = smov 0  }
  0x1a LB: > { %4403 = sst [smem:[#allocation5_spill]] %s3512_s8  ;;  %s3704_s3 = sadd.s32 4294967295, %s3524_s30   ;;  %s3524_s30 = sphi %s3689_s30, %s4465_s30   ;;  %s3520_s9 = sphi %s3687_s9, %s4468_s9   ;;  %s3516_s5 = sphi %s3685_s5, %s4467_s5   ;;  %s3512_s8 = sphi %s3683_s8, %s4466_s8  }
  0x1b   : > { %4404 = sst [smem:[#allocation6_spill]] %s3516_s5  ;;  %s3035_s6 = sadd.s32 4294967294, %s3524_s30  }
  0x1c   : > { %4405 = sst [smem:[#allocation7_spill]] %s3520_s9  ;;  %s3708_s10 = sadd.s32 1, %s3524_s30  }
  0x1d   : > { %4406 = sst [smem:[#allocation8_spill]] %s3524_s30  ;;  %s656_s0 = sadd.s32 1, %s3520_s9 }
  0x1e   : > { %4407 = sst [smem:[#allocation9_spill]] %s3704_s3  ;;  %s653_s11 = ssub.s32 %s3524_s30, %s3708_s10 }
  0x1f   : > { %4408 = sst [smem:[#allocation10_spill]] %s3708_s10  ;;  %p666_p0 = scmp.ne.s32.totalorder %s3520_s9, %s3516_s5 }
  0x20   : > { %p654_p1 = scmp.eq.s32.totalorder %s653_s11, 0  ;;  %p667_p2 = scmp.eq.s32.totalorder %s3704_s3, 1 }
  0x21   : > { %p672_p3 = scmp.ne.s32.totalorder %s3516_s5, %s3512_s8  ;;  %p673_p4 = scmp.eq.s32.totalorder %s3035_s6, 1 }
  0x22   : > { %s3719_s29 = scalar_select %p654_p1, %s3520_s9, %s656_s0  }
  0x23   : > { %p3721_p5 = por %p667_p2, %p666_p0  ;;  %p3725_p6 = por %p673_p4, %p672_p3 }
  0x24   : > { %4409 = sst [smem:[#allocation11_spill]] %s3719_s29  ;;  %p3038_p7 = scmp.ge.s32.totalorder %s3524_s30, 1 }
  0x25   : > { %s4410_s2 = scalar_select %p3721_p5, 1, 0 }
  0x26   : > { %s4412_s7 = scalar_select %p3725_p6, 1, 0 }
  0x27   : > { %4411 = sst [smem:[#allocation12_spill]] %s4410_s2  ;;  %p791_p8 = scmp.lt.s32.totalorder %s3524_s30, 3 }
  0x28   : > { %4413 = sst [smem:[#allocation13_spill]] %s4412_s7 }
  0x29   : > { %p792_p9 = pnand %p3038_p7, %p791_p8 }
  0x2b   : > { %795 = sbr.rel (%p792_p9) target bundleno = 8517 (0x2145), region = 132 }
  0x30   : > { %p876_p10 = scmp.lt.s32.totalorder %s3704_s3, 1  ;;  %vm899_vm0 = vcmask 261120   ;;  %s4414_s0 = sld [smem:[#allocation15_spill]]  ;;  %v3526_v2 = vmov 32.0   ;;  %vm986_vm4 = vcmask 64512   ;;  %vm1025_vm5 = vcmask 1043456  }
  0x31   : > { %3362 = vrcp.f32 %v3526_v2  ;;  %s4415_s6 = sld [smem:[#allocation21_spill]]  ;;  %s4360_s29 = smov 96   ;;  %vm1842_vm10 = vcmask 523264  }
  0x32   : > { %s877_s12 = scalar_select %p876_p10, %s3704_s3, 1 }
  0x33   : > { %s4417_s9 = sld [smem:[#allocation20_spill]]  ;;  %s4362_s8 = smov 112  }
  0x34   : > { %s3733_s1 = sshll.u32 %s877_s12, 3  ;;  %s4419_s30 = sld [smem:[#allocation22_spill]] }
  0x35   : > { %s4356_s12 = smov 88   ;;  %s4421_s4 = sld [smem:[#allocation17_spill]] }
  0x36   : > { %s879_s11 = scalar_lea.vmem %s4414_s0, %s3733_s1  ;;  %s4416_s0 = sld [smem:[#allocation19_spill]] }
  0x37   : > { %v3739_v0 = vld [vmem:[%s879_s11] sm:$0xff]  ;;  %v3363_v3 = vpop.eup %3362  ;;  %v3257_v14 = vld [vmem:[%s4415_s6 + $0x8] sm:$0xff]  ;;  %s4373_s7 = smov 120   ;;  %s4427_s24 = sld [smem:[#allocation27_spill]] }
  0x38   : > { %v900_v1 = vsel %vm899_vm0, %v3739_v0, 0.0  ;;  %v904_v4 = vmul.f32 32.0, %v3363_v3  ;;  %vm908_vm1 = vweird.f32 %v3363_v3  ;;  %970 = vmatpush.bf16.msra.mxu0 %v3257_v14  ;;  %v3256_v15 = vld [vmem:[%s4415_s6] sm:$0xff]  ;;  %s4428_s5 = sld [smem:[#allocation25_spill]]  ;;  %s4442_s27 = smov 72  }
  0x39   : > { %901 = vadd.xlane.f32.xlu0 %v900_v1  ;;  %s4418_s10 = smov %s4417_s9  ;;  %v3334_v31 = vld [vmem:[%s4417_s9] ss:$0 sm:$0xff]  ;;  %s4358_s9 = smov 80  }
  0x3a   : > { %v905_v5 = vsub.f32 1.0, %v904_v4  ;;  %s4420_s2 = smov %s4419_s30  ;;  %v3335_v36 = vld [vmem:[%s4419_s30] ss:$0 sm:$0xff]  ;;  %s4368_s30 = smov 64  }
  0x3b   : > { %s3783_s11 = scalar_lea.vmem %s4421_s4, %s3733_s1  ;;  %s4369_s4 = smov 72  }
  0x3c   : > { %v906_v6 = vmul.f32 %v3363_v3, %v905_v5  ;;  %971 = vmatpush.bf16.msra.mxu0 %v3256_v15  ;;  %v3333_v29 = vld [vmem:[%s4416_s0] ss:$0 sm:$0xff]  ;;  %s4431_s15 = sld [smem:[#allocation29_spill]] }
  0x3d   : > { %v3786_v47 = vld [vmem:[%s3783_s11] sm:$0xff]  ;;  %s4433_s13 = sld [smem:[#allocation28_spill]] }
  0x3e   : > { %v907_v7 = vadd.f32 %v3363_v3, %v906_v6  ;;  %s4429_s3 = smov %s4428_s5  ;;  %s4439_s16 = sld [smem:[#allocation30_spill]] }
  0x3f   : > { %s4443_s17 = sld [smem:[#allocation31_spill]] }
  0x40   : > { %v3743_v8 = vsel %vm908_vm1, %v3363_v3, %v907_v7  ;;  %s4460_s26 = sld [smem:[#allocation36_spill]] }
  0xac   : > { %v902_v9 = vpop.xlane.xlu0 %901 }
  0xad   : > { %v910_v10 = vmul.f32 %v3743_v8, %v902_v9 }
  0xaf   : > { %v911_v11 = vsub.f32 %v3739_v0, %v910_v10 }
  0xb1   : > { %v912_v12 = vmul.f32 %v911_v11, %v911_v11  ;;  %v934_v30 = vmul.f32 %v3333_v29, %v911_v11 }
  0xb3   : > { %v913_v13 = vsel %vm899_vm0, %v912_v12, 0.0 }
  0xb4   : > { %914 = vadd.xlane.f32.xlu0 %v913_v13 }
 0x127   : > { %v915_v16 = vpop.xlane.xlu0 %914 }
 0x128   : > { %v916_v17 = vmul.f32 0.032258064, %v915_v16 }
 0x12a   : > { %3364 = vrsqrt.f32 %v916_v17  ;;  %vm924_vm2 = vcmp.eq.f32.partialorder %v916_v17, inf  ;;  %v927_v25 = vand.u32 2147483648, %v916_v17  ;;  %vm926_vm3 = vcmp.eq.f32.partialorder %v916_v17, 0.0 }
 0x130   : > { %v3365_v18 = vpop.eup %3364 }
 0x131   : > { %v918_v19 = vmul.f32 %v3365_v18, %v916_v17 }
 0x133   : > { %v919_v20 = vmul.f32 %v3365_v18, %v918_v19 }
 0x135   : > { %v920_v21 = vmul.f32 0.5, %v919_v20 }
 0x137   : > { %v921_v22 = vsub.f32 1.5, %v920_v21 }
 0x139   : > { %v922_v23 = vmul.f32 %v3365_v18, %v921_v22 }
 0x13b   : > { %v923_v24 = vmul.f32 %v922_v23, %v916_v17 }
 0x13d   : > { %v925_v26 = vsel %vm924_vm2, %v916_v17, %v923_v24 }
 0x13e   : > { %v928_v27 = vsel %vm926_vm3, %v927_v25, %v925_v26 }
 0x13f   : > { %v929_v28 = vadd.f32 1e-06, %v928_v27 }
 0x141   : > { %3366 = vrcp.f32 %v929_v28 }
 0x147   : > { %v3367_v32 = vpop.eup %3366 }
 0x148   : > { %v935_v33 = vmul.f32 %v3367_v32, %v934_v30 }
 0x14a   : > { %v939_v34 = vadd.f32 %v3334_v31, %v935_v33 }
 0x14c   : > { %v944_v35 = vpack.c.bf16 %v939_v34, %v939_v34 }
 0x14e   : > { %3052 = vmatmul.msk.bf16.vlgmr.msra.gmra.mxu0 %vm899_vm0, %v944_v35 }
 0x1cb   : > { %v973_v37 = vpop.f32.mrf.mxu0 }
 0x1cc   : > { %v974_v38 = vadd.f32 %v3335_v36, %v973_v37 }
 0x1ce   : > { %v3764_v39 = vpack.c.bf16 %v974_v38, %v974_v38 }
 0x1d0   : > { %1045 = vrot.lane.b32.xlu0 %v3764_v39, %s4356_s12  ;;  %984 = vrot.lane.b32.xlu1 %v3764_v39, %s4360_s29  ;;  %s4371_s12 = smov 104   ;;  %s4365_s29 = smov 40  }
 0x1d3   : > { %v975_v40 = vpop.f32.mrf.mxu0 }
 0x1d8   : > { %1142 = vrot.lane.b32.xlu0 %v3764_v39, %s4358_s9  ;;  %s4367_s9 = smov 56  }
 0x1e0   : > { %1140 = vrot.lane.b32.xlu0 %v3764_v39, %s4362_s8  ;;  %s4422_s8 = sld [smem:[#allocation23_spill]] }
 0x1e6   : > { %s4423_s28 = smov %s4422_s8  ;;  %v977_v58 = vld [vmem:[%s4422_s8] sm:$0xf]  ;;  %s4366_s8 = smov 48  }
 0x1e7   : > { %v1125_v59 = vsel %vm1025_vm5, %v977_v58, 0 }
 0x242   : > { %v1046_v41 = vpop.permute.xlu0 %1045  ;;  %v985_v42 = vpop.permute.xlu1 %984 }
 0x243   : > { %v991_v43 = vsel %vm986_vm4, %v985_v42, 0  ;;  %v1051_v44 = vsel %vm986_vm4, %v1046_v41, 0 }
 0x244   : > { %1000 = vmatpush.bf16.xpose.msra.mxu1 %v991_v43  ;;  %1060 = vmatpush.bf16.xpose.msra.mxu3 %v1051_v44 }
 0x24a   : > { %v1143_v45 = vpop.permute.xlu0 %1142 }
 0x24b   : > { %3053 = vmatmul.msk.bf16.vlgmr.msra.gmra.mxu1 %vm986_vm4, %v3764_v39  ;;  %v1148_v46 = vsel %vm986_vm4, %v1143_v45, 0 }
 0x24c   : > { %1157 = vmatpush.bf16.xpose.msrb.mxu3 %v1148_v46  ;;  %1134 = vmatpush.bf16.msrb.mxu1 %v1125_v59  ;;  %v978_v59 = vld [vmem:[%s4423_s28 + $0x4] sm:$0xf] }
 0x252   : > { %v1141_v6 = vpop.permute.xlu0 %1140 }
 0x2c8   : > { %v1002_v48 = vpop.f32.mrf.mxu1 }
 0x2c9   : > { %v1006_v49 = vmul.f32 0.35355338, %v1002_v48 }
 0x2cb   : > { %v1007_v50 = vadd.f32 %v1006_v49, %v3786_v47 }
 0x2cd   : > { %v1008_v51 = vsel %vm986_vm4, %v1007_v50, -inf }
 0x2ce   : > { %1009 = vmax.xlane.f32.xlu1 %v1008_v51 }
 0x2d0   : > { %v1004_v52 = vpop.f32.mrf.mxu1 }
 0x341   : > { %v1010_v53 = vpop.xlane.xlu1 %1009 }
 0x342   : > { %v1011_v54 = vsub.f32 %v1007_v50, %v1010_v53 }
 0x344   : > { %v1012_v55 = vmul.f32 1.442695, %v1011_v54 }
 0x346   : > { %3368 = vpow2.f32 %v1012_v55 }
 0x34c   : > { %v3369_v56 = vpop.eup %3368 }
 0x34d   : > { %v1014_v57 = vsel %vm986_vm4, %v3369_v56, 0.0 }
 0x34e   : > { %1015 = vadd.xlane.f32.xlu2 %v1014_v57 }
 0x366   : > { %1020 = vrot.lane.b32.xlu2 %v3764_v39, %s4368_s30  ;;  %s4424_s30 = sld [smem:[#allocation24_spill]] }
 0x36e   : > { %1043 = vrot.lane.b32.xlu2 %v3764_v39, %s4373_s7  ;;  %s4456_s7 = sld [smem:[#allocation33_spill]] }
 0x376   : > { %1221 = vrot.lane.b32.xlu2 %v3764_v39, %s4369_s4 }
 0x37e   : > { %1219 = vrot.lane.b32.xlu2 %v3764_v39, %s4371_s12  ;;  %s4435_s12 = smov 112  }
 0x3c1   : > { %v1016_v60 = vpop.xlane.xlu2 %1015 }
 0x3c2   : > { %3370 = vrcp.f32 %v1016_v60  ;;  %v1106_v60 = vsel %vm1025_vm5, %v978_v59, 0 }
 0x3c3   : > { %1115 = vmatpush.bf16.msrb.mxu0 %v1106_v60  ;;  %v3339_v60 = vld [vmem:[%s4431_s15] ss:$0 sm:$0xff]  ;;  %s4447_s15 = smov 40  }
 0x3c8   : > { %v3371_v61 = vpop.eup %3370 }
 0x3c9   : > { %v1021_v62 = vpop.permute.xlu2 %1020  ;;  %v1018_v63 = vmul.f32 %v3371_v61, %v3369_v56 }
 0x3ca   : > { %v1027_v1 = vsel %vm1025_vm5, %v1021_v62, 0  ;;  %v979_v62 = vld [vmem:[%s4423_s28 + $0x8] sm:$0xf] }
 0x3cb   : > { %1036 = vmatpush.bf16.msra.mxu2 %v1027_v1  ;;  %v1019_v2 = vpack.c.bf16 %v1018_v63, %v1018_v63  ;;  %v1203_v63 = vsel %vm1025_vm5, %v979_v62, 0 }
 0x3cc   : > { %1212 = vmatpush.bf16.msra.mxu0 %v1203_v63 }
 0x3ce   : > { %3054 = vmatmul.msk.bf16.vlgmr.msra.gmra.mxu2 %vm986_vm4, %v1019_v2 }
 0x3d1   : > { %v1044_v3 = vpop.permute.xlu2 %1043 }
 0x3d2   : > { %3055 = vmatmul.msk.bf16.vlgmr.msra.gmra.mxu3 %vm986_vm4, %v1044_v3 }
 0x3d9   : > { %v1222_v4 = vpop.permute.xlu2 %1221 }
 0x3da   : > { %v1227_v5 = vsel %vm986_vm4, %v1222_v4, 0 }
 0x3db   : > { %1236 = vmatpush.bf16.xpose.msra.mxu1 %v1227_v5 }
 0x3e1   : > { %v1220_v16 = vpop.permute.xlu2 %1219 }
 0x3e2   : > { %3059 = vmatmul.msk.bf16.vlgmr.msrb.gmra.mxu3 %vm986_vm4, %v1141_v6 }
 0x451   : > { %v1038_v7 = vpop.f32.mrf.mxu2 }
 0x452   : > { %v1042_v9 = vpack.c.bf16 %v1038_v7, %v1038_v7 }
 0x454   : > { %3058 = vmatmul.msk.bf16.vlgmr.msrb.gmra.mxu1 %vm986_vm4, %v1042_v9 }
 0x455   : > { %v1062_v10 = vpop.f32.mrf.mxu3 }
 0x456   : > { %v1066_v11 = vmul.f32 0.35355338, %v1062_v10 }
 0x458   : > { %v1067_v12 = vadd.f32 %v1066_v11, %v3786_v47  ;;  %v980_v11 = vld [vmem:[%s4423_s28 + $0xc] sm:$0xf] }
 0x459   : > { %v1040_v13 = vpop.f32.mrf.mxu2 }
 0x45a   : > { %v1068_v14 = vsel %vm986_vm4, %v1067_v12, -inf }
 0x45b   : > { %1069 = vmax.xlane.f32.xlu1 %v1068_v14 }
 0x45d   : > { %v1064_v15 = vpop.f32.mrf.mxu3 }
 0x464   : > { %3062 = vmatmul.msk.bf16.vlgmr.msra.gmra.mxu1 %vm986_vm4, %v1220_v16 }
 0x465   : > { %v1159_v17 = vpop.f32.mrf.mxu3 }
 0x466   : > { %v1163_v18 = vmul.f32 0.35355338, %v1159_v17 }
 0x468   : > { %v1164_v19 = vadd.f32 %v1163_v18, %v3786_v47 }
 0x46a   : > { %v1165_v20 = vsel %vm986_vm4, %v1164_v19, -inf }
 0x46b   : > { %1166 = vmax.xlane.f32.xlu2 %v1165_v20 }
 0x46d   : > { %v1161_v21 = vpop.f32.mrf.mxu3 }
 0x483   : > { %1256 = vrot.lane.b32.xlu2 %v3764_v39, %s4365_s29  ;;  %s4425_s29 = smov %s4424_s30 }
 0x4ce   : > { %v1070_v22 = vpop.xlane.xlu1 %1069 }
 0x4cf   : > { %v1071_v23 = vsub.f32 %v1067_v12, %v1070_v22  ;;  %v1282_v12 = vsel %vm1025_vm5, %v980_v11, 0  ;;  %v3336_v22 = vld [vmem:[%s4424_s30] ss:$0 sm:$0xff]  ;;  %s4426_s30 = sld [smem:[#allocation16_spill]] }
 0x4d1   : > { %v1072_v24 = vmul.f32 1.442695, %v1071_v23  ;;  %v3816_v25 = vpop.f32.mrf.mxu1 }
 0x4d3   : > { %3372 = vpow2.f32 %v1072_v24 }
 0x4d5   : > { %s883_s4 = scalar_lea.vmem %s4426_s30, %s3733_s1  ;;  %s4440_s30 = smov 80  }
 0x4d9   : > { %v3373_v26 = vpop.eup %3372  ;;  %v1138_v27 = vpop.f32.mrf.mxu1 }
 0x4da   : > { %v1074_v28 = vsel %vm986_vm4, %v3373_v26, 0.0 }
 0x4db   : > { %1075 = vadd.xlane.f32.xlu1 %v1074_v28 }
 0x4de   : > { %v1167_v29 = vpop.xlane.xlu2 %1166 }
 0x4df   : > { %v1168_v30 = vsub.f32 %v1164_v19, %v1167_v29 }
 0x4e1   : > { %v1169_v31 = vmul.f32 1.442695, %v1168_v30  ;;  %v1238_v32 = vpop.f32.mrf.mxu1 }
 0x4e2   : > { %v1242_v33 = vmul.f32 0.35355338, %v1238_v32 }
 0x4e3   : > { %3374 = vpow2.f32 %v1169_v31 }
 0x4e4   : > { %v1243_v34 = vadd.f32 %v1242_v33, %v3786_v47 }
 0x4e6   : > { %v1257_v35 = vpop.permute.xlu2 %1256  ;;  %v1244_v36 = vsel %vm986_vm4, %v1243_v34, -inf }
 0x4e7   : > { %v1262_v37 = vsel %vm1025_vm5, %v1257_v35, 0  ;;  %1245 = vmax.xlane.f32.xlu0 %v1244_v36  ;;  %v3260_v35 = vld [vmem:[%s4324_s14] sm:$0xff] }
 0x4e8   : > { %1271 = vmatpush.bf16.msra.mxu3 %v1262_v37  ;;  %v3259_v37 = vld [vmem:[%s4427_s24 + $0x8] sm:$0xff] }
 0x4e9   : > { %v1240_v38 = vpop.f32.mrf.mxu1  ;;  %v3375_v40 = vpop.eup %3374 }
 0x4ea   : > { %v1171_v41 = vsel %vm986_vm4, %v3375_v40, 0.0  ;;  %v3258_v38 = vld [vmem:[%s4427_s24] sm:$0xff] }
 0x4ef   : > { %1172 = vadd.xlane.f32.xlu0 %v1171_v41 }
 0x4f4   : > { %1080 = vrot.lane.b32.xlu1 %v3764_v39, %s4367_s9  ;;  %s4436_s9 = sld [smem:[#allocation18_spill]] }
 0x4fa   : > { %s3909_s25 = scalar_lea.vmem %s4436_s9, %s3733_s1  ;;  %s4438_s1 = smov 96  }
 0x4fb   : > { %4437 = sst [smem:[#allocation14_spill]] %s3909_s25  ;;  %s4441_s9 = smov 88  }
 0x503   : > { %1177 = vrot.lane.b32.xlu0 %v3764_v39, %s4366_s8  ;;  %s4432_s8 = smov 120  }
 0x54e   : > { %v1076_v42 = vpop.xlane.xlu1 %1075 }
 0x54f   : > { %3376 = vrcp.f32 %v1076_v42 }
 0x555   : > { %v3377_v46 = vpop.eup %3376 }
 0x556   : > { %v1078_v49 = vmul.f32 %v3377_v46, %v3373_v26 }
 0x558   : > { %v1079_v54 = vpack.c.bf16 %v1078_v49, %v1078_v49 }
 0x55a   : > { %v1246_v43 = vpop.xlane.xlu0 %1245 }
 0x55b   : > { %v1247_v44 = vsub.f32 %v1243_v34, %v1246_v43  ;;  %v894_v34 = vld [vmem:[%s883_s4] sm:$0xff]  ;;  %s4430_s4 = sld [smem:[#allocation26_spill]] }
 0x55c   : > { %v3870_v36 = vpack.c.bf16 %v894_v34, %v894_v34 }
 0x55d   : > { %v1248_v45 = vmul.f32 1.442695, %v1247_v44 }
 0x55f   : > { %3378 = vpow2.f32 %v1248_v45 }
 0x562   : > { %v1173_v53 = vpop.xlane.xlu0 %1172 }
 0x563   : > { %3380 = vrcp.f32 %v1173_v53 }
 0x565   : > { %v3379_v48 = vpop.eup %3378 }
 0x566   : > { %v1081_v50 = vpop.permute.xlu1 %1080  ;;  %v1250_v51 = vsel %vm986_vm4, %v3379_v48, 0.0 }
 0x567   : > { %1251 = vadd.xlane.f32.xlu1 %v1250_v51  ;;  %v1086_v52 = vsel %vm1025_vm5, %v1081_v50, 0 }
 0x568   : > { %1095 = vmatpush.bf16.msrb.mxu2 %v1086_v52 }
 0x569   : > { %v3381_v39 = vpop.eup %3380 }
 0x56a   : > { %v1175_v55 = vmul.f32 %v3381_v39, %v3375_v40 }
 0x56b   : > { %3056 = vmatmul.msk.bf16.vlgmr.msrb.gmra.mxu2 %vm986_vm4, %v1079_v54  ;;  %v3337_v54 = vld [vmem:[%s4428_s5] ss:$0 sm:$0xff]  ;;  %s4434_s5 = smov 104  }
 0x56c   : > { %v1176_v58 = vpack.c.bf16 %v1175_v55, %v1175_v55  ;;  %v3338_v55 = vld [vmem:[%s4430_s4] ss:$0 sm:$0xff]  ;;  %s4451_s4 = sld [smem:[#allocation30_spill]] }
 0x575   : > { %v1178_v56 = vpop.permute.xlu0 %1177 }
 0x576   : > { %v1183_v57 = vsel %vm1025_vm5, %v1178_v56, 0 }
 0x577   : > { %1192 = vmatpush.bf16.msra.mxu2 %v1183_v57 }
 0x57b   : > { %3060 = vmatmul.msk.bf16.vlgmr.msra.gmra.mxu2 %vm986_vm4, %v1176_v58 }
 0x57c   : > { %1291 = vmatpush.bf16.msrb.mxu2 %v1282_v12  ;;  %v3912_v12 = vld [vmem:[%s3909_s25] sm:$0xff]  ;;  %s4444_s25 = smov 64  }
 0x5da   : > { %v1252_v61 = vpop.xlane.xlu1 %1251 }
 0x5db   : > { %3382 = vrcp.f32 %v1252_v61 }
 0x5e1   : > { %v3383_v1 = vpop.eup %3382 }
 0x5e2   : > { %v1254_v2 = vmul.f32 %v3383_v1, %v3379_v48 }
 0x5e4   : > { %v1255_v3 = vpack.c.bf16 %v1254_v2, %v1254_v2 }
 0x5e6   : > { %3063 = vmatmul.msk.bf16.vlgmr.msra.gmra.mxu3 %vm986_vm4, %v1255_v3  ;;  %v3340_v3 = vld [vmem:[%s4433_s13] ss:$0 sm:$0xff]  ;;  %s4448_s13 = sld [smem:[#allocation26_spill]] }
 0x5ee   : > { %v1097_v4 = vpop.f32.mrf.mxu2 }
 0x5ef   : > { %v1101_v5 = vpack.c.bf16 %v1097_v4, %v1097_v4 }
 0x5f1   : > { %3057 = vmatmul.msk.bf16.vlgmr.msrb.gmra.mxu0 %vm986_vm4, %v1101_v5 }
 0x5f2   : > { %1368 = vmatpush.bf16.msrb.mxu0 %v3259_v37 }
 0x5f6   : > { %v1099_v6 = vpop.f32.mrf.mxu2  ;;  %1369 = vmatpush.bf16.msrb.mxu0 %v3258_v38 }
 0x5fe   : > { %v1194_v7 = vpop.f32.mrf.mxu2 }
 0x5ff   : > { %v1198_v9 = vpack.c.bf16 %v1194_v7, %v1194_v7 }
 0x601   : > { %3061 = vmatmul.msk.bf16.vlgmr.msra.gmra.mxu0 %vm986_vm4, %v1198_v9 }
 0x606   : > { %v1196_v10 = vpop.f32.mrf.mxu2 }
 0x669   : > { %v1273_v13 = vpop.f32.mrf.mxu3 }
 0x66a   : > { %v1277_v14 = vpack.c.bf16 %v1273_v13, %v1273_v13 }
 0x66c   : > { %3064 = vmatmul.msk.bf16.vlgmr.msrb.gmra.mxu2 %vm986_vm4, %v1277_v14 }
 0x66e   : > { %v1117_v15 = vpop.f32.mrf.mxu0 }
 0x66f   : > { %v1137_v18 = vadd.f32 %v3816_v25, %v1117_v15 }
 0x671   : > { %v1275_v16 = vpop.f32.mrf.mxu3 }
 0x676   : > { %v1119_v17 = vpop.f32.mrf.mxu0 }
 0x67e   : > { %v1214_v19 = vpop.f32.mrf.mxu0 }
 0x67f   : > { %v1218_v20 = vadd.f32 %v1214_v19, %v1137_v18 }
 0x686   : > { %v1216_v21 = vpop.f32.mrf.mxu0 }
 0x6ef   : > { %v1293_v23 = vpop.f32.mrf.mxu2 }
 0x6f0   : > { %v1297_v24 = vadd.f32 %v1293_v23, %v1218_v20 }
 0x6f2   : > { %v1301_v26 = vadd.f32 %v3336_v22, %v1297_v24 }
 0x6f4   : > { %v3853_v27 = vadd.f32 %v1301_v26, %v3739_v0  ;;  %v3261_v0 = vld [vmem:[%s4324_s14 + $0x8] sm:$0xff] }
 0x6f5   : > { %1405 = vmatpush.bf16.msrb.mxu1 %v3261_v0 }
 0x6f6   : > { %v1305_v28 = vsel %vm899_vm0, %v3853_v27, 0.0 }
 0x6f7   : > { %v1295_v29 = vpop.f32.mrf.mxu2  ;;  %1306 = vadd.xlane.f32.xlu2 %v1305_v28 }
 0x6f9   : > { %1406 = vmatpush.bf16.msrb.mxu1 %v3260_v35 }
 0x6fc   : > { %3082 = vmatmul.msk.bf16.vlgmr.msrb.gmra.mxu1 %vm899_vm0, %v3870_v36 }
 0x76a   : > { %v1307_v25 = vpop.xlane.xlu2 %1306 }
 0x76b   : > { %v1308_v30 = vmul.f32 %v1307_v25, %v3743_v8 }
 0x76d   : > { %v1309_v31 = vsub.f32 %v3853_v27, %v1308_v30 }
 0x76f   : > { %v1310_v32 = vmul.f32 %v1309_v31, %v1309_v31  ;;  %v1332_v39 = vmul.f32 %v3337_v54, %v1309_v31  ;;  %v1412_v31 = vld [vmem:[%s4439_s16] sm:$0xf] }
 0x770   : > { %v1558_v0 = vsel %vm1025_vm5, %v1412_v31, 0 }
 0x771   : > { %v1311_v33 = vsel %vm899_vm0, %v1310_v32, 0.0 }
 0x772   : > { %1312 = vadd.xlane.f32.xlu0 %v1311_v33 }
 0x779   : > { %v1408_v61 = vpop.f32.mrf.mxu1 }
 0x77a   : > { %v1409_v62 = vadd.f32 %v3339_v60, %v1408_v61 }
 0x77c   : > { %v3890_v63 = vpack.c.bf16 %v1409_v62, %v1409_v62 }
 0x77e   : > { %1478 = vrot.lane.b32.xlu2 %v3890_v63, %s4432_s8  ;;  %v1423_v1 = vsel %vm986_vm4, %v3890_v63, 0 }
 0x77f   : > { %1432 = vmatpush.bf16.xpose.msrb.mxu3 %v1423_v1 }
 0x781   : > { %v1410_v2 = vpop.f32.mrf.mxu1 }
 0x7d8   : > { %v1479_v9 = vpop.permute.xlu2 %1478 }
 0x7d9   : > { %v1484_v10 = vsel %vm986_vm4, %v1479_v9, 0 }
 0x7da   : > { %1493 = vmatpush.bf16.xpose.msra.mxu0 %v1484_v10 }
 0x7e5   : > { %v1313_v40 = vpop.xlane.xlu0 %1312 }
 0x7e6   : > { %v1314_v41 = vmul.f32 0.032258064, %v1313_v40 }
 0x7e8   : > { %3384 = vrsqrt.f32 %v1314_v41  ;;  %vm1322_vm6 = vcmp.eq.f32.partialorder %v1314_v41, inf  ;;  %v1325_v50 = vand.u32 2147483648, %v1314_v41  ;;  %vm1324_vm7 = vcmp.eq.f32.partialorder %v1314_v41, 0.0 }
 0x7ee   : > { %v3385_v42 = vpop.eup %3384 }
 0x7ef   : > { %v1316_v43 = vmul.f32 %v3385_v42, %v1314_v41 }
 0x7f1   : > { %v1317_v44 = vmul.f32 %v3385_v42, %v1316_v43 }
 0x7f3   : > { %v1318_v45 = vmul.f32 0.5, %v1317_v44 }
 0x7f5   : > { %v1319_v46 = vsub.f32 1.5, %v1318_v45 }
 0x7f7   : > { %v1320_v48 = vmul.f32 %v3385_v42, %v1319_v46 }
 0x7f9   : > { %v1321_v49 = vmul.f32 %v1320_v48, %v1314_v41 }
 0x7fb   : > { %v1323_v51 = vsel %vm1322_vm6, %v1314_v41, %v1321_v49 }
 0x7fc   : > { %v1326_v52 = vsel %vm1324_vm7, %v1325_v50, %v1323_v51 }
 0x7fd   : > { %v1327_v53 = vadd.f32 1e-06, %v1326_v52 }
 0x7ff   : > { %3386 = vrcp.f32 %v1327_v53 }
 0x805   : > { %v3387_v56 = vpop.eup %3386 }
 0x806   : > { %v1333_v57 = vmul.f32 %v3387_v56, %v1332_v39 }
 0x808   : > { %v1337_v58 = vadd.f32 %v3338_v55, %v1333_v57 }
 0x80a   : > { %v1342_v59 = vpack.c.bf16 %v1337_v58, %v1337_v58 }
 0x80c   : > { %3073 = vmatmul.msk.bf16.vlgmr.msrb.gmra.mxu0 %vm899_vm0, %v1342_v59 }
 0x889   : > { %v1371_v4 = vpop.f32.mrf.mxu0 }
 0x88a   : > { %v1372_v5 = vadd.f32 %v3340_v3, %v1371_v4 }
 0x88c   : > { %v1417_v6 = vpack.c.bf16 %v1372_v5, %v1372_v5 }
 0x88e   : > { %1652 = vrot.lane.b32.xlu2 %v1417_v6, %s4434_s5  ;;  %1476 = vrot.lane.b32.xlu0 %v1417_v6, %s4432_s8 }
 0x88f   : > { %3083 = vmatmul.msk.bf16.vlgmr.msrb.gmra.mxu3 %vm986_vm4, %v1417_v6 }
 0x891   : > { %v1373_v7 = vpop.f32.mrf.mxu0 }
 0x896   : > { %1573 = vrot.lane.b32.xlu0 %v1417_v6, %s4435_s12 }
 0x8e8   : > { %v1653_v56 = vpop.permute.xlu2 %1652 }
 0x900   : > { %v1477_v11 = vpop.permute.xlu0 %1476 }
 0x901   : > { %3085 = vmatmul.msk.bf16.vlgmr.msra.gmra.mxu0 %vm986_vm4, %v1477_v11 }
 0x908   : > { %v1574_v40 = vpop.permute.xlu0 %1573 }
 0x912   : > { %v1434_v13 = vpop.f32.mrf.mxu3 }
 0x913   : > { %v1438_v14 = vmul.f32 0.35355338, %v1434_v13 }
 0x915   : > { %v1439_v15 = vadd.f32 %v1438_v14, %v3912_v12 }
 0x917   : > { %v1440_v16 = vsel %vm986_vm4, %v1439_v15, -inf }
 0x918   : > { %1441 = vmax.xlane.f32.xlu1 %v1440_v16 }
 0x91a   : > { %v1436_v17 = vpop.f32.mrf.mxu3 }
 0x91b   : > { %v1413_v17 = vld [vmem:[%s4439_s16 + $0x4] sm:$0xf] }
 0x97e   : > { %v1495_v18 = vpop.f32.mrf.mxu0 }
 0x97f   : > { %v1499_v26 = vmul.f32 0.35355338, %v1495_v18  ;;  %v1539_v18 = vsel %vm1025_vm5, %v1413_v17, 0 }
 0x980   : > { %1548 = vmatpush.bf16.msra.mxu3 %v1539_v18 }
 0x981   : > { %v1500_v28 = vadd.f32 %v1499_v26, %v3912_v12 }
 0x983   : > { %v1501_v29 = vsel %vm986_vm4, %v1500_v28, -inf }
 0x986   : > { %v1497_v19 = vpop.f32.mrf.mxu0 }
 0x98b   : > { %v1442_v20 = vpop.xlane.xlu1 %1441 }
 0x98c   : > { %v1443_v21 = vsub.f32 %v1439_v15, %v1442_v20 }
 0x98e   : > { %v1444_v22 = vmul.f32 1.442695, %v1443_v21 }
 0x990   : > { %3388 = vpow2.f32 %v1444_v22 }
 0x996   : > { %v3389_v23 = vpop.eup %3388 }
 0x997   : > { %v1446_v24 = vsel %vm986_vm4, %v3389_v23, 0.0 }
 0x998   : > { %1447 = vadd.xlane.f32.xlu1 %v1446_v24 }
 0x9b1   : > { %1453 = vrot.lane.b32.xlu1 %v3890_v63, %s4438_s1 }
 0x9b9   : > { %1575 = vrot.lane.b32.xlu1 %v3890_v63, %s4435_s12 }
 0x9c1   : > { %1654 = vrot.lane.b32.xlu1 %v3890_v63, %s4434_s5 }
 0x9eb   : > { %1502 = vmax.xlane.f32.xlu1 %v1501_v29 }
 0xa0b   : > { %v1448_v25 = vpop.xlane.xlu1 %1447 }
 0xa0c   : > { %3390 = vrcp.f32 %v1448_v25 }
 0xa12   : > { %v3391_v30 = vpop.eup %3390 }
 0xa13   : > { %v1450_v32 = vmul.f32 %v3391_v30, %v3389_v23 }
 0xa15   : > { %v1451_v35 = vpack.c.bf16 %v1450_v32, %v1450_v32  ;;  %v1414_v32 = vld [vmem:[%s4439_s16 + $0x8] sm:$0xf] }
 0xa23   : > { %v1454_v33 = vpop.permute.xlu1 %1453 }
 0xa24   : > { %v1459_v34 = vsel %vm1025_vm5, %v1454_v33, 0  ;;  %v1636_v33 = vsel %vm1025_vm5, %v1414_v32, 0  ;;  %v3344_v32 = vld [vmem:[%s4331_s21] ss:$0 sm:$0xff] }
 0xa25   : > { %1468 = vmatpush.bf16.msra.mxu2 %v1459_v34  ;;  %1645 = vmatpush.bf16.msrb.mxu3 %v1636_v33 }
 0xa28   : > { %3084 = vmatmul.msk.bf16.vlgmr.msra.gmra.mxu2 %vm986_vm4, %v1451_v35 }
 0xa29   : > { %1567 = vmatpush.bf16.msrb.mxu2 %v1558_v0 }
 0xa2b   : > { %v1576_v37 = vpop.permute.xlu1 %1575 }
 0xa2c   : > { %v1581_v38 = vsel %vm986_vm4, %v1576_v37, 0 }
 0xa2d   : > { %1590 = vmatpush.bf16.xpose.msrb.mxu0 %v1581_v38 }
 0xa33   : > { %v1655_v41 = vpop.permute.xlu1 %1654 }
 0xa34   : > { %v1660_v42 = vsel %vm986_vm4, %v1655_v41, 0  ;;  %3089 = vmatmul.msk.bf16.vlgmr.msrb.gmra.mxu0 %vm986_vm4, %v1574_v40 }
 0xa35   : > { %1669 = vmatpush.bf16.xpose.msra.mxu2 %v1660_v42 }
 0xa5e   : > { %v1503_v43 = vpop.xlane.xlu1 %1502 }
 0xa5f   : > { %v1504_v44 = vsub.f32 %v1500_v28, %v1503_v43 }
 0xa61   : > { %v1505_v45 = vmul.f32 1.442695, %v1504_v44 }
 0xa63   : > { %3392 = vpow2.f32 %v1505_v45  ;;  %v1415_v45 = vld [vmem:[%s4439_s16 + $0xc] sm:$0xf]  ;;  %s4449_s16 = sld [smem:[#allocation29_spill]] }
 0xa69   : > { %v3393_v46 = vpop.eup %3392 }
 0xa6a   : > { %v1507_v48 = vsel %vm986_vm4, %v3393_v46, 0.0 }
 0xa6b   : > { %1508 = vadd.xlane.f32.xlu1 %v1507_v48 }
 0xa84   : > { %1610 = vrot.lane.b32.xlu1 %v3890_v63, %s4440_s30 }
 0xaab   : > { %v1470_v49 = vpop.f32.mrf.mxu2 }
 0xaac   : > { %v1474_v50 = vpack.c.bf16 %v1470_v49, %v1470_v49 }
 0xaae   : > { %3088 = vmatmul.msk.bf16.vlgmr.msrb.gmra.mxu2 %vm986_vm4, %v1474_v50 }
 0xab1   : > { %v1592_v51 = vpop.f32.mrf.mxu0 }
 0xab2   : > { %v1596_v52 = vmul.f32 0.35355338, %v1592_v51 }
 0xab3   : > { %v1472_v53 = vpop.f32.mrf.mxu2 }
 0xab4   : > { %v1597_v54 = vadd.f32 %v1596_v52, %v3912_v12 }
 0xab6   : > { %v1598_v39 = vsel %vm986_vm4, %v1597_v54, -inf }
 0xab7   : > { %1599 = vmax.xlane.f32.xlu0 %v1598_v39  ;;  %v3341_v39 = vld [vmem:[%s4443_s17] ss:$0 sm:$0xff]  ;;  %s4445_s17 = smov 56  }
 0xab9   : > { %v1594_v55 = vpop.f32.mrf.mxu0 }
 0xabe   : > { %3092 = vmatmul.msk.bf16.vlgmr.msra.gmra.mxu2 %vm986_vm4, %v1653_v56 }
 0xacb   : > { %1513 = vrot.lane.b32.xlu0 %v3890_v63, %s4441_s9 }
 0xade   : > { %v1509_v57 = vpop.xlane.xlu1 %1508 }
 0xadf   : > { %3394 = vrcp.f32 %v1509_v57 }
 0xae5   : > { %v3395_v60 = vpop.eup %3394 }
 0xae6   : > { %v1511_v62 = vmul.f32 %v3395_v60, %v3393_v46  ;;  %v1715_v46 = vsel %vm1025_vm5, %v1415_v45, 0 }
 0xae8   : > { %v1512_v6 = vpack.c.bf16 %v1511_v62, %v1511_v62 }
 0xaf6   : > { %v1611_v1 = vpop.permute.xlu1 %1610 }
 0xaf7   : > { %v1616_v5 = vsel %vm1025_vm5, %v1611_v1, 0 }
 0xb2a   : > { %v1600_v59 = vpop.xlane.xlu0 %1599 }
 0xb2b   : > { %v1601_v2 = vsub.f32 %v1597_v54, %v1600_v59 }
 0xb2d   : > { %v1602_v7 = vmul.f32 1.442695, %v1601_v2 }
 0xb2f   : > { %3396 = vpow2.f32 %v1602_v7  ;;  %v3267_v7 = vld [vmem:[%s4332_s22 + $0x18] sm:$0xff] }
 0xb30   : > { %1850 = vmatpush.bf16.msrb.mxu2 %v3267_v7 }
 0xb31   : > { %v3943_v58 = vpop.f32.mrf.mxu2 }
 0xb35   : > { %v3397_v15 = vpop.eup %3396 }
 0xb36   : > { %v1604_v16 = vsel %vm986_vm4, %v3397_v15, 0.0 }
 0xb39   : > { %v1571_v61 = vpop.f32.mrf.mxu2 }
 0xb3d   : > { %v1514_v3 = vpop.permute.xlu0 %1513 }
 0xb3e   : > { %v1519_v4 = vsel %vm1025_vm5, %v1514_v3, 0 }
 0xb3f   : > { %1528 = vmatpush.bf16.msra.mxu1 %v1519_v4  ;;  %v3263_v4 = vld [vmem:[%s4330_s20 + $0x8] sm:$0xff] }
 0xb41   : > { %v1671_v9 = vpop.f32.mrf.mxu2 }
 0xb42   : > { %v1675_v10 = vmul.f32 0.35355338, %v1671_v9  ;;  %3086 = vmatmul.msk.bf16.vlgmr.msra.gmra.mxu1 %vm986_vm4, %v1512_v6 }
 0xb43   : > { %1625 = vmatpush.bf16.msrb.mxu1 %v1616_v5 }
 0xb44   : > { %v1676_v11 = vadd.f32 %v1675_v10, %v3912_v12  ;;  %v3266_v10 = vld [vmem:[%s4332_s22 + $0x10] sm:$0xff] }
 0xb45   : > { %1851 = vmatpush.bf16.msrb.mxu2 %v3266_v10 }
 0xb46   : > { %v1677_v13 = vsel %vm986_vm4, %v1676_v11, -inf }
 0xb47   : > { %1678 = vmax.xlane.f32.xlu2 %v1677_v13  ;;  %1724 = vmatpush.bf16.msra.mxu1 %v1715_v46 }
 0xb49   : > { %v1673_v14 = vpop.f32.mrf.mxu2 }
 0xb4f   : > { %1605 = vadd.xlane.f32.xlu2 %v1604_v16 }
 0xbba   : > { %v1679_v19 = vpop.xlane.xlu2 %1678 }
 0xbbb   : > { %v1680_v20 = vsub.f32 %v1676_v11, %v1679_v19 }
 0xbbd   : > { %v1681_v21 = vmul.f32 1.442695, %v1680_v20 }
 0xbbf   : > { %3398 = vpow2.f32 %v1681_v21  ;;  %v1530_v22 = vpop.f32.mrf.mxu1 }
 0xbc0   : > { %v1534_v23 = vpack.c.bf16 %v1530_v22, %v1530_v22  ;;  %v3342_v22 = vld [vmem:[%s4328_s18] ss:$0 sm:$0xff] }
 0xbc2   : > { %3087 = vmatmul.msk.bf16.vlgmr.msra.gmra.mxu3 %vm986_vm4, %v1534_v23  ;;  %v1606_v24 = vpop.xlane.xlu2 %1605 }
 0xbc3   : > { %3400 = vrcp.f32 %v1606_v24  ;;  %1801 = vmatpush.bf16.msra.mxu3 %v3263_v4  ;;  %v3343_v24 = vld [vmem:[%s4329_s19] ss:$0 sm:$0xff]  ;;  %v3347_v4 = vld [vmem:[%s4418_s10 + $0x1] ss:$0 sm:$0xff] }
 0xbc5   : > { %v3399_v26 = vpop.eup %3398 }
 0xbc6   : > { %v1683_v28 = vsel %vm986_vm4, %v3399_v26, 0.0 }
 0xbc7   : > { %v1532_v29 = vpop.f32.mrf.mxu1  ;;  %1684 = vadd.xlane.f32.xlu2 %v1683_v28 }
 0xbc9   : > { %v3401_v25 = vpop.eup %3400 }
 0xbca   : > { %v1608_v30 = vmul.f32 %v3401_v25, %v3397_v15 }
 0xbcc   : > { %v1609_v31 = vpack.c.bf16 %v1608_v30, %v1608_v30  ;;  %v3265_v30 = vld [vmem:[%s4332_s22 + $0x8] sm:$0xff] }
 0xbcd   : > { %1852 = vmatpush.bf16.msrb.mxu2 %v3265_v30  ;;  %v3137_v30 = vld [vmem:[%s4423_s28 + $0x10] sm:$0xf] }
 0xbce   : > { %3090 = vmatmul.msk.bf16.vlgmr.msrb.gmra.mxu1 %vm986_vm4, %v1609_v31  ;;  %v3264_v31 = vld [vmem:[%s4332_s22] sm:$0xff] }
 0xbd1   : > { %1853 = vmatpush.bf16.msrb.mxu2 %v3264_v31 }
 0xbdf   : > { %1689 = vrot.lane.b32.xlu2 %v3890_v63, %s4442_s27 }
 0xc3a   : > { %v1685_v0 = vpop.xlane.xlu2 %1684 }
 0xc3b   : > { %3402 = vrcp.f32 %v1685_v0 }
 0xc41   : > { %v3403_v34 = vpop.eup %3402 }
 0xc42   : > { %v1687_v35 = vmul.f32 %v3403_v34, %v3399_v26  ;;  %v1690_v37 = vpop.permute.xlu2 %1689 }
 0xc43   : > { %v1695_v38 = vsel %vm1025_vm5, %v1690_v37, 0 }
 0xc44   : > { %v1688_v40 = vpack.c.bf16 %v1687_v35, %v1687_v35  ;;  %1704 = vmatpush.bf16.msra.mxu0 %v1695_v38  ;;  %v3345_v38 = vld [vmem:[%s4333_s23] ss:$0 sm:$0xff] }
 0xc45   : > { %v1550_v41 = vpop.f32.mrf.mxu3 }
 0xc46   : > { %v1570_v51 = vadd.f32 %v3943_v58, %v1550_v41 }
 0xc47   : > { %3093 = vmatmul.msk.bf16.vlgmr.msra.gmra.mxu0 %vm986_vm4, %v1688_v40 }
 0xc4b   : > { %v1627_v63 = vpop.f32.mrf.mxu1 }
 0xc4c   : > { %v1631_v42 = vpack.c.bf16 %v1627_v63, %v1627_v63 }
 0xc4d   : > { %v1552_v43 = vpop.f32.mrf.mxu3 }
 0xc4e   : > { %3091 = vmatmul.msk.bf16.vlgmr.msrb.gmra.mxu3 %vm986_vm4, %v1631_v42 }
 0xc53   : > { %v1629_v44 = vpop.f32.mrf.mxu1 }
 0xcc4   : > { %v1706_v48 = vpop.f32.mrf.mxu0 }
 0xcc5   : > { %v1710_v49 = vpack.c.bf16 %v1706_v48, %v1706_v48 }
 0xcc7   : > { %3094 = vmatmul.msk.bf16.vlgmr.msra.gmra.mxu1 %vm986_vm4, %v1710_v49 }
 0xccc   : > { %v1708_v50 = vpop.f32.mrf.mxu0 }
 0xccd   : > { %v3269_v50 = vld [vmem:[%s4415_s6 + $0x18] sm:$0xff] }
 0xcce   : > { %1934 = vmatpush.bf16.msrb.mxu0 %v3269_v50 }
 0xcd1   : > { %v1647_v52 = vpop.f32.mrf.mxu3 }
 0xcd2   : > { %v1651_v53 = vadd.f32 %v1647_v52, %v1570_v51  ;;  %v3268_v51 = vld [vmem:[%s4415_s6 + $0x10] sm:$0xff] }
 0xcd3   : > { %1935 = vmatpush.bf16.msrb.mxu0 %v3268_v51  ;;  %v3460_v51 = vld [vmem:[%s3783_s11] sm:$0xff]  ;;  %s4446_s11 = smov 48  }
 0xcd9   : > { %v1649_v54 = vpop.f32.mrf.mxu3 }
 0xd44   : > { %v1726_v55 = vpop.f32.mrf.mxu1 }
 0xd45   : > { %v1730_v56 = vadd.f32 %v1726_v55, %v1651_v53 }
 0xd47   : > { %v1734_v57 = vadd.f32 %v3341_v39, %v1730_v56 }
 0xd49   : > { %v1735_v59 = vadd.f32 %v1734_v57, %v3853_v27  ;;  %v3262_v27 = vld [vmem:[%s4330_s20] sm:$0xff] }
 0xd4a   : > { %1802 = vmatpush.bf16.msra.mxu3 %v3262_v27 }
 0xd4b   : > { %v1738_v60 = vsel %vm899_vm0, %v1735_v59, 0.0 }
 0xd4c   : > { %1739 = vadd.xlane.f32.xlu0 %v1738_v60  ;;  %v1728_v61 = vpop.f32.mrf.mxu1 }
 0xdbf   : > { %v1740_v62 = vpop.xlane.xlu0 %1739 }
 0xdc0   : > { %v1741_v1 = vmul.f32 %v1740_v62, %v3743_v8 }
 0xdc2   : > { %v1742_v58 = vsub.f32 %v1735_v59, %v1741_v1 }
 0xdc4   : > { %v1743_v2 = vmul.f32 %v1742_v58, %v1742_v58  ;;  %v1765_v23 = vmul.f32 %v3342_v22, %v1742_v58 }
 0xdc6   : > { %v1744_v3 = vsel %vm899_vm0, %v1743_v2, 0.0  ;;  %v3346_v2 = vld [vmem:[%s4416_s0 + $0x1] ss:$0 sm:$0xff] }
 0xdc7   : > { %1745 = vadd.xlane.f32.xlu1 %v1744_v3 }
 0xe3a   : > { %v1746_v5 = vpop.xlane.xlu1 %1745 }
 0xe3b   : > { %v1747_v6 = vmul.f32 0.032258064, %v1746_v5 }
 0xe3d   : > { %3404 = vrsqrt.f32 %v1747_v6  ;;  %vm1755_vm8 = vcmp.eq.f32.partialorder %v1747_v6, inf  ;;  %v1758_v18 = vand.u32 2147483648, %v1747_v6  ;;  %vm1757_vm9 = vcmp.eq.f32.partialorder %v1747_v6, 0.0 }
 0xe43   : > { %v3405_v9 = vpop.eup %3404 }
 0xe44   : > { %v1749_v11 = vmul.f32 %v3405_v9, %v1747_v6 }
 0xe46   : > { %v1750_v13 = vmul.f32 %v3405_v9, %v1749_v11 }
 0xe48   : > { %v1751_v14 = vmul.f32 0.5, %v1750_v13 }
 0xe4a   : > { %v1752_v15 = vsub.f32 1.5, %v1751_v14 }
 0xe4c   : > { %v1753_v16 = vmul.f32 %v3405_v9, %v1752_v15  ;;  %v3348_v9 = vld [vmem:[%s4420_s2 + $0x1] ss:$0 sm:$0xff] }
 0xe4e   : > { %v1754_v17 = vmul.f32 %v1753_v16, %v1747_v6 }
 0xe50   : > { %v1756_v19 = vsel %vm1755_vm8, %v1747_v6, %v1754_v17 }
 0xe51   : > { %v1759_v20 = vsel %vm1757_vm9, %v1758_v18, %v1756_v19 }
 0xe52   : > { %v1760_v21 = vadd.f32 1e-06, %v1759_v20 }
 0xe54   : > { %3406 = vrcp.f32 %v1760_v21 }
 0xe5a   : > { %v3407_v26 = vpop.eup %3406 }
 0xe5b   : > { %v1766_v28 = vmul.f32 %v3407_v26, %v1765_v23 }
 0xe5d   : > { %v1770_v29 = vadd.f32 %v3343_v24, %v1766_v28 }
 0xe5f   : > { %v1775_v25 = vpack.c.bf16 %v1770_v29, %v1770_v29 }
 0xe61   : > { %3103 = vmatmul.msk.bf16.vlgmr.msra.gmra.mxu3 %vm899_vm0, %v1775_v25 }
 0xee4   : > { %v1804_v33 = vpop.f32.mrf.mxu3 }
 0xee5   : > { %v1805_v0 = vadd.f32 %v3344_v32, %v1804_v33 }
 0xee7   : > { %v1808_v34 = vmax.f32 %v1805_v0, 0.0 }
 0xee9   : > { %v1817_v35 = vpack.c.bf16 %v1808_v34, %v1808_v34 }
 0xeeb   : > { %3120 = vmatmul.msk.bf16.vlgmr.msrb.gmra.mxu2 %vm1842_vm10, %v1817_v35 }
 0xeec   : > { %v1806_v37 = vpop.f32.mrf.mxu3 }
 0xf6e   : > { %v1855_v40 = vpop.f32.mrf.mxu2 }
 0xf6f   : > { %v1859_v41 = vadd.f32 %v1855_v40, %v1735_v59 }
 0xf71   : > { %v4012_v63 = vadd.f32 %v3345_v38, %v1859_v41 }
 0xf73   : > { %v1869_v42 = vsel %vm899_vm0, %v4012_v63, 0.0 }
 0xf74   : > { %1870 = vadd.xlane.f32.xlu2 %v1869_v42 }
 0xf76   : > { %v1857_v43 = vpop.f32.mrf.mxu2 }
 0xfe7   : > { %v1871_v44 = vpop.xlane.xlu2 %1870 }
 0xfe8   : > { %v1872_v45 = vmul.f32 %v1871_v44, %v3743_v8 }
 0xfea   : > { %v1873_v46 = vsub.f32 %v4012_v63, %v1872_v45 }
 0xfec   : > { %v1874_v48 = vmul.f32 %v1873_v46, %v1873_v46  ;;  %v1896_v3 = vmul.f32 %v3346_v2, %v1873_v46 }
 0xfee   : > { %v1875_v49 = vsel %vm899_vm0, %v1874_v48, 0.0 }
 0xfef   : > { %1876 = vadd.xlane.f32.xlu0 %v1875_v49 }
0x1062   : > { %v1877_v52 = vpop.xlane.xlu0 %1876 }
0x1063   : > { %v1878_v53 = vmul.f32 0.032258064, %v1877_v52 }
0x1065   : > { %3408 = vrsqrt.f32 %v1878_v53  ;;  %vm1886_vm11 = vcmp.eq.f32.partialorder %v1878_v53, inf  ;;  %v1889_v61 = vand.u32 2147483648, %v1878_v53  ;;  %vm1888_vm12 = vcmp.eq.f32.partialorder %v1878_v53, 0.0 }
0x106b   : > { %v3409_v54 = vpop.eup %3408 }
0x106c   : > { %v1880_v39 = vmul.f32 %v3409_v54, %v1878_v53 }
0x106e   : > { %v1881_v55 = vmul.f32 %v3409_v54, %v1880_v39 }
0x1070   : > { %v1882_v56 = vmul.f32 0.5, %v1881_v55 }
0x1072   : > { %v1883_v57 = vsub.f32 1.5, %v1882_v56 }
0x1074   : > { %v1884_v59 = vmul.f32 %v3409_v54, %v1883_v57 }
0x1076   : > { %v1885_v60 = vmul.f32 %v1884_v59, %v1878_v53 }
0x1078   : > { %v1887_v62 = vsel %vm1886_vm11, %v1878_v53, %v1885_v60 }
0x1079   : > { %v1890_v1 = vsel %vm1888_vm12, %v1889_v61, %v1887_v62 }
0x107a   : > { %v1891_v58 = vadd.f32 1e-06, %v1890_v1 }
0x107c   : > { %3410 = vrcp.f32 %v1891_v58 }
0x1082   : > { %v3411_v27 = vpop.eup %3410 }
0x1083   : > { %v1897_v5 = vmul.f32 %v3411_v27, %v1896_v3 }
0x1085   : > { %v1901_v6 = vadd.f32 %v3347_v4, %v1897_v5 }
0x1087   : > { %v1907_v7 = vpack.c.bf16 %v1901_v6, %v1901_v6 }
0x1089   : > { %3136 = vmatmul.msk.bf16.vlgmr.msrb.gmra.mxu0 %vm899_vm0, %v1907_v7 }
0x1106   : > { %v1937_v10 = vpop.f32.mrf.mxu0 }
0x1107   : > { %v1938_v11 = vadd.f32 %v3348_v9, %v1937_v10 }
0x1109   : > { %v4035_v13 = vpack.c.bf16 %v1938_v11, %v1938_v11 }
0x110b   : > { %1985 = vrot.lane.b32.xlu2 %v4035_v13, %s4444_s25  ;;  %1950 = vrot.lane.b32.xlu0 %v4035_v13, %s4438_s1 }
0x110e   : > { %v1939_v14 = vpop.f32.mrf.mxu0 }
0x1113   : > { %2183 = vrot.lane.b32.xlu2 %v4035_v13, %s4434_s5  ;;  %2007 = vrot.lane.b32.xlu0 %v4035_v13, %s4432_s8 }
0x111b   : > { %2185 = vrot.lane.b32.xlu0 %v4035_v13, %s4442_s27 }
0x1123   : > { %2106 = vrot.lane.b32.xlu0 %v4035_v13, %s4440_s30 }
0x112b   : > { %2104 = vrot.lane.b32.xlu0 %v4035_v13, %s4435_s12 }
0x1165   : > { %v1986_v15 = vpop.permute.xlu2 %1985 }
0x1166   : > { %v1991_v16 = vsel %vm1025_vm5, %v1986_v15, 0 }
0x1167   : > { %2000 = vmatpush.bf16.msrb.mxu3 %v1991_v16 }
0x116d   : > { %v2184_v48 = vpop.permute.xlu2 %2183 }
0x117d   : > { %v1951_v17 = vpop.permute.xlu0 %1950 }
0x117e   : > { %v1956_v18 = vsel %vm986_vm4, %v1951_v17, 0 }
0x117f   : > { %1965 = vmatpush.bf16.xpose.msrb.mxu1 %v1956_v18 }
0x1185   : > { %v2008_v31 = vpop.permute.xlu0 %2007 }
0x1186   : > { %3142 = vmatmul.msk.bf16.vlgmr.msrb.gmra.mxu1 %vm986_vm4, %v4035_v13 }
0x118d   : > { %v2186_v34 = vpop.permute.xlu0 %2185 }
0x118e   : > { %v2191_v37 = vsel %vm986_vm4, %v2186_v34, 0 }
0x1195   : > { %v2107_v38 = vpop.permute.xlu0 %2106 }
0x1196   : > { %v2112_v42 = vsel %vm986_vm4, %v2107_v38, 0 }
0x119d   : > { %v2105_v43 = vpop.permute.xlu0 %2104 }
0x1203   : > { %v1967_v19 = vpop.f32.mrf.mxu1 }
0x1204   : > { %v1971_v20 = vmul.f32 0.35355338, %v1967_v19 }
0x1206   : > { %v1972_v21 = vadd.f32 %v1971_v20, %v3786_v47  ;;  %v2089_v47 = vsel %vm1025_vm5, %v3137_v30, 0 }
0x1207   : > { %2098 = vmatpush.bf16.msra.mxu3 %v2089_v47 }
0x1208   : > { %v1973_v22 = vsel %vm986_vm4, %v1972_v21, -inf }
0x1209   : > { %1974 = vmax.xlane.f32.xlu1 %v1973_v22 }
0x120b   : > { %v1969_v23 = vpop.f32.mrf.mxu1 }
0x127c   : > { %v1975_v24 = vpop.xlane.xlu1 %1974 }
0x127d   : > { %v1976_v26 = vsub.f32 %v1972_v21, %v1975_v24 }
0x127f   : > { %v1977_v28 = vmul.f32 1.442695, %v1976_v26 }
0x1281   : > { %3412 = vpow2.f32 %v1977_v28 }
0x1287   : > { %v3413_v29 = vpop.eup %3412 }
0x1288   : > { %v1979_v25 = vsel %vm986_vm4, %v3413_v29, 0.0 }
0x1289   : > { %1980 = vadd.xlane.f32.xlu1 %v1979_v25 }
0x12a2   : > { %2009 = vrot.lane.b32.xlu1 %v4035_v13, %s4441_s9 }
0x12fc   : > { %v1981_v32 = vpop.xlane.xlu1 %1980 }
0x12fd   : > { %3414 = vrcp.f32 %v1981_v32 }
0x1303   : > { %v3415_v33 = vpop.eup %3414 }
0x1304   : > { %v1983_v0 = vmul.f32 %v3415_v33, %v3413_v29  ;;  %v3138_v33 = vld [vmem:[%s4423_s28 + $0x14] sm:$0xf] }
0x1306   : > { %v1984_v35 = vpack.c.bf16 %v1983_v0, %v1983_v0  ;;  %v2070_v0 = vsel %vm1025_vm5, %v3138_v33, 0 }
0x1307   : > { %2079 = vmatpush.bf16.msra.mxu1 %v2070_v0  ;;  %v3352_v0 = vld [vmem:[%s4449_s16 + $0x1] ss:$0 sm:$0xff]  ;;  %s4453_s16 = sld [smem:[#allocation31_spill]] }
0x1308   : > { %3143 = vmatmul.msk.bf16.vlgmr.msrb.gmra.mxu3 %vm986_vm4, %v1984_v35  ;;  %v3139_v35 = vld [vmem:[%s4423_s28 + $0x18] sm:$0xf] }
0x1309   : > { %2200 = vmatpush.bf16.xpose.msrb.mxu3 %v2191_v37  ;;  %v2167_v37 = vsel %vm1025_vm5, %v3139_v35, 0 }
0x130b   : > { %2176 = vmatpush.bf16.msrb.mxu1 %v2167_v37 }
0x1314   : > { %v2010_v40 = vpop.permute.xlu1 %2009 }
0x1315   : > { %v2015_v41 = vsel %vm986_vm4, %v2010_v40, 0 }
0x1316   : > { %2024 = vmatpush.bf16.xpose.msra.mxu2 %v2015_v41 }
0x131d   : > { %3144 = vmatmul.msk.bf16.vlgmr.msra.gmra.mxu2 %vm986_vm4, %v2008_v31 }
0x131e   : > { %2121 = vmatpush.bf16.xpose.msrb.mxu2 %v2112_v42 }
0x132d   : > { %3148 = vmatmul.msk.bf16.vlgmr.msrb.gmra.mxu2 %vm986_vm4, %v2105_v43 }
0x138b   : > { %v2002_v44 = vpop.f32.mrf.mxu3 }
0x138c   : > { %v2006_v45 = vpack.c.bf16 %v2002_v44, %v2002_v44 }
0x138e   : > { %3147 = vmatmul.msk.bf16.vlgmr.msra.gmra.mxu3 %vm986_vm4, %v2006_v45 }
0x1393   : > { %v2004_v46 = vpop.f32.mrf.mxu3 }
0x139e   : > { %3151 = vmatmul.msk.bf16.vlgmr.msrb.gmra.mxu3 %vm986_vm4, %v2184_v48 }
0x13a0   : > { %v2026_v49 = vpop.f32.mrf.mxu2 }
0x13a1   : > { %v2030_v50 = vmul.f32 0.35355338, %v2026_v49 }
0x13a3   : > { %v2031_v52 = vadd.f32 %v3460_v51, %v2030_v50  ;;  %v3140_v50 = vld [vmem:[%s4423_s28 + $0x1c] sm:$0xf] }
0x13a5   : > { %v2032_v53 = vsel %vm986_vm4, %v2031_v52, -inf }
0x13a6   : > { %2033 = vmax.xlane.f32.xlu1 %v2032_v53 }
0x13a8   : > { %v2028_v54 = vpop.f32.mrf.mxu2 }
0x13b0   : > { %v2123_v39 = vpop.f32.mrf.mxu2 }
0x13b1   : > { %v2127_v55 = vmul.f32 0.35355338, %v2123_v39 }
0x13b3   : > { %v2128_v56 = vadd.f32 %v3460_v51, %v2127_v55 }
0x13b5   : > { %v2129_v57 = vsel %vm986_vm4, %v2128_v56, -inf }
0x13b6   : > { %2130 = vmax.xlane.f32.xlu0 %v2129_v57 }
0x13b8   : > { %v2125_v59 = vpop.f32.mrf.mxu2 }
0x13bf   : > { %2044 = vrot.lane.b32.xlu1 %v4035_v13, %s4445_s17 }
0x1411   : > { %v4077_v60 = vpop.f32.mrf.mxu3 }
0x1419   : > { %v2102_v61 = vpop.f32.mrf.mxu3  ;;  %v2034_v62 = vpop.xlane.xlu1 %2033 }
0x141a   : > { %v2035_v1 = vsub.f32 %v2031_v52, %v2034_v62  ;;  %v3349_v62 = vld [vmem:[%s4425_s29 + $0x1] ss:$0 sm:$0xff] }
0x141c   : > { %v2036_v58 = vmul.f32 1.442695, %v2035_v1 }
0x141e   : > { %3416 = vpow2.f32 %v2036_v58 }
0x1421   : > { %v2202_v2 = vpop.f32.mrf.mxu3 }
0x1422   : > { %v2206_v3 = vmul.f32 0.35355338, %v2202_v2 }
0x1424   : > { %v2207_v4 = vadd.f32 %v3460_v51, %v2206_v3  ;;  %v3417_v9 = vpop.eup %3416  ;;  %v2246_v51 = vsel %vm1025_vm5, %v3140_v50, 0 }
0x1425   : > { %v2038_v11 = vsel %vm986_vm4, %v3417_v9, 0.0 }
0x1426   : > { %v2208_v27 = vsel %vm986_vm4, %v2207_v4, -inf }
0x1427   : > { %2209 = vmax.xlane.f32.xlu2 %v2208_v27 }
0x1429   : > { %v2204_v5 = vpop.f32.mrf.mxu3  ;;  %v2131_v6 = vpop.xlane.xlu0 %2130 }
0x142a   : > { %v2132_v7 = vsub.f32 %v2128_v56, %v2131_v6 }
0x142c   : > { %v2133_v10 = vmul.f32 1.442695, %v2132_v7 }
0x142e   : > { %3418 = vpow2.f32 %v2133_v10  ;;  %v3273_v10 = vld [vmem:[%s4324_s14 + $0x18] sm:$0xff] }
0x142f   : > { %2039 = vadd.xlane.f32.xlu2 %v2038_v11  ;;  %2371 = vmatpush.bf16.msra.mxu3 %v3273_v10  ;;  %v3271_v11 = vld [vmem:[%s4427_s24 + $0x18] sm:$0xff] }
0x1431   : > { %v2045_v14 = vpop.permute.xlu1 %2044 }
0x1432   : > { %v2050_v15 = vsel %vm1025_vm5, %v2045_v14, 0  ;;  %v3270_v14 = vld [vmem:[%s4427_s24 + $0x10] sm:$0xff] }
0x1433   : > { %2059 = vmatpush.bf16.msra.mxu0 %v2050_v15 }
0x1434   : > { %v3419_v16 = vpop.eup %3418 }
0x1435   : > { %v2135_v17 = vsel %vm986_vm4, %v3419_v16, 0.0 }
0x1436   : > { %2136 = vadd.xlane.f32.xlu0 %v2135_v17 }
0x144a   : > { %2141 = vrot.lane.b32.xlu0 %v4035_v13, %s4446_s11 }
0x149a   : > { %v2210_v18 = vpop.xlane.xlu2 %2209 }
0x149b   : > { %v2211_v19 = vsub.f32 %v2207_v4, %v2210_v18 }
0x149d   : > { %v2212_v20 = vmul.f32 1.442695, %v2211_v19 }
0x149f   : > { %3420 = vpow2.f32 %v2212_v20 }
0x14a2   : > { %v2040_v21 = vpop.xlane.xlu2 %2039 }
0x14a3   : > { %3422 = vrcp.f32 %v2040_v21 }
0x14a5   : > { %v3421_v22 = vpop.eup %3420 }
0x14a6   : > { %v2214_v23 = vsel %vm986_vm4, %v3421_v22, 0.0 }
0x14a7   : > { %2215 = vadd.xlane.f32.xlu2 %v2214_v23 }
0x14a9   : > { %v3423_v24 = vpop.eup %3422  ;;  %v2137_v29 = vpop.xlane.xlu0 %2136 }
0x14aa   : > { %v2042_v26 = vmul.f32 %v3423_v24, %v3417_v9  ;;  %3424 = vrcp.f32 %v2137_v29  ;;  %v3350_v29 = vld [vmem:[%s4429_s3 + $0x1] ss:$0 sm:$0xff] }
0x14ac   : > { %v2043_v28 = vpack.c.bf16 %v2042_v26, %v2042_v26 }
0x14ae   : > { %3145 = vmatmul.msk.bf16.vlgmr.msra.gmra.mxu0 %vm986_vm4, %v2043_v28 }
0x14b0   : > { %v3425_v25 = vpop.eup %3424 }
0x14b1   : > { %v2139_v30 = vmul.f32 %v3425_v25, %v3419_v16 }
0x14b3   : > { %v2140_v32 = vpack.c.bf16 %v2139_v30, %v2139_v30  ;;  %v3351_v30 = vld [vmem:[%s4448_s13 + $0x1] ss:$0 sm:$0xff] }
0x14bc   : > { %v2142_v47 = vpop.permute.xlu0 %2141 }
0x14bd   : > { %v2147_v31 = vsel %vm1025_vm5, %v2142_v47, 0 }
0x14be   : > { %2156 = vmatpush.bf16.msrb.mxu0 %v2147_v31 }
0x14bf   : > { %2220 = vrot.lane.b32.xlu2 %v4035_v13, %s4447_s15  ;;  %s4450_s15 = sld [smem:[#allocation28_spill]] }
0x14c1   : > { %3149 = vmatmul.msk.bf16.vlgmr.msrb.gmra.mxu0 %vm986_vm4, %v2140_v32 }
0x14c2   : > { %2255 = vmatpush.bf16.msra.mxu0 %v2246_v51 }
0x151a   : > { %v2216_v34 = vpop.xlane.xlu2 %2215 }
0x151b   : > { %3426 = vrcp.f32 %v2216_v34 }
0x1521   : > { %v3427_v38 = vpop.eup %3426 }
0x1522   : > { %v2218_v13 = vmul.f32 %v3427_v38, %v3421_v22  ;;  %v2221_v40 = vpop.permute.xlu2 %2220 }
0x1523   : > { %v2226_v41 = vsel %vm1025_vm5, %v2221_v40, 0  ;;  %v3353_v40 = vld [vmem:[%s4450_s15 + $0x1] ss:$0 sm:$0xff]  ;;  %s4458_s15 = sld [smem:[#allocation35_spill]] }
0x1524   : > { %v2219_v42 = vpack.c.bf16 %v2218_v13, %v2218_v13  ;;  %2235 = vmatpush.bf16.msra.mxu2 %v2226_v41 }
0x1527   : > { %3152 = vmatmul.msk.bf16.vlgmr.msra.gmra.mxu2 %vm986_vm4, %v2219_v42 }
0x152b   : > { %v2061_v43 = vpop.f32.mrf.mxu0 }
0x152c   : > { %v2065_v44 = vpack.c.bf16 %v2061_v43, %v2061_v43 }
0x152e   : > { %3146 = vmatmul.msk.bf16.vlgmr.msra.gmra.mxu1 %vm986_vm4, %v2065_v44 }
0x152f   : > { %2336 = vmatpush.bf16.msra.mxu1 %v3271_v11 }
0x1533   : > { %v2063_v45 = vpop.f32.mrf.mxu0  ;;  %2337 = vmatpush.bf16.msra.mxu1 %v3270_v14 }
0x153e   : > { %v2158_v46 = vpop.f32.mrf.mxu0 }
0x153f   : > { %v2162_v48 = vpack.c.bf16 %v2158_v46, %v2158_v46 }
0x1541   : > { %3150 = vmatmul.msk.bf16.vlgmr.msrb.gmra.mxu1 %vm986_vm4, %v2162_v48 }
0x1546   : > { %v2160_v49 = vpop.f32.mrf.mxu0 }
0x15aa   : > { %v2237_v52 = vpop.f32.mrf.mxu2 }
0x15ab   : > { %v2241_v53 = vpack.c.bf16 %v2237_v52, %v2237_v52  ;;  %v2081_v54 = vpop.f32.mrf.mxu1 }
0x15ac   : > { %v2101_v56 = vadd.f32 %v4077_v60, %v2081_v54 }
0x15ad   : > { %3153 = vmatmul.msk.bf16.vlgmr.msra.gmra.mxu0 %vm986_vm4, %v2241_v53 }
0x15b2   : > { %v2239_v39 = vpop.f32.mrf.mxu2 }
0x15b3   : > { %v2083_v55 = vpop.f32.mrf.mxu1 }
0x15be   : > { %v2178_v57 = vpop.f32.mrf.mxu1 }
0x15bf   : > { %v2182_v59 = vadd.f32 %v2178_v57, %v2101_v56 }
0x15c6   : > { %v2180_v61 = vpop.f32.mrf.mxu1 }
0x162a   : > { %v2257_v1 = vpop.f32.mrf.mxu0 }
0x162b   : > { %v2261_v58 = vadd.f32 %v2257_v1, %v2182_v59 }
0x162d   : > { %v2265_v2 = vadd.f32 %v3349_v62, %v2261_v58 }
0x162f   : > { %v4113_v3 = vadd.f32 %v2265_v2, %v4012_v63  ;;  %v3272_v63 = vld [vmem:[%s4324_s14 + $0x10] sm:$0xff] }
0x1630   : > { %2372 = vmatpush.bf16.msra.mxu3 %v3272_v63 }
0x1631   : > { %v2271_v4 = vsel %vm899_vm0, %v4113_v3, 0.0 }
0x1632   : > { %2272 = vadd.xlane.f32.xlu1 %v2271_v4  ;;  %v2259_v27 = vpop.f32.mrf.mxu0 }
0x1633   : > { %3183 = vmatmul.msk.bf16.vlgmr.msra.gmra.mxu3 %vm899_vm0, %v3870_v36 }
0x16a5   : > { %v2273_v5 = vpop.xlane.xlu1 %2272 }
0x16a6   : > { %v2274_v60 = vmul.f32 %v2273_v5, %v3743_v8 }
0x16a8   : > { %v2275_v6 = vsub.f32 %v4113_v3, %v2274_v60  ;;  %v3184_v60 = vld [vmem:[%s4451_s4 + $0x10] sm:$0xf] }
0x16aa   : > { %v2276_v7 = vmul.f32 %v2275_v6, %v2275_v6  ;;  %v2298_v25 = vmul.f32 %v3350_v29, %v2275_v6 }
0x16ac   : > { %v2277_v9 = vsel %vm899_vm0, %v2276_v7, 0.0 }
0x16ad   : > { %2278 = vadd.xlane.f32.xlu0 %v2277_v9  ;;  %v2526_v9 = vsel %vm1025_vm5, %v3184_v60, 0 }
0x16b6   : > { %v2374_v34 = vpop.f32.mrf.mxu3 }
0x16b7   : > { %v2375_v35 = vadd.f32 %v3352_v0, %v2374_v34 }
0x16b9   : > { %v4144_v37 = vpack.c.bf16 %v2375_v35, %v2375_v35 }
0x16bb   : > { %v2391_v38 = vsel %vm986_vm4, %v4144_v37, 0 }
0x16bc   : > { %2400 = vmatpush.bf16.xpose.msrb.mxu2 %v2391_v38 }
0x16be   : > { %v2376_v13 = vpop.f32.mrf.mxu3 }
0x16c1   : > { %2446 = vrot.lane.b32.xlu0 %v4144_v37, %s4432_s8 }
0x16c9   : > { %2543 = vrot.lane.b32.xlu0 %v4144_v37, %s4435_s12 }
0x1720   : > { %v2279_v15 = vpop.xlane.xlu0 %2278 }
0x1721   : > { %v2280_v16 = vmul.f32 0.032258064, %v2279_v15 }
0x1723   : > { %3428 = vrsqrt.f32 %v2280_v16  ;;  %vm2288_vm13 = vcmp.eq.f32.partialorder %v2280_v16, inf  ;;  %v2291_v23 = vand.u32 2147483648, %v2280_v16  ;;  %vm2290_vm14 = vcmp.eq.f32.partialorder %v2280_v16, 0.0 }
0x1729   : > { %v3429_v17 = vpop.eup %3428 }
0x172a   : > { %v2282_v18 = vmul.f32 %v3429_v17, %v2280_v16 }
0x172c   : > { %v2283_v19 = vmul.f32 %v3429_v17, %v2282_v18 }
0x172e   : > { %v2284_v20 = vmul.f32 0.5, %v2283_v19 }
0x1730   : > { %v2285_v21 = vsub.f32 1.5, %v2284_v20 }
0x1732   : > { %v2286_v22 = vmul.f32 %v3429_v17, %v2285_v21 }
0x1733   : > { %v2447_v45 = vpop.permute.xlu0 %2446 }
0x1734   : > { %v2287_v36 = vmul.f32 %v2286_v22, %v2280_v16  ;;  %v2452_v46 = vsel %vm986_vm4, %v2447_v45, 0 }
0x1735   : > { %2461 = vmatpush.bf16.xpose.msrb.mxu1 %v2452_v46 }
0x1736   : > { %v2289_v24 = vsel %vm2288_vm13, %v2280_v16, %v2287_v36 }
0x1737   : > { %v2292_v26 = vsel %vm2290_vm14, %v2291_v23, %v2289_v24 }
0x1738   : > { %v2293_v28 = vadd.f32 1e-06, %v2292_v26 }
0x173a   : > { %3430 = vrcp.f32 %v2293_v28 }
0x173b   : > { %v2544_v48 = vpop.permute.xlu0 %2543 }
0x173c   : > { %v2549_v49 = vsel %vm986_vm4, %v2544_v48, 0 }
0x1740   : > { %v3431_v47 = vpop.eup %3430 }
0x1741   : > { %v2299_v31 = vmul.f32 %v3431_v47, %v2298_v25 }
0x1743   : > { %v2303_v32 = vadd.f32 %v3351_v30, %v2299_v31 }
0x1745   : > { %v2309_v33 = vpack.c.bf16 %v2303_v32, %v2303_v32 }
0x1747   : > { %3169 = vmatmul.msk.bf16.vlgmr.msra.gmra.mxu1 %vm899_vm0, %v2309_v33 }
0x1748   : > { %2558 = vmatpush.bf16.xpose.msra.mxu1 %v2549_v49 }
0x17c4   : > { %v2339_v41 = vpop.f32.mrf.mxu1 }
0x17c5   : > { %v2340_v42 = vadd.f32 %v3353_v40, %v2339_v41 }
0x17c7   : > { %v2385_v43 = vpack.c.bf16 %v2340_v42, %v2340_v42 }
0x17c9   : > { %2620 = vrot.lane.b32.xlu0 %v2385_v43, %s4434_s5  ;;  %3189 = vmatmul.msk.bf16.vlgmr.msrb.gmra.mxu2 %vm986_vm4, %v2385_v43 }
0x17cc   : > { %v2341_v44 = vpop.f32.mrf.mxu1 }
0x183b   : > { %v2621_v25 = vpop.permute.xlu0 %2620 }
0x184c   : > { %v2402_v50 = vpop.f32.mrf.mxu2 }
0x184d   : > { %v2406_v51 = vmul.f32 0.35355338, %v2402_v50 }
0x184f   : > { %v2407_v52 = vadd.f32 %v2406_v51, %v3912_v12  ;;  %v3185_v51 = vld [vmem:[%s4451_s4 + $0x14] sm:$0xf] }
0x1851   : > { %v2408_v53 = vsel %vm986_vm4, %v2407_v52, -inf }
0x1852   : > { %2409 = vmax.xlane.f32.xlu2 %v2408_v53 }
0x1854   : > { %v2404_v54 = vpop.f32.mrf.mxu2 }
0x186a   : > { %2444 = vrot.lane.b32.xlu2 %v2385_v43, %s4432_s8  ;;  %s4459_s8 = sld [smem:[#allocation9_spill]] }
0x1872   : > { %2622 = vrot.lane.b32.xlu2 %v4144_v37, %s4434_s5 }
0x18c5   : > { %v2410_v39 = vpop.xlane.xlu2 %2409 }
0x18c6   : > { %v2411_v55 = vsub.f32 %v2407_v52, %v2410_v39  ;;  %v2507_v52 = vsel %vm1025_vm5, %v3185_v51, 0 }
0x18c7   : > { %2516 = vmatpush.bf16.msra.mxu2 %v2507_v52 }
0x18c8   : > { %v2412_v56 = vmul.f32 1.442695, %v2411_v55 }
0x18ca   : > { %3432 = vpow2.f32 %v2412_v56 }
0x18cd   : > { %v2445_v57 = vpop.permute.xlu2 %2444 }
0x18ce   : > { %3191 = vmatmul.msk.bf16.vlgmr.msrb.gmra.mxu1 %vm986_vm4, %v2445_v57 }
0x18d0   : > { %v3433_v59 = vpop.eup %3432 }
0x18d1   : > { %v2414_v61 = vsel %vm986_vm4, %v3433_v59, 0.0 }
0x18d2   : > { %2415 = vadd.xlane.f32.xlu1 %v2414_v61 }
0x18d5   : > { %v2623_v63 = vpop.permute.xlu2 %2622 }
0x18d6   : > { %v2628_v11 = vsel %vm986_vm4, %v2623_v63, 0 }
0x18eb   : > { %2421 = vrot.lane.b32.xlu1 %v4144_v37, %s4438_s1  ;;  %s3253_s1 = sshll.u32 %s4459_s8, 3 }
0x18ec   : > { %s2935_s13 = scalar_lea.hbm %s4460_s26, %s3253_s1 }
0x18ed   : > { %s2939_s17 = sshll.u32 %s2935_s13, 4  ;;  %s2940_s17 = int_to_ptr.hbm [resolvable:$true] %s2939_s17 }
0x18ee   : > { %s3476_s11 = sshra.s32 %s2940_s17, 4  ;;  %s3477_s11 = int_to_ptr.hbm [resolvable:$true] %s3476_s11 }
0x18ef   : > { %p3483_p0 = scmp.lt.s32.totalorder %s3477_s11, %s4460_s26 }
0x18f3   : > { %2541 = vrot.lane.b32.xlu1 %v2385_v43, %s4435_s12  ;;  %s4452_s12 = sld [smem:[#allocation14_spill]] }
0x18f9   : > { %v3461_v23 = vld [vmem:[%s4452_s12] sm:$0xff]  ;;  %s4454_s12 = sld [smem:[#allocation34_spill]] }
0x1945   : > { %v2416_v2 = vpop.xlane.xlu1 %2415 }
0x1946   : > { %3434 = vrcp.f32 %v2416_v2 }
0x194b   : > { %v2463_v62 = vpop.f32.mrf.mxu1 }
0x194c   : > { %v2467_v1 = vmul.f32 0.35355338, %v2463_v62  ;;  %v3435_v5 = vpop.eup %3434 }
0x194d   : > { %v2418_v6 = vmul.f32 %v3435_v5, %v3433_v59 }
0x194e   : > { %v2468_v58 = vadd.f32 %v2467_v1, %v3912_v12 }
0x194f   : > { %v2419_v12 = vpack.c.bf16 %v2418_v6, %v2418_v6 }
0x1950   : > { %v2469_v4 = vsel %vm986_vm4, %v2468_v58, -inf }
0x1951   : > { %2470 = vmax.xlane.f32.xlu1 %v2469_v4  ;;  %v3186_v4 = vld [vmem:[%s4451_s4 + $0x18] sm:$0xf] }
0x1953   : > { %v2465_v27 = vpop.f32.mrf.mxu1 }
0x1954   : > { %v2604_v27 = vsel %vm1025_vm5, %v3186_v4, 0 }
0x1955   : > { %2613 = vmatpush.bf16.msrb.mxu2 %v2604_v27 }
0x195d   : > { %v2422_v7 = vpop.permute.xlu1 %2421 }
0x195e   : > { %v2427_v10 = vsel %vm1025_vm5, %v2422_v7, 0 }
0x195f   : > { %2436 = vmatpush.bf16.msrb.mxu0 %v2427_v10 }
0x1962   : > { %3190 = vmatmul.msk.bf16.vlgmr.msrb.gmra.mxu0 %vm986_vm4, %v2419_v12 }
0x1963   : > { %2535 = vmatpush.bf16.msra.mxu0 %v2526_v9 }
0x1965   : > { %v2542_v14 = vpop.permute.xlu1 %2541 }
0x1966   : > { %3195 = vmatmul.msk.bf16.vlgmr.msra.gmra.mxu1 %vm986_vm4, %v2542_v14 }
0x1967   : > { %2637 = vmatpush.bf16.xpose.msrb.mxu0 %v2628_v11 }
0x19c4   : > { %v2471_v15 = vpop.xlane.xlu1 %2470 }
0x19c5   : > { %v2472_v16 = vsub.f32 %v2468_v58, %v2471_v15  ;;  %v3187_v15 = vld [vmem:[%s4451_s4 + $0x1c] sm:$0xf] }
0x19c7   : > { %v2473_v17 = vmul.f32 1.442695, %v2472_v16  ;;  %v2683_v16 = vsel %vm1025_vm5, %v3187_v15, 0 }
0x19c9   : > { %3436 = vpow2.f32 %v2473_v17 }
0x19cf   : > { %v3437_v18 = vpop.eup %3436 }
0x19d0   : > { %v2475_v19 = vsel %vm986_vm4, %v3437_v18, 0.0 }
0x19d1   : > { %2476 = vadd.xlane.f32.xlu1 %v2475_v19 }
0x19df   : > { %v2438_v20 = vpop.f32.mrf.mxu0 }
0x19e0   : > { %v2442_v21 = vpack.c.bf16 %v2438_v20, %v2438_v20 }
0x19e2   : > { %3194 = vmatmul.msk.bf16.vlgmr.msra.gmra.mxu0 %vm986_vm4, %v2442_v21 }
0x19e3   : > { %v2560_v22 = vpop.f32.mrf.mxu1 }
0x19e4   : > { %v2564_v36 = vmul.f32 0.35355338, %v2560_v22 }
0x19e6   : > { %v2565_v24 = vadd.f32 %v3461_v23, %v2564_v36 }
0x19e7   : > { %v2440_v26 = vpop.f32.mrf.mxu0 }
0x19e8   : > { %v2566_v28 = vsel %vm986_vm4, %v2565_v24, -inf }
0x19e9   : > { %2567 = vmax.xlane.f32.xlu2 %v2566_v28 }
0x19ea   : > { %2578 = vrot.lane.b32.xlu1 %v4144_v37, %s4440_s30 }
0x19eb   : > { %v2562_v29 = vpop.f32.mrf.mxu1 }
0x19f2   : > { %3198 = vmatmul.msk.bf16.vlgmr.msrb.gmra.mxu0 %vm986_vm4, %v2621_v25 }
0x1a01   : > { %2481 = vrot.lane.b32.xlu2 %v4144_v37, %s4441_s9 }
0x1a44   : > { %v2477_v30 = vpop.xlane.xlu1 %2476 }
0x1a45   : > { %3438 = vrcp.f32 %v2477_v30 }
0x1a4b   : > { %v3439_v32 = vpop.eup %3438 }
0x1a4c   : > { %v2479_v33 = vmul.f32 %v3439_v32, %v3437_v18 }
0x1a4e   : > { %v2480_v13 = vpack.c.bf16 %v2479_v33, %v2479_v33 }
0x1a5c   : > { %v2568_v47 = vpop.xlane.xlu2 %2567  ;;  %v2579_v0 = vpop.permute.xlu1 %2578 }
0x1a5d   : > { %v2584_v38 = vsel %vm1025_vm5, %v2579_v0, 0  ;;  %v2569_v41 = vsub.f32 %v2565_v24, %v2568_v47 }
0x1a5f   : > { %v4188_v31 = vpop.f32.mrf.mxu0  ;;  %v2570_v42 = vmul.f32 1.442695, %v2569_v41  ;;  %v3278_v41 = vld [vmem:[%s4332_s22 + $0x30] sm:$0xff] }
0x1a61   : > { %3440 = vpow2.f32 %v2570_v42 }
0x1a64   : > { %v2482_v34 = vpop.permute.xlu2 %2481 }
0x1a65   : > { %v2487_v35 = vsel %vm1025_vm5, %v2482_v34, 0  ;;  %v3275_v34 = vld [vmem:[%s4330_s20 + $0x18] sm:$0xff] }
0x1a66   : > { %2496 = vmatpush.bf16.msrb.mxu3 %v2487_v35 }
0x1a67   : > { %v2539_v40 = vpop.f32.mrf.mxu0  ;;  %v3441_v49 = vpop.eup %3440 }
0x1a68   : > { %v2572_v50 = vsel %vm986_vm4, %v3441_v49, 0.0 }
0x1a69   : > { %3192 = vmatmul.msk.bf16.vlgmr.msrb.gmra.mxu3 %vm986_vm4, %v2480_v13  ;;  %v3279_v13 = vld [vmem:[%s4332_s22 + $0x38] sm:$0xff] }
0x1a6a   : > { %2593 = vmatpush.bf16.msra.mxu3 %v2584_v38  ;;  %2822 = vmatpush.bf16.msra.mxu0 %v3279_v13 }
0x1a6e   : > { %2692 = vmatpush.bf16.msrb.mxu3 %v2683_v16  ;;  %2823 = vmatpush.bf16.msra.mxu0 %v3278_v41  ;;  %v3281_v16 = vld [vmem:[%s4454_s12 + $0x8] sm:$0xff] }
0x1a6f   : > { %v2639_v43 = vpop.f32.mrf.mxu0 }
0x1a70   : > { %v2643_v44 = vmul.f32 0.35355338, %v2639_v43 }
0x1a72   : > { %v2644_v45 = vadd.f32 %v3461_v23, %v2643_v44  ;;  %v3354_v23 = vld [vmem:[%s4453_s16 + $0x1] ss:$0 sm:$0xff]  ;;  %s4457_s16 = sld [smem:[#allocation6_spill]] }
0x1a74   : > { %v2645_v46 = vsel %vm986_vm4, %v2644_v45, -inf }
0x1a75   : > { %2646 = vmax.xlane.f32.xlu0 %v2645_v46 }
0x1a77   : > { %v2641_v48 = vpop.f32.mrf.mxu0 }
0x1a78   : > { %s873_s5 = sand.u32 1, %s4457_s16  }
0x1a79   : > { %s3039_s4 = sshll.u32 %s873_s5, 3  ;;  %s2925_s16 = scalar_lea.sflag [#allocation3], %s873_s5 }
0x1a7a   : > { %s875_s25 = scalar_lea.vmem [#allocation2], %s3039_s4  ;;  %s3482_s4 = scalar_lea.hbm %s4460_s26, 16 }
0x1a7d   : > { %2573 = vadd.xlane.f32.xlu0 %v2572_v50 }
0x1ae8   : > { %v2647_v53 = vpop.xlane.xlu0 %2646 }
0x1ae9   : > { %v2648_v54 = vsub.f32 %v2644_v45, %v2647_v53  ;;  %v3355_v53 = vld [vmem:[%s4328_s18 + $0x1] ss:$0 sm:$0xff] }
0x1aeb   : > { %v2649_v39 = vmul.f32 1.442695, %v2648_v54 }
0x1aec   : > { %v2498_v55 = vpop.f32.mrf.mxu3 }
0x1aed   : > { %3442 = vpow2.f32 %v2649_v39  ;;  %v2502_v56 = vpack.c.bf16 %v2498_v55, %v2498_v55  ;;  %v3356_v39 = vld [vmem:[%s4329_s19 + $0x1] ss:$0 sm:$0xff] }
0x1aef   : > { %3193 = vmatmul.msk.bf16.vlgmr.msra.gmra.mxu2 %vm986_vm4, %v2502_v56 }
0x1af0   : > { %v2574_v57 = vpop.xlane.xlu0 %2573  ;;  %2773 = vmatpush.bf16.msra.mxu2 %v3275_v34 }
0x1af1   : > { %3444 = vrcp.f32 %v2574_v57 }
0x1af3   : > { %v3443_v59 = vpop.eup %3442 }
0x1af4   : > { %v2500_v61 = vpop.f32.mrf.mxu3  ;;  %v2651_v62 = vsel %vm986_vm4, %v3443_v59, 0.0 }
0x1af5   : > { %2652 = vadd.xlane.f32.xlu0 %v2651_v62  ;;  %v3277_v61 = vld [vmem:[%s4332_s22 + $0x28] sm:$0xff]  ;;  %v3276_v62 = vld [vmem:[%s4332_s22 + $0x20] sm:$0xff] }
0x1af6   : > { %2824 = vmatpush.bf16.msra.mxu0 %v3277_v61 }
0x1af7   : > { %v3445_v1 = vpop.eup %3444 }
0x1af8   : > { %v2576_v58 = vmul.f32 %v3445_v1, %v3441_v49  ;;  %v3357_v1 = vld [vmem:[%s4331_s21 + $0x1] ss:$0 sm:$0xff] }
0x1afa   : > { %v2577_v2 = vpack.c.bf16 %v2576_v58, %v2576_v58  ;;  %2825 = vmatpush.bf16.msra.mxu0 %v3276_v62 }
0x1afc   : > { %3196 = vmatmul.msk.bf16.vlgmr.msra.gmra.mxu3 %vm986_vm4, %v2577_v2 }
0x1b09   : > { %2657 = vrot.lane.b32.xlu0 %v4144_v37, %s4442_s27  ;;  %s4455_s27 = sld [smem:[#allocation32_spill]] }
0x1b68   : > { %v2653_v5 = vpop.xlane.xlu0 %2652 }
0x1b69   : > { %3446 = vrcp.f32 %v2653_v5 }
0x1b6f   : > { %v3447_v6 = vpop.eup %3446 }
0x1b70   : > { %v2655_v7 = vmul.f32 %v3447_v6, %v3443_v59 }
0x1b72   : > { %v2518_v60 = vpop.f32.mrf.mxu2  ;;  %v2656_v12 = vpack.c.bf16 %v2655_v7, %v2655_v7 }
0x1b73   : > { %v2538_v19 = vadd.f32 %v4188_v31, %v2518_v60  ;;  %v3358_v60 = vld [vmem:[%s4333_s23 + $0x1] ss:$0 sm:$0xff] }
0x1b7a   : > { %v2520_v9 = vpop.f32.mrf.mxu2 }
0x1b7b   : > { %v2658_v10 = vpop.permute.xlu0 %2657 }
0x1b7c   : > { %v2663_v63 = vsel %vm1025_vm5, %v2658_v10, 0 }
0x1b7d   : > { %2672 = vmatpush.bf16.msrb.mxu1 %v2663_v63 }
0x1b7f   : > { %v2595_v11 = vpop.f32.mrf.mxu3 }
0x1b80   : > { %v2599_v37 = vpack.c.bf16 %v2595_v11, %v2595_v11  ;;  %3199 = vmatmul.msk.bf16.vlgmr.msrb.gmra.mxu1 %vm986_vm4, %v2656_v12 }
0x1b81   : > { %2903 = vmatpush.bf16.msra.mxu1 %v3281_v16 }
0x1b82   : > { %3197 = vmatmul.msk.bf16.vlgmr.msrb.gmra.mxu2 %vm986_vm4, %v2599_v37 }
0x1b87   : > { %v2597_v14 = vpop.f32.mrf.mxu3 }
0x1bfd   : > { %v2674_v17 = vpop.f32.mrf.mxu1 }
0x1bfe   : > { %v2678_v18 = vpack.c.bf16 %v2674_v17, %v2674_v17  ;;  %v3280_v17 = vld [vmem:[%s4454_s12] sm:$0xff] }
0x1bff   : > { %2904 = vmatpush.bf16.msra.mxu1 %v3280_v17 }
0x1c00   : > { %3200 = vmatmul.msk.bf16.vlgmr.msrb.gmra.mxu3 %vm986_vm4, %v2678_v18  ;;  %vm2910_vm4 = vcmask 130048  }
0x1c05   : > { %v2615_v20 = vpop.f32.mrf.mxu2  ;;  %v2676_v21 = vpop.f32.mrf.mxu1 }
0x1c06   : > { %v2619_v22 = vadd.f32 %v2615_v20, %v2538_v19 }
0x1c0d   : > { %v2617_v36 = vpop.f32.mrf.mxu2 }
0x1c83   : > { %v2694_v24 = vpop.f32.mrf.mxu3 }
0x1c84   : > { %v2698_v26 = vadd.f32 %v2694_v24, %v2619_v22 }
0x1c86   : > { %v2702_v28 = vadd.f32 %v3354_v23, %v2698_v26 }
0x1c88   : > { %v2703_v29 = vadd.f32 %v2702_v28, %v4113_v3  ;;  %v3274_v3 = vld [vmem:[%s4330_s20 + $0x10] sm:$0xff] }
0x1c89   : > { %2774 = vmatpush.bf16.msra.mxu2 %v3274_v3  ;;  %v3361_v3 = vld [vmem:[%s4458_s15] ss:$0 sm:$0xff]  ;;  %s3478_s15 = scalar_lea.hbm %s3477_s11, 8 }
0x1c8a   : > { %v2708_v25 = vsel %vm899_vm0, %v2703_v29, 0.0  ;;  %p3479_p11 = scmp.ne.s32.totalorder %s3477_s11, %s3478_s15  ;;  %p3484_p1 = scmp.lt.s32.totalorder %s3482_s4, %s3478_s15 }
0x1c8b   : > { %v2696_v30 = vpop.f32.mrf.mxu3  ;;  %2709 = vadd.xlane.f32.xlu2 %v2708_v25 }
0x1c8c   : > { %v3359_v30 = vld [vmem:[%s4455_s27] ss:$0 sm:$0xff]  ;;  %p3480_p12 = pnand %p3479_p11, %p3721_p5  ;;  %p3485_p2 = por %p3484_p1, %p3483_p0 }
0x1c8e   : > { %p3481_p13 = pneg %p3480_p12 }
0x1c90   : > { %p3486_p3 = pnand %p3485_p2, %p3481_p13 }
0x1cfe   : > { %v2710_v47 = vpop.xlane.xlu2 %2709 }
0x1cff   : > { %v2711_v31 = vmul.f32 %v2710_v47, %v3743_v8 }
0x1d01   : > { %v2712_v32 = vsub.f32 %v2703_v29, %v2711_v31  ;;  %v3360_v31 = vld [vmem:[%s4456_s7] ss:$0 sm:$0xff]  ;;  %s2937_s7 = sshll.u32 %s875_s25, 4  ;;  %s2938_s7 = int_to_ptr.vmem [resolvable:$true] %s2937_s7 }
0x1d03   : > { %v2713_v33 = vmul.f32 %v2712_v32, %v2712_v32  ;;  %v2735_v54 = vmul.f32 %v3355_v53, %v2712_v32 }
0x1d05   : > { %v2714_v0 = vsel %vm899_vm0, %v2713_v33, 0.0 }
0x1d06   : > { %2715 = vadd.xlane.f32.xlu1 %v2714_v0 }
0x1d79   : > { %v2716_v35 = vpop.xlane.xlu1 %2715 }
0x1d7a   : > { %v2717_v38 = vmul.f32 0.032258064, %v2716_v35 }
0x1d7c   : > { %3448 = vrsqrt.f32 %v2717_v38  ;;  %vm2725_vm15 = vcmp.eq.f32.partialorder %v2717_v38, inf  ;;  %v2728_v49 = vand.u32 2147483648, %v2717_v38  ;;  %vm2727_vm1 = vcmp.eq.f32.partialorder %v2717_v38, 0.0 }
0x1d82   : > { %v3449_v40 = vpop.eup %3448 }
0x1d83   : > { %v2719_v42 = vmul.f32 %v3449_v40, %v2717_v38 }
0x1d85   : > { %v2720_v43 = vmul.f32 %v3449_v40, %v2719_v42 }
0x1d87   : > { %v2721_v44 = vmul.f32 0.5, %v2720_v43 }
0x1d89   : > { %v2722_v45 = vsub.f32 1.5, %v2721_v44 }
0x1d8b   : > { %v2723_v46 = vmul.f32 %v3449_v40, %v2722_v45 }
0x1d8d   : > { %v2724_v48 = vmul.f32 %v2723_v46, %v2717_v38 }
0x1d8f   : > { %v2726_v50 = vsel %vm2725_vm15, %v2717_v38, %v2724_v48 }
0x1d90   : > { %v2729_v51 = vsel %vm2727_vm1, %v2728_v49, %v2726_v50 }
0x1d91   : > { %v2730_v52 = vadd.f32 1e-06, %v2729_v51 }
0x1d93   : > { %3450 = vrcp.f32 %v2730_v52 }
0x1d99   : > { %v3451_v55 = vpop.eup %3450 }
0x1d9a   : > { %v2736_v56 = vmul.f32 %v3451_v55, %v2735_v54 }
0x1d9c   : > { %v2740_v57 = vadd.f32 %v3356_v39, %v2736_v56 }
0x1d9e   : > { %v2746_v59 = vpack.c.bf16 %v2740_v57, %v2740_v57 }
0x1da0   : > { %3216 = vmatmul.msk.bf16.vlgmr.msra.gmra.mxu2 %vm899_vm0, %v2746_v59 }
0x1e23   : > { %v2776_v58 = vpop.f32.mrf.mxu2 }
0x1e24   : > { %v2777_v2 = vadd.f32 %v3357_v1, %v2776_v58 }
0x1e26   : > { %v2780_v4 = vmax.f32 %v2777_v2, 0.0 }
0x1e28   : > { %v2790_v27 = vpack.c.bf16 %v2780_v4, %v2780_v4 }
0x1e2a   : > { %3241 = vmatmul.msk.bf16.vlgmr.msra.gmra.mxu0 %vm1842_vm10, %v2790_v27 }
0x1e2b   : > { %v2778_v5 = vpop.f32.mrf.mxu2 }
0x1ea7   : > { %v2827_v6 = vpop.f32.mrf.mxu0 }
0x1ea8   : > { %v2831_v7 = vadd.f32 %v2827_v6, %v2703_v29 }
0x1eaa   : > { %v2837_v9 = vadd.f32 %v3358_v60, %v2831_v7 }
0x1eac   : > { %v2840_v10 = vsel %vm899_vm0, %v2837_v9, 0.0 }
0x1ead   : > { %2841 = vadd.xlane.f32.xlu0 %v2840_v10 }
0x1eaf   : > { %v2829_v63 = vpop.f32.mrf.mxu0 }
0x1f20   : > { %v2842_v12 = vpop.xlane.xlu0 %2841 }
0x1f21   : > { %v2843_v11 = vmul.f32 %v2842_v12, %v3743_v8 }
0x1f23   : > { %v2844_v37 = vsub.f32 %v2837_v9, %v2843_v11 }
0x1f25   : > { %v2845_v14 = vmul.f32 %v2844_v37, %v2844_v37  ;;  %v2867_v47 = vmul.f32 %v3359_v30, %v2844_v37 }
0x1f27   : > { %v2846_v15 = vsel %vm899_vm0, %v2845_v14, 0.0 }
0x1f28   : > { %2847 = vadd.xlane.f32.xlu2 %v2846_v15 }
0x1f9b   : > { %v2848_v18 = vpop.xlane.xlu2 %2847 }
0x1f9c   : > { %v2849_v19 = vmul.f32 0.032258064, %v2848_v18 }
0x1f9e   : > { %3452 = vrsqrt.f32 %v2849_v19  ;;  %vm2857_vm2 = vcmp.eq.f32.partialorder %v2849_v19, inf  ;;  %v2860_v26 = vand.u32 2147483648, %v2849_v19  ;;  %vm2859_vm3 = vcmp.eq.f32.partialorder %v2849_v19, 0.0 }
0x1fa4   : > { %v3453_v20 = vpop.eup %3452 }
0x1fa5   : > { %v2851_v8 = vmul.f32 %v3453_v20, %v2849_v19 }
0x1fa7   : > { %v2852_v21 = vmul.f32 %v3453_v20, %v2851_v8 }
0x1fa9   : > { %v2853_v22 = vmul.f32 0.5, %v2852_v21 }
0x1fab   : > { %v2854_v36 = vsub.f32 1.5, %v2853_v22 }
0x1fad   : > { %v2855_v23 = vmul.f32 %v3453_v20, %v2854_v36 }
0x1faf   : > { %v2856_v24 = vmul.f32 %v2855_v23, %v2849_v19 }
0x1fb1   : > { %v2858_v28 = vsel %vm2857_vm2, %v2849_v19, %v2856_v24 }
0x1fb2   : > { %v2861_v29 = vsel %vm2859_vm3, %v2860_v26, %v2858_v28 }
0x1fb3   : > { %v2862_v25 = vadd.f32 1e-06, %v2861_v29 }
0x1fb5   : > { %3454 = vrcp.f32 %v2862_v25 }
0x1fbb   : > { %v3455_v32 = vpop.eup %3454 }
0x1fbc   : > { %v2868_v33 = vmul.f32 %v3455_v32, %v2867_v47 }
0x1fbe   : > { %v2872_v0 = vadd.f32 %v3360_v31, %v2868_v33 }
0x1fc0   : > { %v2877_v34 = vpack.c.bf16 %v2872_v0, %v2872_v0 }
0x1fc2   : > { %3251 = vmatmul.msk.bf16.vlgmr.msra.gmra.mxu1 %vm899_vm0, %v2877_v34 }
0x203f   : > { %v2906_v35 = vpop.f32.mrf.mxu1 }
0x2040   : > { %v2907_v38 = vadd.f32 %v3361_v3, %v2906_v35 }
0x2042   : > { %v2911_v13 = vsel %vm2910_vm4, %v2907_v38, -inf }
0x2043   : > { %2912 = vmax.xlane.f32.xlu1 %v2911_v13 }
0x2047   : > { %v2908_v40 = vpop.f32.mrf.mxu1 }
0x20b6   : > { %v2913_v41 = vpop.xlane.xlu1 %2912 }
0x20b7   : > { %v2914_v42 = vsub.f32 %v2907_v38, %v2913_v41 }
0x20b9   : > { %v2915_v43 = vmul.f32 1.442695, %v2914_v42 }
0x20bb   : > { %3456 = vpow2.f32 %v2915_v43 }
0x20c1   : > { %v3457_v44 = vpop.eup %3456 }
0x20c2   : > { %v2917_v45 = vsel %vm2910_vm4, %v3457_v44, 0.0 }
0x20c3   : > { %2918 = vadd.xlane.f32.xlu2 %v2917_v45 }
0x2136   : > { %v2919_v46 = vpop.xlane.xlu2 %2918 }
0x2137   : > { %3458 = vlog2.f32 %v2919_v46 }
0x213d   : > { %v3459_v48 = vpop.eup %3458 }
0x213e   : > { %v2921_v49 = vmul.f32 0.6931472, %v3459_v48 }
0x2140   : > { %v2922_v50 = vsub.f32 %v2914_v42, %v2921_v49 }
0x2142   : > { %2923 = vst.msk [vmem:[%s875_s25] sm:$0xff] %vm2910_vm4, %v2922_v50 }
0x2143   : > { %3489 = shalt.err (!%p3486_p3)
}
0x2144   : > { %3282 = dma.vmem_to_hbm [thread:$0]  (%p3721_p5), %s2938_s7, 128, %s2940_s17, %s2925_s16  }
0x2145 PF: > { %s4462_s5 = sld [smem:[#allocation8_spill]] }
0x2146   : > { %s4463_s13 = sld [smem:[#allocation5_spill]] }
0x214b   : > { %p3288_p4 = scmp.ge.s32.totalorder %s4462_s5, 2 }
0x214c   : > { %s2951_s0 = sand.u32 1, %s4463_s13  }
0x214d   : > { %p3285_p7 = pnand %p3288_p4, %p3725_p6  ;;  %s2952_s8 = scalar_lea.sflag [#allocation3], %s2951_s0 }
0x214f   : > { %p3286_p8 = pneg %p3285_p7 }
0x2151   : > { %3507 = dma.done.wait (%p3286_p8), %s2952_s8, 128  }
0x2152   : > { %3509 = vsyncadd (%p3286_p8), %s2952_s8, 4294967168  ;;  %s4465_s30 = sld [smem:[#allocation10_spill]] }
0x2153   : > { %s4466_s8 = sld [smem:[#allocation6_spill]] }
0x2154   : > { %s4467_s5 = sld [smem:[#allocation7_spill]] }
0x2155   : > { %s4468_s9 = sld [smem:[#allocation11_spill]] }
0x2158   : > { %p38_p9 = scmp.ge.s32.totalorder %s4465_s30, 4  }
0x215a   :  { %40 = sbr.rel (!%p38_p9) target bundleno = 26 (0x1a), region = 196 }
0x215f   :  { %2958 = vsyncpa [#allocation3], 1 }
0x2160   :  { %2960 = vsyncpa [#allocation3 + $0x1], 1 }

</bundles_post_ra>
